<compile_context>
chip_gen: v6e
topology: v6e:2x2x1
jax: 0.10.0
libtpu: 0.0.40
codegen_flags: <defaults>
</compile_context>

<pallas_src>
import functools

import jax
import jax.numpy as jnp
from jax.experimental import pallas as pl
from jax.experimental.pallas import tpu as pltpu

LANE = 128  # pad all feature / output dims to this


# --------------------------------------------------------------------------
# Kernels
# --------------------------------------------------------------------------
def layer1_kernel(adj_ref, x_ref, deginv_ref, eagg_ref, wn_ref, we_ref,
                  b1_ref, dout_ref, h1_ref, acc_ref):
    """h1s = D_out^{-1/2} * ReLU( D_in^{-1} (A @ X) @ Wn + E_agg @ We + b1 ).

    Inner loop accumulates A@X only (f32 scratch); all per-row work happens in
    the finalize.  D_out^{-1/2} (needed by the following GraphConv) is folded
    into the emitted rows so layer2 can consume the raw int8 adjacency.
    """
    k = pl.program_id(1)

    @pl.when(k == 0)
    def _():
        acc_ref[...] = jnp.zeros_like(acc_ref)

    a = adj_ref[...].astype(jnp.float32).astype(jnp.bfloat16)   # int8 0/1 -> bf16 (VPU)
    acc_ref[...] += jnp.dot(a, x_ref[...], preferred_element_type=jnp.float32)

    @pl.when(k == pl.num_programs(1) - 1)
    def _():
        agg = (deginv_ref[...] * acc_ref[...]).astype(jnp.bfloat16)
        h = (jnp.dot(agg, wn_ref[...], preferred_element_type=jnp.float32)
             + jnp.dot(eagg_ref[...], we_ref[...],
                       preferred_element_type=jnp.float32)
             + b1_ref[...])
        h1_ref[...] = (dout_ref[...] * jnp.maximum(h, 0.0)).astype(h1_ref.dtype)


def layer2_kernel(adj_ref, h1_ref, din_ref, w2_ref, b2_ref, rmask_ref,
                  wp_ref, part_ref, acc_ref):
    """GraphConv + fused mean_nodes/predict partial, per dst tile:

        h2_tile   = ReLU( D_in^{-1/2} (A @ h1s) @ W2 + b2 )
        part[i]   = (sum over valid rows of h2_tile / N) @ Wp

    (rmask carries 1/N for valid rows, 0 for padding rows).
    """
    k = pl.program_id(1)

    @pl.when(k == 0)
    def _():
        acc_ref[...] = jnp.zeros_like(acc_ref)

    a = adj_ref[...].astype(jnp.float32).astype(jnp.bfloat16)   # int8 0/1 -> bf16 (VPU)
    acc_ref[...] += jnp.dot(a, h1_ref[...], preferred_element_type=jnp.float32)

    @pl.when(k == pl.num_programs(1) - 1)
    def _():
        agg = (din_ref[...] * acc_ref[...]).astype(jnp.bfloat16)
        h2 = jnp.maximum(
            jnp.dot(agg, w2_ref[...], preferred_element_type=jnp.float32)
            + b2_ref[...], 0.0)
        colsum = jnp.sum(h2 * rmask_ref[...], axis=0, keepdims=True)  # f32 (1, H2p)
        part_ref[0] = jnp.dot(colsum, wp_ref[...],
                              preferred_element_type=jnp.float32)


# --------------------------------------------------------------------------
# Forward wrapper
# --------------------------------------------------------------------------
@functools.partial(jax.jit, static_argnames=("tile_n", "tile_k"))
def gnn_forward(adj_i8, x_p, eagg_p, deginv, dout_isqrt, din_isqrt, rmask,
                params_p, *, tile_n=512, tile_k=512):
    """Two fused kernels; returns the lane-padded (1, 128) prediction (f32)."""
    wn, we, b1, w2, b2, wp, bp = params_p
    n_pad = adj_i8.shape[0]
    fn_p, fe_p = x_p.shape[1], eagg_p.shape[1]
    h1_p, h2_p, out_p = wn.shape[1], w2.shape[1], wp.shape[1]
    gi, gk = n_pad // tile_n, n_pad // tile_k

    # ---- GNNLayer: h1s = D_out^{-1/2} ReLU(D_in^{-1}(A@X)@Wn + Eagg@We + b1)
    h1 = pl.pallas_call(
        layer1_kernel,
        out_shape=jax.ShapeDtypeStruct((n_pad, h1_p), jnp.bfloat16),
        grid_spec=pltpu.PrefetchScalarGridSpec(
            num_scalar_prefetch=0,
            grid=(gi, gk),
            in_specs=[
                pl.BlockSpec((tile_n, tile_k), lambda i, k: (i, k)),  # A (int8)
                pl.BlockSpec((tile_k, fn_p), lambda i, k: (k, 0)),    # X
                pl.BlockSpec((tile_n, 1), lambda i, k: (i, 0)),       # D_in^-1
                pl.BlockSpec((tile_n, fe_p), lambda i, k: (i, 0)),    # E_agg
                pl.BlockSpec((fn_p, h1_p), lambda i, k: (0, 0)),      # Wn
                pl.BlockSpec((fe_p, h1_p), lambda i, k: (0, 0)),      # We
                pl.BlockSpec((1, h1_p), lambda i, k: (0, 0)),         # b1
                pl.BlockSpec((tile_n, 1), lambda i, k: (i, 0)),       # D_out^-1/2
            ],
            out_specs=pl.BlockSpec((tile_n, h1_p), lambda i, k: (i, 0)),
            scratch_shapes=[pltpu.VMEM((tile_n, fn_p), jnp.float32)],
        ),
        compiler_params=pltpu.CompilerParams(
            dimension_semantics=("parallel", "arbitrary")),
    )(adj_i8, x_p, deginv, eagg_p, wn, we, b1, dout_isqrt)

    # ---- GraphConv + fused mean_nodes/predict (one partial row per dst tile)
    parts = pl.pallas_call(
        layer2_kernel,
        out_shape=jax.ShapeDtypeStruct((gi, 1, out_p), jnp.float32),
        grid_spec=pltpu.PrefetchScalarGridSpec(
            num_scalar_prefetch=0,
            grid=(gi, gk),
            in_specs=[
                pl.BlockSpec((tile_n, tile_k), lambda i, k: (i, k)),  # A (int8)
                pl.BlockSpec((tile_k, h1_p), lambda i, k: (k, 0)),    # h1s
                pl.BlockSpec((tile_n, 1), lambda i, k: (i, 0)),       # D_in^-1/2
                pl.BlockSpec((h1_p, h2_p), lambda i, k: (0, 0)),      # W2
                pl.BlockSpec((1, h2_p), lambda i, k: (0, 0)),         # b2
                pl.BlockSpec((tile_n, 1), lambda i, k: (i, 0)),       # rowmask / N
                pl.BlockSpec((h2_p, out_p), lambda i, k: (0, 0)),     # Wp
            ],
            out_specs=pl.BlockSpec((1, 1, out_p), lambda i, k: (i, 0, 0)),
            scratch_shapes=[pltpu.VMEM((tile_n, h1_p), jnp.float32)],
        ),
        compiler_params=pltpu.CompilerParams(
            dimension_semantics=("parallel", "arbitrary")),
    )(adj_i8, h1, din_isqrt, w2, b2, rmask, wp)

    # trivial (gi, 128) partial reduction + bias, left to XLA
    return jnp.sum(parts[:, 0, :], axis=0, keepdims=True) + bp


# --------------------------------------------------------------------------
# Host-side graph preprocessing (folds incidence matmul; keeps A unnormalized)
# --------------------------------------------------------------------------
def round_up(x, m):
    return ((x + m - 1) // m) * m


def pad2(x, rows=None, cols=None):
    r, c = x.shape
    rows = r if rows is None else rows
    cols = c if cols is None else cols
    return jnp.pad(x, ((0, rows - r), (0, cols - c)))


def preprocess_graph(src, dst, e, num_nodes, n_pad):
    n, m = num_nodes, src.shape[0]
    adj = jnp.zeros((n, n), jnp.float32).at[dst, src].add(1.0)      # A[dst, src]
    inc = jnp.zeros((n, m), jnp.float32).at[dst, jnp.arange(m)].add(1.0)
    in_deg = jnp.maximum(adj.sum(axis=1, keepdims=True), 1.0)       # (n, 1)
    out_deg = jnp.maximum(adj.sum(axis=0, keepdims=True), 1.0)      # (1, n)
    e_agg = (inc @ e) / in_deg                                      # incidence folded

    pad_r = n_pad - n
    adj_i8 = pad2(adj, n_pad, n_pad).astype(jnp.int8)               # unnormalized 0/1
    deginv = jnp.pad(1.0 / in_deg, ((0, pad_r), (0, 0)), constant_values=1.0)
    din_isqrt = jnp.pad(1.0 / jnp.sqrt(in_deg), ((0, pad_r), (0, 0)),
                        constant_values=1.0)
    dout_isqrt = jnp.pad(1.0 / jnp.sqrt(out_deg.T), ((0, pad_r), (0, 0)),
                         constant_values=1.0)
    # fused readout weights: 1/N for valid rows, 0 for padded rows (f32)
    rmask = jnp.pad(jnp.full((n, 1), 1.0 / n, jnp.float32), ((0, pad_r), (0, 0)))
    return (adj_i8, deginv, din_isqrt, dout_isqrt, rmask,
            adj, inc, in_deg, out_deg, e_agg)


def glorot(key, shape):
    fan_in, fan_out = shape
    lim = jnp.sqrt(6.0 / (fan_in + fan_out))
    return jax.random.uniform(key, shape, jnp.float32, -lim, lim)


# --------------------------------------------------------------------------
if __name__ == "__main__":
    # dims consistent with the module's __init__.  N deliberately NOT a tile
    # multiple to exercise the remainder (padding + masked readout) path.
    N = 300
    input_node_dim = 8
    input_edge_dim = 4
    hidden_dim1 = 32
    hidden_dim2 = 16
    out_dim = 3

    # small-test tiles; production defaults in gnn_forward are 512
    tile_n = tile_k = 256
    n_pad = round_up(N, max(tile_n, tile_k))        # 512 -> grid (2, 2)

    key = jax.random.PRNGKey(0)
    keys = jax.random.split(key, 10)

    # synthetic graph: bidirectional ring, M = 2N directed edges
    idx = jnp.arange(N)
    src = jnp.concatenate([idx, (idx + 1) % N])
    dst = jnp.concatenate([(idx + 1) % N, idx])
    M = src.shape[0]

    x = jax.random.normal(keys[0], (N, input_node_dim), jnp.float32)
    e = jax.random.normal(keys[1], (M, input_edge_dim), jnp.float32)

    wn = glorot(keys[2], (input_node_dim, hidden_dim1))
    we = glorot(keys[3], (input_edge_dim, hidden_dim1))
    b1 = 0.1 * jax.random.normal(keys[6], (1, hidden_dim1), jnp.float32)
    w2 = glorot(keys[4], (hidden_dim1, hidden_dim2))
    b2 = 0.1 * jax.random.normal(keys[7], (1, hidden_dim2), jnp.float32)
    wp = glorot(keys[5], (hidden_dim2, out_dim))
    bp = 0.1 * jax.random.normal(keys[8], (1, out_dim), jnp.float32)

    (adj_i8, deginv, din_isqrt, dout_isqrt, rmask,
     adj, inc, in_deg, out_deg, e_agg) = preprocess_graph(src, dst, e, N, n_pad)

    # row-pad to n_pad and lane-pad to 128 (zero padding keeps the math exact);
    # bf16 operands for the MXU, f32 biases / predict weights (f32 accumulation)
    x_p = pad2(x, n_pad, LANE).astype(jnp.bfloat16)
    eagg_p = pad2(e_agg, n_pad, LANE).astype(jnp.bfloat16)
    wn_p = pad2(wn, LANE, LANE).astype(jnp.bfloat16)
    we_p = pad2(we, LANE, LANE).astype(jnp.bfloat16)
    b1_p = pad2(b1, cols=LANE)                                   # f32
    w2_p = pad2(w2, LANE, LANE).astype(jnp.bfloat16)
    b2_p = pad2(b2, cols=LANE)                                   # f32
    wp_p = pad2(wp, LANE, LANE)                                  # f32
    bp_p = pad2(bp, cols=LANE)                                   # f32
    params_p = (wn_p, we_p, b1_p, w2_p, b2_p, wp_p, bp_p)

    out_pad = gnn_forward(adj_i8, x_p, eagg_p, deginv, dout_isqrt, din_isqrt,
                          rmask, params_p, tile_n=tile_n, tile_k=tile_k)
    out_pad = jax.block_until_ready(out_pad)
    out = out_pad[:, :out_dim]
    assert out.shape == (1, out_dim)

    # ---- reference 1: same bf16/f32 numerics in plain JAX (tight check) ----
    a_bf = adj_i8.astype(jnp.float32).astype(jnp.bfloat16)
    ax = jnp.dot(a_bf, x_p, preferred_element_type=jnp.float32)
    agg1 = (deginv * ax).astype(jnp.bfloat16)
    h1_pre = (jnp.dot(agg1, wn_p, preferred_element_type=jnp.float32)
              + jnp.dot(eagg_p, we_p, preferred_element_type=jnp.float32) + b1_p)
    h1s_r = (dout_isqrt * jnp.maximum(h1_pre, 0.0)).astype(jnp.bfloat16)
    ah = jnp.dot(a_bf, h1s_r, preferred_element_type=jnp.float32)
    agg2 = (din_isqrt * ah).astype(jnp.bfloat16)
    h2_r = jnp.maximum(
        jnp.dot(agg2, w2_p, preferred_element_type=jnp.float32) + b2_p, 0.0)
    colsum_r = jnp.sum(h2_r * rmask, axis=0, keepdims=True)
    ref_bf16 = (jnp.dot(colsum_r, wp_p, preferred_element_type=jnp.float32)
                + bp_p)[:, :out_dim]
    assert jnp.allclose(out, ref_bf16, atol=5e-3, rtol=5e-3)

    # ---- reference 2: original f32 dense formulation (loose, bf16 rounding) ----
    h1_f = jnp.maximum((adj @ (x @ wn) + inc @ (e @ we)) / in_deg + b1, 0.0)
    a_sym_f = adj * (1.0 / jnp.sqrt(in_deg)) * (1.0 / jnp.sqrt(out_deg))
    h2_f = jnp.maximum((a_sym_f @ h1_f) @ w2 + b2, 0.0)
    ref_f32 = jnp.mean(h2_f, axis=0, keepdims=True) @ wp + bp
    assert jnp.allclose(out, ref_f32, atol=1e-1, rtol=1e-1)

    print("KERNEL_OK")
</pallas_src>

<mosaic_0001>
module attributes {stable_mosaic.version = 11 : i64} {
  func.func @layer2_kernel(%arg0: i32, %arg1: i32, %arg2: memref<256x256xi8, #tpu.memory_space<vmem>>, %arg3: memref<256x128xbf16, #tpu.memory_space<vmem>>, %arg4: memref<256x1xf32, #tpu.memory_space<vmem>>, %arg5: memref<128x128xbf16, #tpu.memory_space<vmem>>, %arg6: memref<1x128xf32, #tpu.memory_space<vmem>>, %arg7: memref<256x1xf32, #tpu.memory_space<vmem>>, %arg8: memref<128x128xf32, #tpu.memory_space<vmem>>, %arg9: memref<1x1x128xf32, #tpu.memory_space<vmem>>, %arg10: memref<256x128xf32, #tpu.memory_space<vmem>>) attributes {dimension_semantics = [#tpu.dimension_semantics<parallel>, #tpu.dimension_semantics<arbitrary>], iteration_bounds = array<i64: 2, 2>, scalar_prefetch = 0 : i64, scratch_operands = 1 : i64, tpu.core_type = #tpu.core_type<tc>, window_params = [{transform_indices = @transform_0, window_bounds = array<i64: 256, 256>}, {transform_indices = @transform_1, window_bounds = array<i64: 256, 128>}, {transform_indices = @transform_2, window_bounds = array<i64: 256, 1>}, {pipeline_mode = #tpu.pipeline_mode<synchronous>, transform_indices = @transform_3, window_bounds = array<i64: 128, 128>}, {pipeline_mode = #tpu.pipeline_mode<synchronous>, transform_indices = @transform_4, window_bounds = array<i64: 1, 128>}, {transform_indices = @transform_5, window_bounds = array<i64: 256, 1>}, {pipeline_mode = #tpu.pipeline_mode<synchronous>, transform_indices = @transform_6, window_bounds = array<i64: 128, 128>}, {transform_indices = @transform_7, window_bounds = array<i64: 1, 1, 128>}]} {
    %c0_i32 = arith.constant 0 : i32
    %0 = arith.cmpi eq, %arg1, %c0_i32 : i32
    %1 = arith.extui %0 : i1 to i32
    %c0_i32_0 = arith.constant 0 : i32
    %2 = arith.cmpi ne, %1, %c0_i32_0 : i32
    scf.if %2 {
      %cst_9 = arith.constant 0.000000e+00 : f32
      %14 = vector.broadcast %cst_9 : f32 to vector<256x128xf32>
      %c0_10 = arith.constant 0 : index
      %c0_11 = arith.constant 0 : index
      %15 = vector.load %arg10[%c0_10, %c0_11] : memref<256x128xf32, #tpu.memory_space<vmem>>, vector<256x128xf32>
      tpu.vector_store %arg10[%c0_10, %c0_11], %14 {strides = array<i32>} : memref<256x128xf32, #tpu.memory_space<vmem>>, vector<256x128xf32>,
    } else {
    }
    %c0 = arith.constant 0 : index
    %c0_1 = arith.constant 0 : index
    %3 = vector.load %arg2[%c0, %c0_1] : memref<256x256xi8, #tpu.memory_space<vmem>>, vector<256x256xi8>
    %4 = arith.sitofp %3 : vector<256x256xi8> to vector<256x256xf32>
    %5 = arith.truncf %4 : vector<256x256xf32> to vector<256x256xbf16>
    %c0_2 = arith.constant 0 : index
    %c0_3 = arith.constant 0 : index
    %6 = vector.load %arg10[%c0_2, %c0_3] : memref<256x128xf32, #tpu.memory_space<vmem>>, vector<256x128xf32>
    %c0_4 = arith.constant 0 : index
    %c0_5 = arith.constant 0 : index
    %7 = vector.load %arg3[%c0_4, %c0_5] : memref<256x128xbf16, #tpu.memory_space<vmem>>, vector<256x128xbf16>
    %cst = arith.constant dense<0.000000e+00> : vector<256x128xf32>
    %8 = tpu.matmul %5, %7, %cst {dimension_numbers = #tpu.dot_dimension_numbers<[1], [0], [0], [1], [0, 0, 1, 1], [], []>} : vector<256x256xbf16>, vector<256x128xbf16>, vector<256x128xf32> -> vector<256x128xf32>
    %9 = arith.addf %6, %8 : vector<256x128xf32>
    %c0_6 = arith.constant 0 : index
    %c0_7 = arith.constant 0 : index
    %10 = vector.load %arg10[%c0_6, %c0_7] : memref<256x128xf32, #tpu.memory_space<vmem>>, vector<256x128xf32>
    tpu.vector_store %arg10[%c0_6, %c0_7], %9 {strides = array<i32>} : memref<256x128xf32, #tpu.memory_space<vmem>>, vector<256x128xf32>,
    %c1_i32 = arith.constant 1 : i32
    %11 = arith.cmpi eq, %arg1, %c1_i32 : i32
    %12 = arith.extui %11 : i1 to i32
    %c0_i32_8 = arith.constant 0 : i32
    %13 = arith.cmpi ne, %12, %c0_i32_8 : i32
    scf.if %13 {
      %c0_9 = arith.constant 0 : index
      %c0_10 = arith.constant 0 : index
      %14 = vector.load %arg4[%c0_9, %c0_10] : memref<256x1xf32, #tpu.memory_space<vmem>>, vector<256x1xf32>
      %c0_11 = arith.constant 0 : index
      %c0_12 = arith.constant 0 : index
      %15 = vector.load %arg10[%c0_11, %c0_12] : memref<256x128xf32, #tpu.memory_space<vmem>>, vector<256x128xf32>
      %16 = vector.broadcast %14 : vector<256x1xf32> to vector<256x128xf32>
      %17 = arith.mulf %16, %15 : vector<256x128xf32>
      %18 = arith.truncf %17 : vector<256x128xf32> to vector<256x128xbf16>
      %c0_13 = arith.constant 0 : index
      %c0_14 = arith.constant 0 : index
      %19 = vector.load %arg5[%c0_13, %c0_14] : memref<128x128xbf16, #tpu.memory_space<vmem>>, vector<128x128xbf16>
      %cst_15 = arith.constant dense<0.000000e+00> : vector<256x128xf32>
      %20 = tpu.matmul %18, %19, %cst_15 {dimension_numbers = #tpu.dot_dimension_numbers<[1], [0], [0], [1], [0, 0, 1, 1], [], []>} : vector<256x128xbf16>, vector<128x128xbf16>, vector<256x128xf32> -> vector<256x128xf32>
      %c0_16 = arith.constant 0 : index
      %c0_17 = arith.constant 0 : index
      %21 = vector.load %arg6[%c0_16, %c0_17] : memref<1x128xf32, #tpu.memory_space<vmem>>, vector<1x128xf32>
      %22 = vector.broadcast %21 : vector<1x128xf32> to vector<256x128xf32>
      %23 = arith.addf %20, %22 : vector<256x128xf32>
      %cst_18 = arith.constant 0.000000e+00 : f32
      %24 = vector.broadcast %cst_18 : f32 to vector<256x128xf32>
      %25 = arith.maximumf %23, %24 : vector<256x128xf32>
      %c0_19 = arith.constant 0 : index
      %c0_20 = arith.constant 0 : index
      %26 = vector.load %arg7[%c0_19, %c0_20] : memref<256x1xf32, #tpu.memory_space<vmem>>, vector<256x1xf32>
      %27 = vector.broadcast %26 : vector<256x1xf32> to vector<256x128xf32>
      %28 = arith.mulf %25, %27 : vector<256x128xf32>
      %cst_21 = arith.constant dense<0.000000e+00> : vector<128xf32>
      %29 = vector.multi_reduction <add>, %28, %cst_21 [0] : vector<256x128xf32> to vector<128xf32>
      %30 = vector.shape_cast %29 : vector<128xf32> to vector<1x128xf32>
      %c0_22 = arith.constant 0 : index
      %c0_23 = arith.constant 0 : index
      %31 = vector.load %arg8[%c0_22, %c0_23] : memref<128x128xf32, #tpu.memory_space<vmem>>, vector<128x128xf32>
      %cst_24 = arith.constant dense<0.000000e+00> : vector<1x128xf32>
      %32 = tpu.matmul %30, %31, %cst_24 {dimension_numbers = #tpu.dot_dimension_numbers<[1], [0], [0], [1], [0, 0, 1, 1], [], []>} : vector<1x128xf32>, vector<128x128xf32>, vector<1x128xf32> -> vector<1x128xf32>
      %c0_25 = arith.constant 0 : index
      %c0_26 = arith.constant 0 : index
      %c0_27 = arith.constant 0 : index
      %33 = vector.load %arg9[%c0_25, %c0_26, %c0_27] : memref<1x1x128xf32, #tpu.memory_space<vmem>>, vector<1x1x128xf32>
      %34 = vector.shape_cast %33 : vector<1x1x128xf32> to vector<1x128xf32>
      %35 = vector.shape_cast %32 : vector<1x128xf32> to vector<1x1x128xf32>
      tpu.vector_store %arg9[%c0_25, %c0_26, %c0_27], %35 {strides = array<i32>} : memref<1x1x128xf32, #tpu.memory_space<vmem>>, vector<1x1x128xf32>,
    } else {
    }
    return
  }
  func.func @transform_0(%arg0: i32, %arg1: i32) -> (i32, i32) {
    %c0_i32 = arith.constant 0 : i32
    return %arg0, %arg1 : i32, i32
  }
  func.func @transform_1(%arg0: i32, %arg1: i32) -> (i32, i32) {
    %c0_i32 = arith.constant 0 : i32
    %c0_i32_0 = arith.constant 0 : i32
    return %arg1, %c0_i32 : i32, i32
  }
  func.func @transform_2(%arg0: i32, %arg1: i32) -> (i32, i32) {
    %c0_i32 = arith.constant 0 : i32
    %c0_i32_0 = arith.constant 0 : i32
    return %arg0, %c0_i32 : i32, i32
  }
  func.func @transform_3(%arg0: i32, %arg1: i32) -> (i32, i32) {
    %c0_i32 = arith.constant 0 : i32
    %c0_i32_0 = arith.constant 0 : i32
    %c0_i32_1 = arith.constant 0 : i32
    return %c0_i32, %c0_i32_0 : i32, i32
  }
  func.func @transform_4(%arg0: i32, %arg1: i32) -> (i32, i32) {
    %c0_i32 = arith.constant 0 : i32
    %c0_i32_0 = arith.constant 0 : i32
    %c0_i32_1 = arith.constant 0 : i32
    return %c0_i32, %c0_i32_0 : i32, i32
  }
  func.func @transform_5(%arg0: i32, %arg1: i32) -> (i32, i32) {
    %c0_i32 = arith.constant 0 : i32
    %c0_i32_0 = arith.constant 0 : i32
    return %arg0, %c0_i32 : i32, i32
  }
  func.func @transform_6(%arg0: i32, %arg1: i32) -> (i32, i32) {
    %c0_i32 = arith.constant 0 : i32
    %c0_i32_0 = arith.constant 0 : i32
    %c0_i32_1 = arith.constant 0 : i32
    return %c0_i32, %c0_i32_0 : i32, i32
  }
  func.func @transform_7(%arg0: i32, %arg1: i32) -> (i32, i32, i32) {
    %c0_i32 = arith.constant 0 : i32
    %c0_i32_0 = arith.constant 0 : i32
    %c0_i32_1 = arith.constant 0 : i32
    return %arg0, %c0_i32, %c0_i32_0 : i32, i32, i32
  }
}

module attributes {stable_mosaic.version = 11 : i64} {
  func.func @layer1_kernel(%arg0: i32, %arg1: i32, %arg2: memref<256x256xi8, #tpu.memory_space<vmem>>, %arg3: memref<256x128xbf16, #tpu.memory_space<vmem>>, %arg4: memref<256x1xf32, #tpu.memory_space<vmem>>, %arg5: memref<256x128xbf16, #tpu.memory_space<vmem>>, %arg6: memref<128x128xbf16, #tpu.memory_space<vmem>>, %arg7: memref<128x128xbf16, #tpu.memory_space<vmem>>, %arg8: memref<1x128xf32, #tpu.memory_space<vmem>>, %arg9: memref<256x1xf32, #tpu.memory_space<vmem>>, %arg10: memref<256x128xbf16, #tpu.memory_space<vmem>>, %arg11: memref<256x128xf32, #tpu.memory_space<vmem>>) attributes {dimension_semantics = [#tpu.dimension_semantics<parallel>, #tpu.dimension_semantics<arbitrary>], iteration_bounds = array<i64: 2, 2>, scalar_prefetch = 0 : i64, scratch_operands = 1 : i64, tpu.core_type = #tpu.core_type<tc>, window_params = [{transform_indices = @transform_0, window_bounds = array<i64: 256, 256>}, {transform_indices = @transform_1, window_bounds = array<i64: 256, 128>}, {transform_indices = @transform_2, window_bounds = array<i64: 256, 1>}, {transform_indices = @transform_3, window_bounds = array<i64: 256, 128>}, {pipeline_mode = #tpu.pipeline_mode<synchronous>, transform_indices = @transform_4, window_bounds = array<i64: 128, 128>}, {pipeline_mode = #tpu.pipeline_mode<synchronous>, transform_indices = @transform_5, window_bounds = array<i64: 128, 128>}, {pipeline_mode = #tpu.pipeline_mode<synchronous>, transform_indices = @transform_6, window_bounds = array<i64: 1, 128>}, {transform_indices = @transform_7, window_bounds = array<i64: 256, 1>}, {transform_indices = @transform_8, window_bounds = array<i64: 256, 128>}]} {
    %c0_i32 = arith.constant 0 : i32
    %0 = arith.cmpi eq, %arg1, %c0_i32 : i32
    %1 = arith.extui %0 : i1 to i32
    %c0_i32_0 = arith.constant 0 : i32
    %2 = arith.cmpi ne, %1, %c0_i32_0 : i32
    scf.if %2 {
      %cst_9 = arith.constant 0.000000e+00 : f32
      %14 = vector.broadcast %cst_9 : f32 to vector<256x128xf32>
      %c0_10 = arith.constant 0 : index
      %c0_11 = arith.constant 0 : index
      %15 = vector.load %arg11[%c0_10, %c0_11] : memref<256x128xf32, #tpu.memory_space<vmem>>, vector<256x128xf32>
      tpu.vector_store %arg11[%c0_10, %c0_11], %14 {strides = array<i32>} : memref<256x128xf32, #tpu.memory_space<vmem>>, vector<256x128xf32>,
    } else {
    }
    %c0 = arith.constant 0 : index
    %c0_1 = arith.constant 0 : index
    %3 = vector.load %arg2[%c0, %c0_1] : memref<256x256xi8, #tpu.memory_space<vmem>>, vector<256x256xi8>
    %4 = arith.sitofp %3 : vector<256x256xi8> to vector<256x256xf32>
    %5 = arith.truncf %4 : vector<256x256xf32> to vector<256x256xbf16>
    %c0_2 = arith.constant 0 : index
    %c0_3 = arith.constant 0 : index
    %6 = vector.load %arg11[%c0_2, %c0_3] : memref<256x128xf32, #tpu.memory_space<vmem>>, vector<256x128xf32>
    %c0_4 = arith.constant 0 : index
    %c0_5 = arith.constant 0 : index
    %7 = vector.load %arg3[%c0_4, %c0_5] : memref<256x128xbf16, #tpu.memory_space<vmem>>, vector<256x128xbf16>
    %cst = arith.constant dense<0.000000e+00> : vector<256x128xf32>
    %8 = tpu.matmul %5, %7, %cst {dimension_numbers = #tpu.dot_dimension_numbers<[1], [0], [0], [1], [0, 0, 1, 1], [], []>} : vector<256x256xbf16>, vector<256x128xbf16>, vector<256x128xf32> -> vector<256x128xf32>
    %9 = arith.addf %6, %8 : vector<256x128xf32>
    %c0_6 = arith.constant 0 : index
    %c0_7 = arith.constant 0 : index
    %10 = vector.load %arg11[%c0_6, %c0_7] : memref<256x128xf32, #tpu.memory_space<vmem>>, vector<256x128xf32>
    tpu.vector_store %arg11[%c0_6, %c0_7], %9 {strides = array<i32>} : memref<256x128xf32, #tpu.memory_space<vmem>>, vector<256x128xf32>,
    %c1_i32 = arith.constant 1 : i32
    %11 = arith.cmpi eq, %arg1, %c1_i32 : i32
    %12 = arith.extui %11 : i1 to i32
    %c0_i32_8 = arith.constant 0 : i32
    %13 = arith.cmpi ne, %12, %c0_i32_8 : i32
    scf.if %13 {
      %c0_9 = arith.constant 0 : index
      %c0_10 = arith.constant 0 : index
      %14 = vector.load %arg4[%c0_9, %c0_10] : memref<256x1xf32, #tpu.memory_space<vmem>>, vector<256x1xf32>
      %c0_11 = arith.constant 0 : index
      %c0_12 = arith.constant 0 : index
      %15 = vector.load %arg11[%c0_11, %c0_12] : memref<256x128xf32, #tpu.memory_space<vmem>>, vector<256x128xf32>
      %16 = vector.broadcast %14 : vector<256x1xf32> to vector<256x128xf32>
      %17 = arith.mulf %16, %15 : vector<256x128xf32>
      %18 = arith.truncf %17 : vector<256x128xf32> to vector<256x128xbf16>
      %c0_13 = arith.constant 0 : index
      %c0_14 = arith.constant 0 : index
      %19 = vector.load %arg6[%c0_13, %c0_14] : memref<128x128xbf16, #tpu.memory_space<vmem>>, vector<128x128xbf16>
      %cst_15 = arith.constant dense<0.000000e+00> : vector<256x128xf32>
      %20 = tpu.matmul %18, %19, %cst_15 {dimension_numbers = #tpu.dot_dimension_numbers<[1], [0], [0], [1], [0, 0, 1, 1], [], []>} : vector<256x128xbf16>, vector<128x128xbf16>, vector<256x128xf32> -> vector<256x128xf32>
      %c0_16 = arith.constant 0 : index
      %c0_17 = arith.constant 0 : index
      %21 = vector.load %arg5[%c0_16, %c0_17] : memref<256x128xbf16, #tpu.memory_space<vmem>>, vector<256x128xbf16>
      %c0_18 = arith.constant 0 : index
      %c0_19 = arith.constant 0 : index
      %22 = vector.load %arg7[%c0_18, %c0_19] : memref<128x128xbf16, #tpu.memory_space<vmem>>, vector<128x128xbf16>
      %cst_20 = arith.constant dense<0.000000e+00> : vector<256x128xf32>
      %23 = tpu.matmul %21, %22, %cst_20 {dimension_numbers = #tpu.dot_dimension_numbers<[1], [0], [0], [1], [0, 0, 1, 1], [], []>} : vector<256x128xbf16>, vector<128x128xbf16>, vector<256x128xf32> -> vector<256x128xf32>
      %24 = arith.addf %20, %23 : vector<256x128xf32>
      %c0_21 = arith.constant 0 : index
      %c0_22 = arith.constant 0 : index
      %25 = vector.load %arg8[%c0_21, %c0_22] : memref<1x128xf32, #tpu.memory_space<vmem>>, vector<1x128xf32>
      %26 = vector.broadcast %25 : vector<1x128xf32> to vector<256x128xf32>
      %27 = arith.addf %24, %26 : vector<256x128xf32>
      %c0_23 = arith.constant 0 : index
      %c0_24 = arith.constant 0 : index
      %28 = vector.load %arg9[%c0_23, %c0_24] : memref<256x1xf32, #tpu.memory_space<vmem>>, vector<256x1xf32>
      %cst_25 = arith.constant 0.000000e+00 : f32
      %29 = vector.broadcast %cst_25 : f32 to vector<256x128xf32>
      %30 = arith.maximumf %27, %29 : vector<256x128xf32>
      %31 = vector.broadcast %28 : vector<256x1xf32> to vector<256x128xf32>
      %32 = arith.mulf %31, %30 : vector<256x128xf32>
      %33 = arith.truncf %32 : vector<256x128xf32> to vector<256x128xbf16>
      %c0_26 = arith.constant 0 : index
      %c0_27 = arith.constant 0 : index
      %34 = vector.load %arg10[%c0_26, %c0_27] : memref<256x128xbf16, #tpu.memory_space<vmem>>, vector<256x128xbf16>
      tpu.vector_store %arg10[%c0_26, %c0_27], %33 {strides = array<i32>} : memref<256x128xbf16, #tpu.memory_space<vmem>>, vector<256x128xbf16>,
    } else {
    }
    return
  }
  func.func @transform_0(%arg0: i32, %arg1: i32) -> (i32, i32) {
    %c0_i32 = arith.constant 0 : i32
    return %arg0, %arg1 : i32, i32
  }
  func.func @transform_1(%arg0: i32, %arg1: i32) -> (i32, i32) {
    %c0_i32 = arith.constant 0 : i32
    %c0_i32_0 = arith.constant 0 : i32
    return %arg1, %c0_i32 : i32, i32
  }
  func.func @transform_2(%arg0: i32, %arg1: i32) -> (i32, i32) {
    %c0_i32 = arith.constant 0 : i32
    %c0_i32_0 = arith.constant 0 : i32
    return %arg0, %c0_i32 : i32, i32
  }
  func.func @transform_3(%arg0: i32, %arg1: i32) -> (i32, i32) {
    %c0_i32 = arith.constant 0 : i32
    %c0_i32_0 = arith.constant 0 : i32
    return %arg0, %c0_i32 : i32, i32
  }
  func.func @transform_4(%arg0: i32, %arg1: i32) -> (i32, i32) {
    %c0_i32 = arith.constant 0 : i32
    %c0_i32_0 = arith.constant 0 : i32
    %c0_i32_1 = arith.constant 0 : i32
    return %c0_i32, %c0_i32_0 : i32, i32
  }
  func.func @transform_5(%arg0: i32, %arg1: i32) -> (i32, i32) {
    %c0_i32 = arith.constant 0 : i32
    %c0_i32_0 = arith.constant 0 : i32
    %c0_i32_1 = arith.constant 0 : i32
    return %c0_i32, %c0_i32_0 : i32, i32
  }
  func.func @transform_6(%arg0: i32, %arg1: i32) -> (i32, i32) {
    %c0_i32 = arith.constant 0 : i32
    %c0_i32_0 = arith.constant 0 : i32
    %c0_i32_1 = arith.constant 0 : i32
    return %c0_i32, %c0_i32_0 : i32, i32
  }
  func.func @transform_7(%arg0: i32, %arg1: i32) -> (i32, i32) {
    %c0_i32 = arith.constant 0 : i32
    %c0_i32_0 = arith.constant 0 : i32
    return %arg0, %c0_i32 : i32, i32
  }
  func.func @transform_8(%arg0: i32, %arg1: i32) -> (i32, i32) {
    %c0_i32 = arith.constant 0 : i32
    %c0_i32_0 = arith.constant 0 : i32
    return %arg0, %c0_i32 : i32, i32
  }
}

</mosaic_0001>

<bundles_post_ra>
// kernel: gnn_forward.3
= control target key start
LH: loop header
LB: loop body
LE: loop exit
PB: predicated region body
PF: predicated region fallthrough
CT: control target
= control target key end

     0   :  { %s2713_s0 = inlined_call_operand.vmem [shape: s8[512,512], index: 0, kind: input, shape index: {}]   ;;  %s2714_s1 = inlined_call_operand.vmem [shape: bf16[512,128], index: 1, kind: input, shape index: {}]   ;;  %s2715_s2 = inlined_call_operand.vmem [shape: f32[512,1], index: 2, kind: input, shape index: {}]   ;;  %s2716_s3 = inlined_call_operand.vmem [shape: bf16[128,128], index: 3, kind: input, shape index: {}]   ;;  %s2717_s4 = inlined_call_operand.vmem [shape: f32[1,128], index: 4, kind: input, shape index: {}]   ;;  %s2718_s5 = inlined_call_operand.vmem [shape: f32[512,1], index: 5, kind: input, shape index: {}]   ;;  %s2719_s6 = inlined_call_operand.vmem [shape: f32[128,128], index: 6, kind: input, shape index: {}]   ;;  %s2720_s7 = inlined_call_operand.vmem [shape: f32[2,1,128], index: 7, kind: output, shape index: {}]  }
   0x1   :  { %2721 = sst [smem:[#allocation4_spill]] %s2713_s0 }
   0x2   :  { %s2372_s24 = smov 0   ;;  %s2374_s25 = smov 0  }
   0x3   :  { %s2376_s26 = smov 0   ;;  %s2378_s27 = smov 0  }
   0x4   :  { %s2380_s28 = smov 0   ;;  %s2382_s29 = smov 0  }
   0x5   :  { %s2384_s30 = smov 0  }
   0x6 LB: > { %s26_s8 = sadd.s32 1, %s2318_s28  ;;  %s29_s9 = sadd.s32 1, %s2322_s29  ;;  %s2326_s30 = sphi %s2384_s30, %s17_s30   ;;  %s2322_s29 = sphi %s2382_s29, %s2728_s29   ;;  %s2318_s28 = sphi %s2380_s28, %s2727_s28   ;;  %s2314_s27 = sphi %s2378_s27, %s2726_s27   ;;  %s2310_s26 = sphi %s2376_s26, %s2725_s26   ;;  %s2306_s25 = sphi %s2374_s25, %s2724_s25   ;;  %s2302_s24 = sphi %s2372_s24, %s2723_s24  }
   0x7   : > { %p27_p0 = scmp.ge.s32.totalorder %s26_s8, 2  ;;  %p45_p1 = scmp.ne.s32.totalorder %s2306_s25, %s2302_s24 }
   0x8   : > { %p46_p2 = scmp.eq.s32.totalorder %s2326_s30, 0  ;;  %s38_s13 = sadd.s32 1, %s2306_s25 }
   0x9   : > { %s2730_s8 = smov (%p27_p0, %s26_s8), 0  ;;  %s2732_s9 = smov (!%p27_p0, %s29_s9), %s2322_s29 }
   0xa   : > { %p47_p3 = por %p46_p2, %p45_p1  ;;  %p31_p4 = scmp.ge.s32.totalorder %s2732_s9, 2 }
   0xb   : > { %s34_s10 = ssub.s32 %s2318_s28, %s2730_s8  ;;  %p1874_p6 = scmp.ge.s32.totalorder %s2326_s30, 4 }
   0xc   : > { %s2734_s9 = smov (%p31_p4, %s2732_s9), 0 }
   0xd   : > { %s33_s11 = ssub.s32 %s2322_s29, %s2734_s9  ;;  %247 = sbr.rel (%p1874_p6) target bundleno = 36 (0x24), region = 28 }
   0xe   : > { %s35_s12 = sor.u32 %s34_s10, %s33_s11 }
   0xf   : > { %p36_p5 = scmp.eq.s32.totalorder %s35_s12, 0 }
  0x11   : > { %s2423_s14 = scalar_select %p36_p5, %s2306_s25, %s38_s13  }
  0x12   : > { %250 = sbr.rel (!%p47_p3) target bundleno = 36 (0x24), region = 32  ;;  %s252_s15 = sand.u32 (%p47_p3), 1, %s2306_s25  }
  0x13   : > { %s1877_s16 = sshll.u32 (%p47_p3), %s2318_s28, 1  ;;  %s1875_s17 = sshll.u32 (%p47_p3), %s252_s15, 7 }
  0x14   : > { %s1917_s18 = sshll.u32 (%p47_p3), %s2322_s29, 5  ;;  %s2722_s0 = sld [smem:[#allocation4_spill]] (%p47_p3) }
  0x15   : > { %s258_s19 = sadd.s32 (%p47_p3), %s1917_s18, %s1877_s16  ;;  %s254_s10 = scalar_lea.vmem (%p47_p3), [#allocation3], %s1875_s17 }
  0x16   : > { %s1879_s20 = sshll.u32 (%p47_p3), %s258_s19, 3 }
  0x1a   : > { %s2432_s23 = scalar_lea.vmem %s2722_s0, %s1879_s20 }
  0x1b   : > { %v273_v0 = vld [vmem:[%s2432_s23] sm:$0xff]  ;;  %v275_v1 = vld [vmem:[%s2432_s23 + $0x8] sm:$0xff] }
  0x1c   : > { %v277_v2 = vld [vmem:[%s2432_s23 + $0x20] sm:$0xff]  ;;  %274 = vst [vmem:[%s254_s10] sm:$0xff] %v273_v0  ;;  %276 = vst [vmem:[%s254_s10 + $0x8] sm:$0xff] %v275_v1  ;;  %v279_v3 = vld [vmem:[%s2432_s23 + $0x28] sm:$0xff] }
  0x1d   : > { %278 = vst [vmem:[%s254_s10 + $0x10] sm:$0xff] %v277_v2  ;;  %v281_v4 = vld [vmem:[%s2432_s23 + $0x40] sm:$0xff]  ;;  %v283_v5 = vld [vmem:[%s2432_s23 + $0x48] sm:$0xff]  ;;  %280 = vst [vmem:[%s254_s10 + $0x18] sm:$0xff] %v279_v3 }
  0x1e   : > { %282 = vst [vmem:[%s254_s10 + $0x20] sm:$0xff] %v281_v4  ;;  %284 = vst [vmem:[%s254_s10 + $0x28] sm:$0xff] %v283_v5  ;;  %v285_v6 = vld [vmem:[%s2432_s23 + $0x60] sm:$0xff]  ;;  %v287_v7 = vld [vmem:[%s2432_s23 + $0x68] sm:$0xff] }
  0x1f   : > { %v289_v8 = vld [vmem:[%s2432_s23 + $0x80] sm:$0xff]  ;;  %286 = vst [vmem:[%s254_s10 + $0x30] sm:$0xff] %v285_v6  ;;  %288 = vst [vmem:[%s254_s10 + $0x38] sm:$0xff] %v287_v7  ;;  %v291_v9 = vld [vmem:[%s2432_s23 + $0x88] sm:$0xff] }
  0x20   : > { %290 = vst [vmem:[%s254_s10 + $0x40] sm:$0xff] %v289_v8  ;;  %v293_v10 = vld [vmem:[%s2432_s23 + $0xa0] sm:$0xff]  ;;  %v295_v11 = vld [vmem:[%s2432_s23 + $0xa8] sm:$0xff]  ;;  %292 = vst [vmem:[%s254_s10 + $0x48] sm:$0xff] %v291_v9 }
  0x21   : > { %294 = vst [vmem:[%s254_s10 + $0x50] sm:$0xff] %v293_v10  ;;  %296 = vst [vmem:[%s254_s10 + $0x58] sm:$0xff] %v295_v11  ;;  %v297_v12 = vld [vmem:[%s2432_s23 + $0xc0] sm:$0xff]  ;;  %v299_v13 = vld [vmem:[%s2432_s23 + $0xc8] sm:$0xff] }
  0x22   : > { %v301_v14 = vld [vmem:[%s2432_s23 + $0xe0] sm:$0xff]  ;;  %298 = vst [vmem:[%s254_s10 + $0x60] sm:$0xff] %v297_v12  ;;  %300 = vst [vmem:[%s254_s10 + $0x68] sm:$0xff] %v299_v13  ;;  %v303_v15 = vld [vmem:[%s2432_s23 + $0xe8] sm:$0xff] }
  0x23   : > { %302 = vst [vmem:[%s254_s10 + $0x70] sm:$0xff] %v301_v14  ;;  %304 = vst [vmem:[%s254_s10 + $0x78] sm:$0xff] %v303_v15 }
  0x24 PF: > { %p1880_p7 = scmp.ge.s32.totalorder %s2326_s30, 1  ;;  %p336_p8 = scmp.lt.s32.totalorder %s2326_s30, 5 }
  0x26   : > { %p337_p9 = pnand %p1880_p7, %p336_p8 }
  0x27   : > { %s343_s11 = sand.u32 (!%p337_p9), 1, %s2302_s24   ;;  %s1882_s12 = sshll.u32 (!%p337_p9), %s2310_s26, 5 }
  0x28   : > { %340 = sbr.rel (%p337_p9) target bundleno = 973 (0x3cd), region = 67  ;;  %s1881_s13 = sshll.u32 (!%p337_p9), %s343_s11, 7 }
  0x29   : > { %p390_p10 = scmp.lt.s32.totalorder (!%p337_p9), %s1882_s12, 63  ;;  %s1884_s15 = sshll.u32 (!%p337_p9), %s2314_s27, 5 }
  0x2a   : > { %p396_p11 = scmp.lt.s32.totalorder (!%p337_p9), %s1884_s15, 63  ;;  %p407_p12 = scmp.lt.s32.totalorder (!%p337_p9), %s2314_s27, 1 }
  0x2b   : > { %s2478_s17 = scalar_lea.vmem (!%p337_p9), [#allocation3], %s1881_s13  ;;  %p1888_p13 = scmp.ne.s32.totalorder (!%p337_p9), %s2310_s26, 0 }
  0x2d   : > { %s2736_s12 = smov (!%p390_p10, %s1882_s12), 63  ;;  %s2738_s15 = smov (!%p396_p11, %s1884_s15), 63 }
  0x2e   : > { %s1883_s16 = sshll.u32 %s2736_s12, 2  ;;  %s2740_s27 = smov (!%p407_p12, %s2314_s27), 1 }
  0x2f   : > { %s2459_s19 = scalar_lea.vmem %s2714_s1, %s1883_s16  ;;  %s1885_s20 = sshll.u32 %s2738_s15, 3 }
  0x30   : > { %s2467_s22 = scalar_lea.vmem %s2715_s2, %s1885_s20  ;;  %s2472_s11 = scalar_lea.vmem %s2718_s5, %s1885_s20 }
  0x31   : > { %s409_s16 = scalar_lea.vmem %s2720_s7, %s2740_s27  ;;  %414 = sbr.rel (%p1888_p13) target bundleno = 71 (0x47), region = 75 }
  0x36   : > { %v2328_v16 = vmov 0.0  }
  0x37   : > { %415 = vst [vmem:[#allocation2 + $0xb0] sm:$0xff] %v2328_v16  ;;  %416 = vst [vmem:[#allocation2] sm:$0xff] %v2328_v16 }
  0x38   : > { %417 = vst [vmem:[#allocation2 + $0xd8] sm:$0xff] %v2328_v16  ;;  %418 = vst [vmem:[#allocation2 + $0x18] sm:$0xff] %v2328_v16 }
  0x39   : > { %419 = vst [vmem:[#allocation2 + $0x50] sm:$0xff] %v2328_v16  ;;  %420 = vst [vmem:[#allocation2 + $0x68] sm:$0xff] %v2328_v16 }
  0x3a   : > { %421 = vst [vmem:[#allocation2 + $0x30] sm:$0xff] %v2328_v16  ;;  %422 = vst [vmem:[#allocation2 + $0x48] sm:$0xff] %v2328_v16 }
  0x3b   : > { %423 = vst [vmem:[#allocation2 + $0x80] sm:$0xff] %v2328_v16  ;;  %424 = vst [vmem:[#allocation2 + $0x88] sm:$0xff] %v2328_v16 }
  0x3c   : > { %425 = vst [vmem:[#allocation2 + $0xe8] sm:$0xff] %v2328_v16  ;;  %426 = vst [vmem:[#allocation2 + $0xb8] sm:$0xff] %v2328_v16 }
  0x3d   : > { %427 = vst [vmem:[#allocation2 + $0x60] sm:$0xff] %v2328_v16  ;;  %428 = vst [vmem:[#allocation2 + $0xf0] sm:$0xff] %v2328_v16 }
  0x3e   : > { %429 = vst [vmem:[#allocation2 + $0x8] sm:$0xff] %v2328_v16  ;;  %430 = vst [vmem:[#allocation2 + $0x78] sm:$0xff] %v2328_v16 }
  0x3f   : > { %431 = vst [vmem:[#allocation2 + $0x38] sm:$0xff] %v2328_v16  ;;  %432 = vst [vmem:[#allocation2 + $0x58] sm:$0xff] %v2328_v16 }
  0x40   : > { %433 = vst [vmem:[#allocation2 + $0x40] sm:$0xff] %v2328_v16  ;;  %434 = vst [vmem:[#allocation2 + $0xc8] sm:$0xff] %v2328_v16 }
  0x41   : > { %435 = vst [vmem:[#allocation2 + $0xe0] sm:$0xff] %v2328_v16  ;;  %436 = vst [vmem:[#allocation2 + $0x90] sm:$0xff] %v2328_v16 }
  0x42   : > { %437 = vst [vmem:[#allocation2 + $0x70] sm:$0xff] %v2328_v16  ;;  %438 = vst [vmem:[#allocation2 + $0xc0] sm:$0xff] %v2328_v16 }
  0x43   : > { %439 = vst [vmem:[#allocation2 + $0xa8] sm:$0xff] %v2328_v16  ;;  %440 = vst [vmem:[#allocation2 + $0xd0] sm:$0xff] %v2328_v16 }
  0x44   : > { %441 = vst [vmem:[#allocation2 + $0x10] sm:$0xff] %v2328_v16  ;;  %442 = vst [vmem:[#allocation2 + $0x28] sm:$0xff] %v2328_v16 }
  0x45   : > { %443 = vst [vmem:[#allocation2 + $0xa0] sm:$0xff] %v2328_v16  ;;  %444 = vst [vmem:[#allocation2 + $0xf8] sm:$0xff] %v2328_v16 }
  0x46   : > { %445 = vst [vmem:[#allocation2 + $0x20] sm:$0xff] %v2328_v16  ;;  %446 = vst [vmem:[#allocation2 + $0x98] sm:$0xff] %v2328_v16 }
  0x47 PF: > { %v2246_v17 = vld [vmem:[%s2459_s19 + $0x78] sm:$0xff]   ;;  %v2248_v19 = vld [vmem:[%s2459_s19 + $0x70] sm:$0xff]   ;;  %v2250_v21 = vld [vmem:[%s2459_s19 + $0x68] sm:$0xff]   ;;  %p1905_p0 = scmp.ne.s32.totalorder %s2310_s26, 1 }
  0x48   : > { %v2247_v18 = vld [vmem:[%s2459_s19 + $0x38] sm:$0xff]   ;;  %1918 = vmatprep.subr.bf16.mxu0 %v2246_v17  ;;  %2154 = vmatprep.subr.bf16.mxu1 %v2246_v17  ;;  %v2249_v20 = vld [vmem:[%s2459_s19 + $0x30] sm:$0xff]   ;;  %v2251_v22 = vld [vmem:[%s2459_s19 + $0x28] sm:$0xff]  }
  0x49   : > { %1919 = vmatpush3.bf16.msra.mxu0 %v2247_v18  ;;  %2162 = vmatpush3.bf16.msra.mxu1 %v2247_v18  ;;  %v2252_v23 = vld [vmem:[%s2459_s19 + $0x60] sm:$0xff]   ;;  %v2254_v25 = vld [vmem:[%s2459_s19 + $0x58] sm:$0xff]   ;;  %v2256_v27 = vld [vmem:[%s2459_s19 + $0x50] sm:$0xff]  }
  0x4a   : > { %1920 = vmatprep.subr.bf16.mxu0 %v2248_v19  ;;  %2155 = vmatprep.subr.bf16.mxu1 %v2248_v19  ;;  %v2253_v24 = vld [vmem:[%s2459_s19 + $0x20] sm:$0xff]   ;;  %v2255_v26 = vld [vmem:[%s2459_s19 + $0x18] sm:$0xff]   ;;  %v448_v28 = vld [vmem:[%s2478_s17 + $0x8] sm:$0xff] }
  0x4b   : > { %v456_v29 = vld [vmem:[%s2478_s17 + $0x48] sm:$0xff]  ;;  %v464_v30 = vunpack.c.l.s8.bf16 %v448_v28  ;;  %v2257_v32 = vld [vmem:[%s2459_s19 + $0x10] sm:$0xff]   ;;  %v2260_v35 = vld [vmem:[%s2459_s19 + $0x40] sm:$0xff]   ;;  %v466_v41 = vunpack.c.h.s8.bf16 %v448_v28 }
  0x4c   : > { %v480_v31 = vunpack.c.l.s8.bf16 %v456_v29  ;;  %v2258_v33 = vld [vmem:[%s2459_s19 + $0x48] sm:$0xff]   ;;  %v2261_v36 = vld [vmem:[%s2459_s19] sm:$0xff]   ;;  %v482_v42 = vunpack.c.h.s8.bf16 %v456_v29  ;;  %v450_v43 = vld [vmem:[%s2478_s17 + $0x18] sm:$0xff] }
  0x4d   : > { %1921 = vmatpush3.bf16.msra.mxu0 %v2249_v20  ;;  %2163 = vmatpush3.bf16.msra.mxu1 %v2249_v20  ;;  %v2259_v34 = vld [vmem:[%s2459_s19 + $0x8] sm:$0xff]   ;;  %v447_v37 = vld [vmem:[%s2478_s17] sm:$0xff]  ;;  %v458_v44 = vld [vmem:[%s2478_s17 + $0x58] sm:$0xff]  ;;  %v468_v47 = vunpack.c.l.s8.bf16 %v450_v43  ;;  %v470_v53 = vunpack.c.h.s8.bf16 %v450_v43 }
  0x4e   : > { %1922 = vmatprep.subr.bf16.mxu0 %v2250_v21  ;;  %2156 = vmatprep.subr.bf16.mxu1 %v2250_v21  ;;  %v455_v38 = vld [vmem:[%s2478_s17 + $0x40] sm:$0xff]  ;;  %v463_v39 = vunpack.c.l.s8.bf16 %v447_v37  ;;  %v465_v45 = vunpack.c.h.s8.bf16 %v447_v37  ;;  %v484_v48 = vunpack.c.l.s8.bf16 %v458_v44  ;;  %v449_v49 = vld [vmem:[%s2478_s17 + $0x10] sm:$0xff]  ;;  %v486_v54 = vunpack.c.h.s8.bf16 %v458_v44  ;;  %v452_v55 = vld [vmem:[%s2478_s17 + $0x28] sm:$0xff] }
  0x4f   : > { %687 = vmatprep.mubr.bf16.mxu0 %v464_v30  ;;  %751 = vmatprep.mubr.bf16.mxu1 %v480_v31  ;;  %v479_v40 = vunpack.c.l.s8.bf16 %v455_v38  ;;  %v481_v46 = vunpack.c.h.s8.bf16 %v455_v38  ;;  %v457_v50 = vld [vmem:[%s2478_s17 + $0x50] sm:$0xff]  ;;  %v467_v51 = vunpack.c.l.s8.bf16 %v449_v49  ;;  %v460_v56 = vld [vmem:[%s2478_s17 + $0x68] sm:$0xff]  ;;  %v469_v57 = vunpack.c.h.s8.bf16 %v449_v49  ;;  %v451_v61 = vld [vmem:[%s2478_s17 + $0x20] sm:$0xff] }
  0x50   : > { %v483_v52 = vunpack.c.l.s8.bf16 %v457_v50  ;;  %v485_v58 = vunpack.c.h.s8.bf16 %v457_v50  ;;  %v472_v59 = vunpack.c.l.s8.bf16 %v452_v55  ;;  %v488_v60 = vunpack.c.l.s8.bf16 %v460_v56  ;;  %v459_v62 = vld [vmem:[%s2478_s17 + $0x60] sm:$0xff]  ;;  %v454_v3 = vld [vmem:[%s2478_s17 + $0x38] sm:$0xff]  ;;  %v453_v9 = vld [vmem:[%s2478_s17 + $0x30] sm:$0xff] }
  0x51   : > { %1923 = vmatpush3.bf16.msra.mxu0 %v2251_v22  ;;  %2164 = vmatpush3.bf16.msra.mxu1 %v2251_v22  ;;  %v471_v63 = vunpack.c.l.s8.bf16 %v451_v61  ;;  %v487_v0 = vunpack.c.l.s8.bf16 %v459_v62  ;;  %v474_v1 = vunpack.c.h.s8.bf16 %v452_v55  ;;  %v490_v2 = vunpack.c.h.s8.bf16 %v460_v56  ;;  %v462_v4 = vld [vmem:[%s2478_s17 + $0x78] sm:$0xff]  ;;  %v461_v10 = vld [vmem:[%s2478_s17 + $0x70] sm:$0xff]  ;;  %v496_v29 = vld [vmem:[#allocation2] sm:$0xff] }
  0x52   : > { %1924 = vmatprep.subr.bf16.mxu0 %v2252_v23  ;;  %2157 = vmatprep.subr.bf16.mxu1 %v2252_v23  ;;  %v473_v5 = vunpack.c.h.s8.bf16 %v451_v61  ;;  %v489_v6 = vunpack.c.h.s8.bf16 %v459_v62  ;;  %v476_v7 = vunpack.c.l.s8.bf16 %v454_v3  ;;  %v492_v8 = vunpack.c.l.s8.bf16 %v462_v4  ;;  %v495_v19 = vld [vmem:[#allocation2 + $0xb0] sm:$0xff]  ;;  %v511_v21 = vld [vmem:[#allocation2 + $0x38] sm:$0xff]  ;;  %v515_v61 = vld [vmem:[#allocation2 + $0xe0] sm:$0xff] }
  0x53   : > { %v475_v11 = vunpack.c.l.s8.bf16 %v453_v9  ;;  %v491_v12 = vunpack.c.l.s8.bf16 %v461_v10  ;;  %v478_v13 = vunpack.c.h.s8.bf16 %v454_v3  ;;  %v494_v14 = vunpack.c.h.s8.bf16 %v462_v4  ;;  %v512_v31 = vld [vmem:[#allocation2 + $0x58] sm:$0xff] }
  0x54   : > { %v477_v15 = vunpack.c.h.s8.bf16 %v453_v9  ;;  %v493_v16 = vunpack.c.h.s8.bf16 %v461_v10  ;;  %v498_v49 = vld [vmem:[#allocation2 + $0x18] sm:$0xff] }
  0x55   : > { %1925 = vmatpush3.bf16.msra.mxu0 %v2253_v24  ;;  %2165 = vmatpush3.bf16.msra.mxu1 %v2253_v24 }
  0x56   : > { %1926 = vmatprep.subr.bf16.mxu0 %v2254_v25  ;;  %2158 = vmatprep.subr.bf16.mxu1 %v2254_v25 }
  0x59   : > { %1927 = vmatpush3.bf16.msra.mxu0 %v2255_v26  ;;  %2166 = vmatpush3.bf16.msra.mxu1 %v2255_v26 }
  0x5a   : > { %1928 = vmatprep.subr.bf16.mxu0 %v2256_v27  ;;  %2159 = vmatprep.subr.bf16.mxu1 %v2256_v27 }
  0x5d   : > { %1929 = vmatpush3.bf16.msra.mxu0 %v2257_v32  ;;  %2167 = vmatpush3.bf16.msra.mxu1 %v2257_v32 }
  0x5e   : > { %1930 = vmatprep.subr.bf16.mxu0 %v2258_v33  ;;  %2160 = vmatprep.subr.bf16.mxu1 %v2258_v33 }
  0x61   : > { %1931 = vmatpush3.bf16.msra.mxu0 %v2259_v34  ;;  %2168 = vmatpush3.bf16.msra.mxu1 %v2259_v34 }
  0x62   : > { %1932 = vmatprep.subr.bf16.mxu0 %v2260_v35  ;;  %2161 = vmatprep.subr.bf16.mxu1 %v2260_v35 }
  0x65   : > { %1933 = vmatpush3.bf16.msra.mxu0 %v2261_v36  ;;  %2169 = vmatpush3.bf16.msra.mxu1 %v2261_v36 }
  0x68   : > { %688 = vmatmul.mubr.bf16.vlgmr.msra.gmra.mxu0 %v463_v39  ;;  %752 = vmatmul.mubr.bf16.vlgmr.msra.gmra.mxu1 %v479_v40  ;;  %v497_v39 = vld [vmem:[#allocation2 + $0xd8] sm:$0xff] }
  0x69   : > { %695 = vmatprep.mubr.bf16.mxu0 %v466_v41  ;;  %759 = vmatprep.mubr.bf16.mxu1 %v482_v42  ;;  %v513_v41 = vld [vmem:[#allocation2 + $0x40] sm:$0xff] }
  0x70   : > { %696 = vmatmul.mubr.bf16.gmra.mxu0 %v465_v45  ;;  %760 = vmatmul.mubr.bf16.gmra.mxu1 %v481_v46 }
  0x71   : > { %703 = vmatprep.mubr.bf16.mxu0 %v468_v47  ;;  %767 = vmatprep.mubr.bf16.mxu1 %v484_v48 }
  0x78   : > { %704 = vmatmul.mubr.bf16.gmra.mxu0 %v467_v51  ;;  %768 = vmatmul.mubr.bf16.gmra.mxu1 %v483_v52  ;;  %v514_v51 = vld [vmem:[#allocation2 + $0xc8] sm:$0xff] }
  0x79   : > { %711 = vmatprep.mubr.bf16.mxu0 %v470_v53  ;;  %775 = vmatprep.mubr.bf16.mxu1 %v486_v54 }
  0x80   : > { %712 = vmatmul.mubr.bf16.gmra.mxu0 %v469_v57  ;;  %776 = vmatmul.mubr.bf16.gmra.mxu1 %v485_v58 }
  0x81   : > { %719 = vmatprep.mubr.bf16.mxu0 %v472_v59  ;;  %783 = vmatprep.mubr.bf16.mxu1 %v488_v60  ;;  %v499_v59 = vld [vmem:[#allocation2 + $0x50] sm:$0xff] }
  0x88   : > { %720 = vmatmul.mubr.bf16.gmra.mxu0 %v471_v63  ;;  %784 = vmatmul.mubr.bf16.gmra.mxu1 %v487_v0 }
  0x89   : > { %727 = vmatprep.mubr.bf16.mxu0 %v474_v1  ;;  %791 = vmatprep.mubr.bf16.mxu1 %v490_v2 }
  0x90   : > { %728 = vmatmul.mubr.bf16.gmra.mxu0 %v473_v5  ;;  %792 = vmatmul.mubr.bf16.gmra.mxu1 %v489_v6  ;;  %v500_v5 = vld [vmem:[#allocation2 + $0x68] sm:$0xff] }
  0x91   : > { %735 = vmatprep.mubr.bf16.mxu0 %v476_v7  ;;  %799 = vmatprep.mubr.bf16.mxu1 %v492_v8  ;;  %v516_v7 = vld [vmem:[#allocation2 + $0x90] sm:$0xff] }
  0x98   : > { %736 = vmatmul.mubr.bf16.gmra.mxu0 %v475_v11  ;;  %800 = vmatmul.mubr.bf16.gmra.mxu1 %v491_v12 }
  0x99   : > { %743 = vmatprep.mubr.bf16.mxu0 %v478_v13  ;;  %807 = vmatprep.mubr.bf16.mxu1 %v494_v14 }
  0xa0   : > { %744 = vmatmul.mubr.bf16.gmra.mxu0 %v477_v15  ;;  %808 = vmatmul.mubr.bf16.gmra.mxu1 %v493_v16  ;;  %v501_v15 = vld [vmem:[#allocation2 + $0x30] sm:$0xff] }
 0x128   : > { %v1934_v17 = vpop.f32.mrf.mxu0  ;;  %v1982_v18 = vpop.f32.mrf.mxu1 }
 0x12a   : > { %v1935_v20 = vpop.f32.mrf.mxu0  ;;  %v1983_v22 = vpop.f32.mrf.mxu1 }
 0x12b   : > { %v1936_v23 = vadd.f32 %v1935_v20, %v1934_v17  ;;  %v1984_v24 = vadd.f32 %v1983_v22, %v1982_v18  ;;  %v517_v17 = vld [vmem:[#allocation2 + $0x70] sm:$0xff] }
 0x12c   : > { %v1937_v25 = vpop.f32.mrf.mxu0  ;;  %v1985_v26 = vpop.f32.mrf.mxu1 }
 0x12d   : > { %v816_v27 = vadd.f32 %v1936_v23, %v495_v19  ;;  %v832_v28 = vadd.f32 %v1984_v24, %v511_v21 }
 0x12e   : > { %v1938_v30 = vpop.f32.mrf.mxu0  ;;  %v1986_v32 = vpop.f32.mrf.mxu1 }
 0x12f   : > { %848 = vst [vmem:[#allocation2 + $0xb0] sm:$0xff] %v816_v27  ;;  %864 = vst [vmem:[#allocation2 + $0x38] sm:$0xff] %v832_v28  ;;  %v1939_v33 = vadd.f32 %v1938_v30, %v1937_v25  ;;  %v1987_v34 = vadd.f32 %v1986_v32, %v1985_v26  ;;  %v502_v25 = vld [vmem:[#allocation2 + $0x48] sm:$0xff]  ;;  %v518_v27 = vld [vmem:[#allocation2 + $0xc0] sm:$0xff] }
 0x130   : > { %v1940_v35 = vpop.f32.mrf.mxu0  ;;  %v1988_v36 = vpop.f32.mrf.mxu1 }
 0x131   : > { %v817_v37 = vadd.f32 %v1939_v33, %v496_v29  ;;  %v833_v38 = vadd.f32 %v1987_v34, %v512_v31 }
 0x132   : > { %v1941_v40 = vpop.f32.mrf.mxu0  ;;  %v1989_v42 = vpop.f32.mrf.mxu1 }
 0x133   : > { %849 = vst [vmem:[#allocation2] sm:$0xff] %v817_v37  ;;  %865 = vst [vmem:[#allocation2 + $0x58] sm:$0xff] %v833_v38  ;;  %v1942_v43 = vadd.f32 %v1941_v40, %v1940_v35  ;;  %v1990_v44 = vadd.f32 %v1989_v42, %v1988_v36  ;;  %v503_v35 = vld [vmem:[#allocation2 + $0x80] sm:$0xff]  ;;  %v519_v37 = vld [vmem:[#allocation2 + $0xa8] sm:$0xff] }
 0x134   : > { %v1943_v45 = vpop.f32.mrf.mxu0  ;;  %v1991_v46 = vpop.f32.mrf.mxu1 }
 0x135   : > { %v818_v47 = vadd.f32 %v1942_v43, %v497_v39  ;;  %v834_v48 = vadd.f32 %v1990_v44, %v513_v41 }
 0x136   : > { %v1944_v50 = vpop.f32.mrf.mxu0  ;;  %v1992_v52 = vpop.f32.mrf.mxu1 }
 0x137   : > { %850 = vst [vmem:[#allocation2 + $0xd8] sm:$0xff] %v818_v47  ;;  %866 = vst [vmem:[#allocation2 + $0x40] sm:$0xff] %v834_v48  ;;  %v1945_v53 = vadd.f32 %v1944_v50, %v1943_v45  ;;  %v1993_v54 = vadd.f32 %v1992_v52, %v1991_v46  ;;  %v504_v45 = vld [vmem:[#allocation2 + $0x88] sm:$0xff]  ;;  %v520_v47 = vld [vmem:[#allocation2 + $0xd0] sm:$0xff] }
 0x138   : > { %v1946_v55 = vpop.f32.mrf.mxu0  ;;  %v1994_v56 = vpop.f32.mrf.mxu1 }
 0x139   : > { %v819_v57 = vadd.f32 %v1945_v53, %v498_v49  ;;  %v835_v58 = vadd.f32 %v1993_v54, %v514_v51 }
 0x13a   : > { %v1947_v60 = vpop.f32.mrf.mxu0  ;;  %v1995_v62 = vpop.f32.mrf.mxu1 }
 0x13b   : > { %851 = vst [vmem:[#allocation2 + $0x18] sm:$0xff] %v819_v57  ;;  %867 = vst [vmem:[#allocation2 + $0xc8] sm:$0xff] %v835_v58  ;;  %v1948_v63 = vadd.f32 %v1947_v60, %v1946_v55  ;;  %v1996_v0 = vadd.f32 %v1995_v62, %v1994_v56  ;;  %v505_v55 = vld [vmem:[#allocation2 + $0xe8] sm:$0xff]  ;;  %v521_v57 = vld [vmem:[#allocation2 + $0x10] sm:$0xff] }
 0x13c   : > { %v1949_v1 = vpop.f32.mrf.mxu0  ;;  %v1997_v2 = vpop.f32.mrf.mxu1 }
 0x13d   : > { %v820_v3 = vadd.f32 %v1948_v63, %v499_v59  ;;  %v836_v4 = vadd.f32 %v1996_v0, %v515_v61 }
 0x13e   : > { %v1950_v6 = vpop.f32.mrf.mxu0  ;;  %v1998_v8 = vpop.f32.mrf.mxu1 }
 0x13f   : > { %852 = vst [vmem:[#allocation2 + $0x50] sm:$0xff] %v820_v3  ;;  %868 = vst [vmem:[#allocation2 + $0xe0] sm:$0xff] %v836_v4  ;;  %v1951_v9 = vadd.f32 %v1950_v6, %v1949_v1  ;;  %v1999_v10 = vadd.f32 %v1998_v8, %v1997_v2  ;;  %v506_v1 = vld [vmem:[#allocation2 + $0xb8] sm:$0xff]  ;;  %v522_v3 = vld [vmem:[#allocation2 + $0x28] sm:$0xff] }
 0x140   : > { %v1952_v11 = vpop.f32.mrf.mxu0  ;;  %v2000_v12 = vpop.f32.mrf.mxu1 }
 0x141   : > { %v821_v13 = vadd.f32 %v1951_v9, %v500_v5  ;;  %v837_v14 = vadd.f32 %v1999_v10, %v516_v7 }
 0x142   : > { %v1953_v16 = vpop.f32.mrf.mxu0  ;;  %v2001_v18 = vpop.f32.mrf.mxu1 }
 0x143   : > { %853 = vst [vmem:[#allocation2 + $0x68] sm:$0xff] %v821_v13  ;;  %869 = vst [vmem:[#allocation2 + $0x90] sm:$0xff] %v837_v14  ;;  %v1954_v19 = vadd.f32 %v1953_v16, %v1952_v11  ;;  %v2002_v20 = vadd.f32 %v2001_v18, %v2000_v12  ;;  %v507_v11 = vld [vmem:[#allocation2 + $0x60] sm:$0xff] }
 0x144   : > { %v1955_v21 = vpop.f32.mrf.mxu0  ;;  %v2003_v22 = vpop.f32.mrf.mxu1  ;;  %v523_v13 = vld [vmem:[#allocation2 + $0xa0] sm:$0xff] }
 0x145   : > { %v822_v23 = vadd.f32 %v1954_v19, %v501_v15  ;;  %v838_v24 = vadd.f32 %v2002_v20, %v517_v17 }
 0x146   : > { %v1956_v26 = vpop.f32.mrf.mxu0  ;;  %v2004_v28 = vpop.f32.mrf.mxu1 }
 0x147   : > { %854 = vst [vmem:[#allocation2 + $0x30] sm:$0xff] %v822_v23  ;;  %870 = vst [vmem:[#allocation2 + $0x70] sm:$0xff] %v838_v24  ;;  %v1957_v29 = vadd.f32 %v1956_v26, %v1955_v21  ;;  %v2005_v30 = vadd.f32 %v2004_v28, %v2003_v22  ;;  %v508_v21 = vld [vmem:[#allocation2 + $0xf0] sm:$0xff]  ;;  %v524_v23 = vld [vmem:[#allocation2 + $0xf8] sm:$0xff] }
 0x148   : > { %v1958_v31 = vpop.f32.mrf.mxu0  ;;  %v2006_v32 = vpop.f32.mrf.mxu1 }
 0x149   : > { %v823_v33 = vadd.f32 %v1957_v29, %v502_v25  ;;  %v839_v34 = vadd.f32 %v2005_v30, %v518_v27 }
 0x14a   : > { %v1959_v36 = vpop.f32.mrf.mxu0  ;;  %v2007_v38 = vpop.f32.mrf.mxu1 }
 0x14b   : > { %855 = vst [vmem:[#allocation2 + $0x48] sm:$0xff] %v823_v33  ;;  %871 = vst [vmem:[#allocation2 + $0xc0] sm:$0xff] %v839_v34  ;;  %v1960_v39 = vadd.f32 %v1959_v36, %v1958_v31  ;;  %v2008_v40 = vadd.f32 %v2007_v38, %v2006_v32  ;;  %v509_v31 = vld [vmem:[#allocation2 + $0x8] sm:$0xff]  ;;  %v525_v33 = vld [vmem:[#allocation2 + $0x20] sm:$0xff] }
 0x14c   : > { %v1961_v41 = vpop.f32.mrf.mxu0  ;;  %v2009_v42 = vpop.f32.mrf.mxu1 }
 0x14d   : > { %v824_v43 = vadd.f32 %v1960_v39, %v503_v35  ;;  %v840_v44 = vadd.f32 %v2008_v40, %v519_v37 }
 0x14e   : > { %v1962_v46 = vpop.f32.mrf.mxu0  ;;  %v2010_v48 = vpop.f32.mrf.mxu1 }
 0x14f   : > { %856 = vst [vmem:[#allocation2 + $0x80] sm:$0xff] %v824_v43  ;;  %872 = vst [vmem:[#allocation2 + $0xa8] sm:$0xff] %v840_v44  ;;  %v1963_v49 = vadd.f32 %v1962_v46, %v1961_v41  ;;  %v2011_v50 = vadd.f32 %v2010_v48, %v2009_v42  ;;  %v510_v41 = vld [vmem:[#allocation2 + $0x78] sm:$0xff] }
 0x150   : > { %v1964_v51 = vpop.f32.mrf.mxu0  ;;  %v2012_v52 = vpop.f32.mrf.mxu1  ;;  %v526_v43 = vld [vmem:[#allocation2 + $0x98] sm:$0xff] }
 0x151   : > { %v825_v53 = vadd.f32 %v1963_v49, %v504_v45  ;;  %v841_v54 = vadd.f32 %v2011_v50, %v520_v47 }
 0x152   : > { %v1965_v56 = vpop.f32.mrf.mxu0  ;;  %v2013_v58 = vpop.f32.mrf.mxu1 }
 0x153   : > { %857 = vst [vmem:[#allocation2 + $0x88] sm:$0xff] %v825_v53  ;;  %873 = vst [vmem:[#allocation2 + $0xd0] sm:$0xff] %v841_v54  ;;  %v1966_v59 = vadd.f32 %v1965_v56, %v1964_v51  ;;  %v2014_v60 = vadd.f32 %v2013_v58, %v2012_v52 }
 0x154   : > { %v1967_v61 = vpop.f32.mrf.mxu0  ;;  %v2015_v62 = vpop.f32.mrf.mxu1 }
 0x155   : > { %v826_v63 = vadd.f32 %v1966_v59, %v505_v55  ;;  %v842_v0 = vadd.f32 %v2014_v60, %v521_v57 }
 0x156   : > { %v1968_v2 = vpop.f32.mrf.mxu0  ;;  %v2016_v4 = vpop.f32.mrf.mxu1 }
 0x157   : > { %858 = vst [vmem:[#allocation2 + $0xe8] sm:$0xff] %v826_v63  ;;  %874 = vst [vmem:[#allocation2 + $0x10] sm:$0xff] %v842_v0  ;;  %v1969_v5 = vadd.f32 %v1968_v2, %v1967_v61  ;;  %v2017_v6 = vadd.f32 %v2016_v4, %v2015_v62 }
 0x158   : > { %v1970_v7 = vpop.f32.mrf.mxu0  ;;  %v2018_v8 = vpop.f32.mrf.mxu1 }
 0x159   : > { %v827_v9 = vadd.f32 %v1969_v5, %v506_v1  ;;  %v843_v10 = vadd.f32 %v2017_v6, %v522_v3 }
 0x15a   : > { %v1971_v12 = vpop.f32.mrf.mxu0  ;;  %v2019_v14 = vpop.f32.mrf.mxu1 }
 0x15b   : > { %859 = vst [vmem:[#allocation2 + $0xb8] sm:$0xff] %v827_v9  ;;  %875 = vst [vmem:[#allocation2 + $0x28] sm:$0xff] %v843_v10  ;;  %v1972_v15 = vadd.f32 %v1971_v12, %v1970_v7  ;;  %v2020_v16 = vadd.f32 %v2019_v14, %v2018_v8 }
 0x15c   : > { %v1973_v17 = vpop.f32.mrf.mxu0  ;;  %v2021_v18 = vpop.f32.mrf.mxu1 }
 0x15d   : > { %v828_v19 = vadd.f32 %v1972_v15, %v507_v11  ;;  %v844_v20 = vadd.f32 %v2020_v16, %v523_v13 }
 0x15e   : > { %v1974_v22 = vpop.f32.mrf.mxu0  ;;  %v2022_v24 = vpop.f32.mrf.mxu1 }
 0x15f   : > { %860 = vst [vmem:[#allocation2 + $0x60] sm:$0xff] %v828_v19  ;;  %876 = vst [vmem:[#allocation2 + $0xa0] sm:$0xff] %v844_v20  ;;  %v1975_v25 = vadd.f32 %v1974_v22, %v1973_v17  ;;  %v2023_v26 = vadd.f32 %v2022_v24, %v2021_v18 }
 0x160   : > { %v1976_v27 = vpop.f32.mrf.mxu0  ;;  %v2024_v28 = vpop.f32.mrf.mxu1 }
 0x161   : > { %v829_v29 = vadd.f32 %v1975_v25, %v508_v21  ;;  %v845_v30 = vadd.f32 %v2023_v26, %v524_v23 }
 0x162   : > { %v1977_v32 = vpop.f32.mrf.mxu0  ;;  %v2025_v34 = vpop.f32.mrf.mxu1 }
 0x163   : > { %861 = vst [vmem:[#allocation2 + $0xf0] sm:$0xff] %v829_v29  ;;  %877 = vst [vmem:[#allocation2 + $0xf8] sm:$0xff] %v845_v30  ;;  %v1978_v35 = vadd.f32 %v1977_v32, %v1976_v27  ;;  %v2026_v36 = vadd.f32 %v2025_v34, %v2024_v28 }
 0x164   : > { %v1979_v37 = vpop.f32.mrf.mxu0  ;;  %v2027_v38 = vpop.f32.mrf.mxu1 }
 0x165   : > { %v830_v39 = vadd.f32 %v1978_v35, %v509_v31  ;;  %v846_v40 = vadd.f32 %v2026_v36, %v525_v33 }
 0x166   : > { %v1980_v42 = vpop.f32.mrf.mxu0  ;;  %v2028_v44 = vpop.f32.mrf.mxu1 }
 0x167   : > { %862 = vst [vmem:[#allocation2 + $0x8] sm:$0xff] %v830_v39  ;;  %878 = vst [vmem:[#allocation2 + $0x20] sm:$0xff] %v846_v40  ;;  %v1981_v45 = vadd.f32 %v1980_v42, %v1979_v37  ;;  %v2029_v46 = vadd.f32 %v2028_v44, %v2027_v38  ;;  %883 = sbr.rel (%p1905_p0) target bundleno = 973 (0x3cd), region = 79 }
 0x169   : > { %v831_v47 = vadd.f32 %v1981_v45, %v510_v41  ;;  %v847_v48 = vadd.f32 %v2029_v46, %v526_v43 }
 0x16b   : > { %863 = vst [vmem:[#allocation2 + $0x78] sm:$0xff] %v831_v47  ;;  %879 = vst [vmem:[#allocation2 + $0x98] sm:$0xff] %v847_v48 }
 0x16c   : > { %v886_v49 = vld [vmem:[%s2467_s22 + $0x10] sm:$0xff]  ;;  %v884_v50 = vld [vmem:[%s2467_s22] sm:$0xff]  ;;  %v2329_v51 = vmov 0   ;;  %v887_v52 = vld [vmem:[%s2467_s22 + $0x18] sm:$0xff]  ;;  %vm2331_vm0 = vmmov 0  }
 0x16d   : > { %2263 = vset.pattern.permute.xlu1 %v2329_v51  ;;  %2262 = vset.pattern.permute.xlu0 %v2329_v51  ;;  %v885_v53 = vld [vmem:[%s2467_s22 + $0x8] sm:$0xff]  ;;  %v888_v55 = vld [vmem:[%s2467_s22 + $0x20] sm:$0xff]  ;;  %v891_v56 = vld [vmem:[%s2467_s22 + $0x38] sm:$0xff] }
 0x16e   : > { %960 = vperm.xlu1 %2263, %v886_v49   ;;  %950 = vperm.xlu0 %2262, %v884_v50   ;;  %v889_v54 = vld [vmem:[%s2467_s22 + $0x28] sm:$0xff]  ;;  %v890_v57 = vld [vmem:[%s2467_s22 + $0x30] sm:$0xff]  ;;  %v892_v59 = vld [vmem:[%s2467_s22 + $0x40] sm:$0xff] }
 0x16f   : > { %v893_v58 = vld [vmem:[%s2467_s22 + $0x48] sm:$0xff]  ;;  %v895_v60 = vld [vmem:[%s2467_s22 + $0x58] sm:$0xff]  ;;  %v894_v61 = vld [vmem:[%s2467_s22 + $0x50] sm:$0xff] }
 0x170   : > { %v2264_v62 = vld [vmem:[%s2716_s3 + $0x38] sm:$0xff]   ;;  %v2265_v63 = vld [vmem:[%s2716_s3 + $0x30] sm:$0xff]   ;;  %v897_v0 = vld [vmem:[%s2467_s22 + $0x68] sm:$0xff] }
 0x171   : > { %2071 = vmatprep.subr.bf16.mxu0 %v2264_v62  ;;  %2170 = vmatprep.subr.bf16.mxu1 %v2264_v62  ;;  %v896_v1 = vld [vmem:[%s2467_s22 + $0x60] sm:$0xff]  ;;  %v2266_v2 = vld [vmem:[%s2716_s3 + $0x28] sm:$0xff]   ;;  %v899_v3 = vld [vmem:[%s2467_s22 + $0x78] sm:$0xff] }
 0x172   : > { %965 = vperm.xlu1 %2263, %v887_v52   ;;  %955 = vperm.xlu0 %2262, %v885_v53   ;;  %v898_v4 = vld [vmem:[%s2467_s22 + $0x70] sm:$0xff]  ;;  %v2267_v5 = vld [vmem:[%s2716_s3 + $0x20] sm:$0xff]   ;;  %v901_v6 = vld [vmem:[%s2467_s22 + $0x88] sm:$0xff] }
 0x173   : > { %2072 = vmatpush3.bf16.msra.mxu0 %v2264_v62  ;;  %2178 = vmatpush3.bf16.msra.mxu1 %v2264_v62  ;;  %v900_v7 = vld [vmem:[%s2467_s22 + $0x80] sm:$0xff]  ;;  %v2268_v8 = vld [vmem:[%s2716_s3 + $0x18] sm:$0xff]   ;;  %v902_v10 = vld [vmem:[%s2467_s22 + $0x90] sm:$0xff] }
 0x174   : > { %2073 = vmatprep.subr.bf16.mxu0 %v2265_v63  ;;  %2171 = vmatprep.subr.bf16.mxu1 %v2265_v63  ;;  %v903_v9 = vld [vmem:[%s2467_s22 + $0x98] sm:$0xff]  ;;  %v2269_v11 = vld [vmem:[%s2716_s3 + $0x10] sm:$0xff]   ;;  %v905_v12 = vld [vmem:[%s2467_s22 + $0xa8] sm:$0xff] }
 0x175   : > { %v904_v13 = vld [vmem:[%s2467_s22 + $0xa0] sm:$0xff]  ;;  %v2270_v14 = vld [vmem:[%s2716_s3 + $0x8] sm:$0xff]   ;;  %v907_v15 = vld [vmem:[%s2467_s22 + $0xb8] sm:$0xff] }
 0x176   : > { %975 = vperm.xlu1 %2263, %v889_v54   ;;  %970 = vperm.xlu0 %2262, %v888_v55   ;;  %v906_v16 = vld [vmem:[%s2467_s22 + $0xb0] sm:$0xff]  ;;  %v2271_v17 = vld [vmem:[%s2716_s3] sm:$0xff]   ;;  %v909_v18 = vld [vmem:[%s2467_s22 + $0xc8] sm:$0xff] }
 0x177   : > { %2074 = vmatpush3.bf16.msra.mxu0 %v2265_v63  ;;  %2179 = vmatpush3.bf16.msra.mxu1 %v2265_v63  ;;  %v908_v19 = vld [vmem:[%s2467_s22 + $0xc0] sm:$0xff]  ;;  %v911_v20 = vld [vmem:[%s2467_s22 + $0xd8] sm:$0xff]  ;;  %v910_v21 = vld [vmem:[%s2467_s22 + $0xd0] sm:$0xff] }
 0x178   : > { %2075 = vmatprep.subr.bf16.mxu0 %v2266_v2  ;;  %2172 = vmatprep.subr.bf16.mxu1 %v2266_v2  ;;  %v913_v22 = vld [vmem:[%s2467_s22 + $0xe8] sm:$0xff]  ;;  %v912_v23 = vld [vmem:[%s2467_s22 + $0xe0] sm:$0xff]  ;;  %v915_v24 = vld [vmem:[%s2467_s22 + $0xf8] sm:$0xff] }
 0x179   : > { %v914_v25 = vld [vmem:[%s2467_s22 + $0xf0] sm:$0xff]  ;;  %v1421_v26 = vld [vmem:[%s2472_s11 + $0x8] sm:$0xff]  ;;  %v1420_v27 = vld [vmem:[%s2472_s11] sm:$0xff] }
 0x17a   : > { %985 = vperm.xlu1 %2263, %v891_v56   ;;  %980 = vperm.xlu0 %2262, %v890_v57   ;;  %v1423_v28 = vld [vmem:[%s2472_s11 + $0x18] sm:$0xff]  ;;  %v1422_v29 = vld [vmem:[%s2472_s11 + $0x10] sm:$0xff]  ;;  %v1425_v30 = vld [vmem:[%s2472_s11 + $0x28] sm:$0xff] }
 0x17b   : > { %2076 = vmatpush3.bf16.msra.mxu0 %v2266_v2  ;;  %2180 = vmatpush3.bf16.msra.mxu1 %v2266_v2  ;;  %v1424_v31 = vld [vmem:[%s2472_s11 + $0x20] sm:$0xff]  ;;  %v1427_v32 = vld [vmem:[%s2472_s11 + $0x38] sm:$0xff]  ;;  %v1426_v33 = vld [vmem:[%s2472_s11 + $0x30] sm:$0xff] }
 0x17c   : > { %2077 = vmatprep.subr.bf16.mxu0 %v2267_v5  ;;  %2173 = vmatprep.subr.bf16.mxu1 %v2267_v5  ;;  %v1429_v34 = vld [vmem:[%s2472_s11 + $0x48] sm:$0xff]  ;;  %v1428_v35 = vld [vmem:[%s2472_s11 + $0x40] sm:$0xff]  ;;  %v1431_v36 = vld [vmem:[%s2472_s11 + $0x58] sm:$0xff] }
 0x17d   : > { %v1430_v37 = vld [vmem:[%s2472_s11 + $0x50] sm:$0xff]  ;;  %v1433_v38 = vld [vmem:[%s2472_s11 + $0x68] sm:$0xff]  ;;  %v1432_v39 = vld [vmem:[%s2472_s11 + $0x60] sm:$0xff] }
 0x17e   : > { %995 = vperm.xlu1 %2263, %v893_v58   ;;  %990 = vperm.xlu0 %2262, %v892_v59   ;;  %v1435_v40 = vld [vmem:[%s2472_s11 + $0x78] sm:$0xff]  ;;  %v1434_v41 = vld [vmem:[%s2472_s11 + $0x70] sm:$0xff]  ;;  %v1437_v42 = vld [vmem:[%s2472_s11 + $0x88] sm:$0xff] }
 0x17f   : > { %2078 = vmatpush3.bf16.msra.mxu0 %v2267_v5  ;;  %2181 = vmatpush3.bf16.msra.mxu1 %v2267_v5  ;;  %v1436_v43 = vld [vmem:[%s2472_s11 + $0x80] sm:$0xff]  ;;  %v1439_v44 = vld [vmem:[%s2472_s11 + $0x98] sm:$0xff]  ;;  %v1438_v45 = vld [vmem:[%s2472_s11 + $0x90] sm:$0xff] }
 0x180   : > { %2079 = vmatprep.subr.bf16.mxu0 %v2268_v8  ;;  %2174 = vmatprep.subr.bf16.mxu1 %v2268_v8  ;;  %v1441_v46 = vld [vmem:[%s2472_s11 + $0xa8] sm:$0xff]  ;;  %v1440_v47 = vld [vmem:[%s2472_s11 + $0xa0] sm:$0xff]  ;;  %v1443_v48 = vld [vmem:[%s2472_s11 + $0xb8] sm:$0xff] }
 0x181   : > { %v1442_v49 = vld [vmem:[%s2472_s11 + $0xb0] sm:$0xff]  ;;  %v1445_v50 = vld [vmem:[%s2472_s11 + $0xc8] sm:$0xff]  ;;  %v1444_v51 = vld [vmem:[%s2472_s11 + $0xc0] sm:$0xff] }
 0x182   : > { %1005 = vperm.xlu1 %2263, %v895_v60   ;;  %1000 = vperm.xlu0 %2262, %v894_v61   ;;  %v1447_v52 = vld [vmem:[%s2472_s11 + $0xd8] sm:$0xff]  ;;  %v1446_v53 = vld [vmem:[%s2472_s11 + $0xd0] sm:$0xff]  ;;  %v1449_v54 = vld [vmem:[%s2472_s11 + $0xe8] sm:$0xff] }
 0x183   : > { %2080 = vmatpush3.bf16.msra.mxu0 %v2268_v8  ;;  %2182 = vmatpush3.bf16.msra.mxu1 %v2268_v8  ;;  %v1448_v55 = vld [vmem:[%s2472_s11 + $0xe0] sm:$0xff]  ;;  %v1451_v56 = vld [vmem:[%s2472_s11 + $0xf8] sm:$0xff]  ;;  %v1450_v57 = vld [vmem:[%s2472_s11 + $0xf0] sm:$0xff] }
 0x184   : > { %2081 = vmatprep.subr.bf16.mxu0 %v2269_v11  ;;  %2175 = vmatprep.subr.bf16.mxu1 %v2269_v11  ;;  %v918_v60 = vld [vmem:[#allocation2 + $0xd8] sm:$0xff]  ;;  %v916_v61 = vld [vmem:[#allocation2 + $0xb0] sm:$0xff]  ;;  %v917_v63 = vld [vmem:[#allocation2] sm:$0xff] }
 0x185   : > { %v919_v62 = vld [vmem:[#allocation2 + $0x18] sm:$0xff] }
 0x186   : > { %1015 = vperm.xlu1 %2263, %v897_v0   ;;  %1010 = vperm.xlu0 %2262, %v896_v1  }
 0x187   : > { %2082 = vmatpush3.bf16.msra.mxu0 %v2269_v11  ;;  %2183 = vmatpush3.bf16.msra.mxu1 %v2269_v11 }
 0x188   : > { %2083 = vmatprep.subr.bf16.mxu0 %v2270_v14  ;;  %2176 = vmatprep.subr.bf16.mxu1 %v2270_v14 }
 0x18a   : > { %1025 = vperm.xlu1 %2263, %v899_v3   ;;  %1020 = vperm.xlu0 %2262, %v898_v4  }
 0x18b   : > { %2084 = vmatpush3.bf16.msra.mxu0 %v2270_v14  ;;  %2184 = vmatpush3.bf16.msra.mxu1 %v2270_v14  ;;  %v923_v14 = vld [vmem:[#allocation2 + $0x48] sm:$0xff] }
 0x18c   : > { %2085 = vmatprep.subr.bf16.mxu0 %v2271_v17  ;;  %2177 = vmatprep.subr.bf16.mxu1 %v2271_v17 }
 0x18e   : > { %1035 = vperm.xlu1 %2263, %v901_v6   ;;  %1030 = vperm.xlu0 %2262, %v900_v7   ;;  %v921_v6 = vld [vmem:[#allocation2 + $0x68] sm:$0xff]  ;;  %v920_v7 = vld [vmem:[#allocation2 + $0x50] sm:$0xff] }
 0x18f   : > { %2086 = vmatpush3.bf16.msra.mxu0 %v2271_v17  ;;  %2185 = vmatpush3.bf16.msra.mxu1 %v2271_v17 }
 0x192   : > { %1045 = vperm.xlu1 %2263, %v903_v9   ;;  %1040 = vperm.xlu0 %2262, %v902_v10  }
 0x196   : > { %1055 = vperm.xlu1 %2263, %v905_v12   ;;  %1050 = vperm.xlu0 %2262, %v904_v13  }
 0x19a   : > { %1065 = vperm.xlu1 %2263, %v907_v15   ;;  %1060 = vperm.xlu0 %2262, %v906_v16   ;;  %v922_v15 = vld [vmem:[#allocation2 + $0x30] sm:$0xff] }
 0x19e   : > { %1075 = vperm.xlu1 %2263, %v909_v18   ;;  %1070 = vperm.xlu0 %2262, %v908_v19  }
 0x1a2   : > { %1085 = vperm.xlu1 %2263, %v911_v20   ;;  %1080 = vperm.xlu0 %2262, %v910_v21   ;;  %v925_v21 = vld [vmem:[#allocation2 + $0x88] sm:$0xff] }
 0x1a6   : > { %1095 = vperm.xlu1 %2263, %v913_v22   ;;  %1090 = vperm.xlu0 %2262, %v912_v23   ;;  %v924_v22 = vld [vmem:[#allocation2 + $0x80] sm:$0xff] }
 0x1aa   : > { %1105 = vperm.xlu1 %2263, %v915_v24   ;;  %1100 = vperm.xlu0 %2262, %v914_v25  }
 0x1ae   : > { %1459 = vperm.xlu1 %2263, %v1421_v26   ;;  %1454 = vperm.xlu0 %2262, %v1420_v27  }
 0x1b2   : > { %1469 = vperm.xlu1 %2263, %v1423_v28   ;;  %1464 = vperm.xlu0 %2262, %v1422_v29   ;;  %v927_v28 = vld [vmem:[#allocation2 + $0xb8] sm:$0xff]  ;;  %v926_v29 = vld [vmem:[#allocation2 + $0xe8] sm:$0xff] }
 0x1b6   : > { %1479 = vperm.xlu1 %2263, %v1425_v30   ;;  %1474 = vperm.xlu0 %2262, %v1424_v31  }
 0x1ba   : > { %1489 = vperm.xlu1 %2263, %v1427_v32   ;;  %1484 = vperm.xlu0 %2262, %v1426_v33  }
 0x1be   : > { %1499 = vperm.xlu1 %2263, %v1429_v34   ;;  %1494 = vperm.xlu0 %2262, %v1428_v35   ;;  %v929_v35 = vld [vmem:[#allocation2 + $0xf0] sm:$0xff] }
 0x1c2   : > { %1509 = vperm.xlu1 %2263, %v1431_v36   ;;  %1504 = vperm.xlu0 %2262, %v1430_v37   ;;  %v928_v36 = vld [vmem:[#allocation2 + $0x60] sm:$0xff] }
 0x1c6   : > { %1519 = vperm.xlu1 %2263, %v1433_v38   ;;  %1514 = vperm.xlu0 %2262, %v1432_v39  }
 0x1ca   : > { %1529 = vperm.xlu1 %2263, %v1435_v40   ;;  %1524 = vperm.xlu0 %2262, %v1434_v41  }
 0x1ce   : > { %1539 = vperm.xlu1 %2263, %v1437_v42   ;;  %1534 = vperm.xlu0 %2262, %v1436_v43   ;;  %v931_v42 = vld [vmem:[#allocation2 + $0x78] sm:$0xff]  ;;  %v930_v43 = vld [vmem:[#allocation2 + $0x8] sm:$0xff] }
 0x1d2   : > { %1549 = vperm.xlu1 %2263, %v1439_v44   ;;  %1544 = vperm.xlu0 %2262, %v1438_v45  }
 0x1d6   : > { %1559 = vperm.xlu1 %2263, %v1441_v46   ;;  %1554 = vperm.xlu0 %2262, %v1440_v47  }
 0x1da   : > { %1569 = vperm.xlu1 %2263, %v1443_v48   ;;  %1564 = vperm.xlu0 %2262, %v1442_v49   ;;  %v933_v49 = vld [vmem:[#allocation2 + $0x58] sm:$0xff] }
 0x1de   : > { %1579 = vperm.xlu1 %2263, %v1445_v50   ;;  %1574 = vperm.xlu0 %2262, %v1444_v51   ;;  %v932_v50 = vld [vmem:[#allocation2 + $0x38] sm:$0xff] }
 0x1e2   : > { %1589 = vperm.xlu1 %2263, %v1447_v52   ;;  %1584 = vperm.xlu0 %2262, %v1446_v53  }
 0x1e6   : > { %1599 = vperm.xlu1 %2263, %v1449_v54   ;;  %1594 = vperm.xlu0 %2262, %v1448_v55  }
 0x1e9   : > { %v961_v58 = vpop.permute.xlu1 %960  ;;  %v951_v59 = vpop.permute.xlu0 %950 }
 0x1ea   : > { %1609 = vperm.xlu1 %2263, %v1451_v56   ;;  %1604 = vperm.xlu0 %2262, %v1450_v57   ;;  %v1110_v2 = vmul.f32 %v961_v58, %v918_v60  ;;  %v1108_v3 = vmul.f32 %v951_v59, %v916_v61  ;;  %v935_v56 = vld [vmem:[#allocation2 + $0xc8] sm:$0xff]  ;;  %v934_v57 = vld [vmem:[#allocation2 + $0x40] sm:$0xff] }
 0x1ed   : > { %v966_v0 = vpop.permute.xlu1 %965  ;;  %v956_v1 = vpop.permute.xlu0 %955 }
 0x1ee   : > { %v1111_v4 = vmul.f32 %v966_v0, %v919_v62  ;;  %v1109_v5 = vmul.f32 %v956_v1, %v917_v63  ;;  %v937_v63 = vld [vmem:[#allocation2 + $0x90] sm:$0xff]  ;;  %v936_v0 = vld [vmem:[#allocation2 + $0xe0] sm:$0xff] }
 0x1f0   : > { %v1141_v8 = vpack.c.bf16 %v1111_v4, %v1110_v2  ;;  %v1140_v9 = vpack.c.bf16 %v1109_v5, %v1108_v3 }
 0x1f1   : > { %v976_v10 = vpop.permute.xlu1 %975  ;;  %v971_v11 = vpop.permute.xlu0 %970 }
 0x1f2   : > { %v1113_v12 = vmul.f32 %v976_v10, %v921_v6  ;;  %v1112_v13 = vmul.f32 %v971_v11, %v920_v7  ;;  %2087 = vmatprep.mubr.bf16.mxu0 %v1140_v9  ;;  %v939_v6 = vld [vmem:[#allocation2 + $0xc0] sm:$0xff]  ;;  %v938_v7 = vld [vmem:[#allocation2 + $0x70] sm:$0xff] }
 0x1f3   : > { %2088 = vmatmul.mubr.bf16.vlgmr.msra.gmra.mxu0 %v1141_v8 }
 0x1f4   : > { %v1142_v16 = vpack.c.bf16 %v1113_v12, %v1112_v13  ;;  %v941_v13 = vld [vmem:[#allocation2 + $0xd0] sm:$0xff] }
 0x1f5   : > { %v986_v17 = vpop.permute.xlu1 %985  ;;  %v981_v18 = vpop.permute.xlu0 %980 }
 0x1f6   : > { %v1115_v19 = vmul.f32 %v986_v17, %v923_v14  ;;  %v1114_v20 = vmul.f32 %v981_v18, %v922_v15  ;;  %2091 = vmatprep.mubr.bf16.mxu0 %v1142_v16  ;;  %v940_v14 = vld [vmem:[#allocation2 + $0xa8] sm:$0xff] }
 0x1f8   : > { %v1143_v23 = vpack.c.bf16 %v1115_v19, %v1114_v20  ;;  %v943_v20 = vld [vmem:[#allocation2 + $0x28] sm:$0xff] }
 0x1f9   : > { %v996_v24 = vpop.permute.xlu1 %995  ;;  %v991_v25 = vpop.permute.xlu0 %990 }
 0x1fa   : > { %v1117_v26 = vmul.f32 %v996_v24, %v925_v21  ;;  %v1116_v27 = vmul.f32 %v991_v25, %v924_v22  ;;  %v942_v21 = vld [vmem:[#allocation2 + $0x10] sm:$0xff] }
 0x1fb   : > { %2092 = vmatmul.mubr.bf16.gmra.mxu0 %v1143_v23 }
 0x1fc   : > { %v1144_v30 = vpack.c.bf16 %v1117_v26, %v1116_v27  ;;  %v945_v27 = vld [vmem:[#allocation2 + $0xf8] sm:$0xff] }
 0x1fd   : > { %v1006_v31 = vpop.permute.xlu1 %1005  ;;  %v1001_v32 = vpop.permute.xlu0 %1000 }
 0x1fe   : > { %v1119_v33 = vmul.f32 %v1006_v31, %v927_v28  ;;  %v1118_v34 = vmul.f32 %v1001_v32, %v926_v29  ;;  %2095 = vmatprep.mubr.bf16.mxu0 %v1144_v30  ;;  %v944_v28 = vld [vmem:[#allocation2 + $0xa0] sm:$0xff] }
 0x200   : > { %v1145_v37 = vpack.c.bf16 %v1119_v33, %v1118_v34  ;;  %v947_v34 = vld [vmem:[#allocation2 + $0x98] sm:$0xff] }
 0x201   : > { %v1016_v38 = vpop.permute.xlu1 %1015  ;;  %v1011_v39 = vpop.permute.xlu0 %1010 }
 0x202   : > { %v1121_v40 = vmul.f32 %v1016_v38, %v929_v35  ;;  %v1120_v41 = vmul.f32 %v1011_v39, %v928_v36  ;;  %v946_v35 = vld [vmem:[#allocation2 + $0x20] sm:$0xff] }
 0x203   : > { %2096 = vmatmul.mubr.bf16.gmra.mxu0 %v1145_v37 }
 0x204   : > { %v1146_v44 = vpack.c.bf16 %v1121_v40, %v1120_v41 }
 0x205   : > { %v1026_v45 = vpop.permute.xlu1 %1025  ;;  %v1021_v46 = vpop.permute.xlu0 %1020 }
 0x206   : > { %v1123_v47 = vmul.f32 %v1026_v45, %v931_v42  ;;  %v1122_v48 = vmul.f32 %v1021_v46, %v930_v43  ;;  %2099 = vmatprep.mubr.bf16.mxu0 %v1146_v44  ;;  %v2330_v42 = vmov 0.0   ;;  %v1696_v43 = vld [vmem:[%s2719_s6 + $0x78] sm:$0xff]  ;;  %v1695_v44 = vld [vmem:[%s2719_s6 + $0x70] sm:$0xff]  ;;  %v1694_v45 = vld [vmem:[%s2719_s6 + $0x68] sm:$0xff] }
 0x207   : > { %2119 = vmatprep.subr.mxu1 %v2330_v42  ;;  %v1693_v46 = vld [vmem:[%s2719_s6 + $0x60] sm:$0xff] }
 0x208   : > { %v1147_v51 = vpack.c.bf16 %v1123_v47, %v1122_v48  ;;  %v1692_v47 = vld [vmem:[%s2719_s6 + $0x58] sm:$0xff]  ;;  %v1691_v48 = vld [vmem:[%s2719_s6 + $0x50] sm:$0xff] }
 0x209   : > { %v1036_v52 = vpop.permute.xlu1 %1035  ;;  %v1031_v53 = vpop.permute.xlu0 %1030 }
 0x20a   : > { %v1125_v54 = vmul.f32 %v1036_v52, %v933_v49  ;;  %v1124_v55 = vmul.f32 %v1031_v53, %v932_v50  ;;  %v1690_v49 = vld [vmem:[%s2719_s6 + $0x48] sm:$0xff]  ;;  %v1689_v50 = vld [vmem:[%s2719_s6 + $0x40] sm:$0xff]  ;;  %v1687_v52 = vld [vmem:[%s2719_s6 + $0x30] sm:$0xff] }
 0x20b   : > { %2100 = vmatmul.mubr.bf16.gmra.mxu0 %v1147_v51  ;;  %v1688_v51 = vld [vmem:[%s2719_s6 + $0x38] sm:$0xff]  ;;  %v1686_v53 = vld [vmem:[%s2719_s6 + $0x28] sm:$0xff] }
 0x20c   : > { %v1148_v58 = vpack.c.bf16 %v1125_v54, %v1124_v55  ;;  %v1685_v54 = vld [vmem:[%s2719_s6 + $0x20] sm:$0xff]  ;;  %v1684_v55 = vld [vmem:[%s2719_s6 + $0x18] sm:$0xff] }
 0x20d   : > { %v1046_v59 = vpop.permute.xlu1 %1045  ;;  %v1041_v60 = vpop.permute.xlu0 %1040 }
 0x20e   : > { %v1127_v61 = vmul.f32 %v1046_v59, %v935_v56  ;;  %v1126_v62 = vmul.f32 %v1041_v60, %v934_v57  ;;  %2103 = vmatprep.mubr.bf16.mxu1 %v1148_v58  ;;  %v1683_v56 = vld [vmem:[%s2719_s6 + $0x10] sm:$0xff]  ;;  %v1682_v57 = vld [vmem:[%s2719_s6 + $0x8] sm:$0xff]  ;;  %v1681_v58 = vld [vmem:[%s2719_s6] sm:$0xff] }
 0x210   : > { %v1149_v1 = vpack.c.bf16 %v1127_v61, %v1126_v62 }
 0x211   : > { %v1056_v2 = vpop.permute.xlu1 %1055  ;;  %v1051_v3 = vpop.permute.xlu0 %1050 }
 0x212   : > { %v1129_v4 = vmul.f32 %v1056_v2, %v937_v63  ;;  %v1128_v5 = vmul.f32 %v1051_v3, %v936_v0  ;;  %2104 = vmatmul.mubr.bf16.vlgmr.msra.gmra.mxu1 %v1149_v1 }
 0x213   : > { %2120 = vmatpush3.msra.mxu1 %v1696_v43 }
 0x214   : > { %v1150_v8 = vpack.c.bf16 %v1129_v4, %v1128_v5  ;;  %2121 = vmatprep.subr.mxu1 %v2330_v42  ;;  %v2653_v5 = vld [vmem:[%s2717_s4] ss:$0 sm:$0xff] }
 0x215   : > { %v1066_v9 = vpop.permute.xlu1 %1065  ;;  %v1061_v10 = vpop.permute.xlu0 %1060  ;;  %2122 = vmatpush3.msra.mxu1 %v1695_v44 }
 0x216   : > { %v1131_v11 = vmul.f32 %v1066_v9, %v939_v6  ;;  %v1130_v12 = vmul.f32 %v1061_v10, %v938_v7  ;;  %2107 = vmatprep.mubr.bf16.mxu1 %v1150_v8  ;;  %2123 = vmatprep.subr.mxu1 %v2330_v42 }
 0x217   : > { %2124 = vmatpush3.msra.mxu1 %v1694_v45 }
 0x218   : > { %v1151_v15 = vpack.c.bf16 %v1131_v11, %v1130_v12  ;;  %2125 = vmatprep.subr.mxu1 %v2330_v42 }
 0x219   : > { %v1076_v16 = vpop.permute.xlu1 %1075  ;;  %v1071_v17 = vpop.permute.xlu0 %1070  ;;  %2126 = vmatpush3.msra.mxu1 %v1693_v46 }
 0x21a   : > { %v1133_v18 = vmul.f32 %v1076_v16, %v941_v13  ;;  %v1132_v19 = vmul.f32 %v1071_v17, %v940_v14  ;;  %2108 = vmatmul.mubr.bf16.gmra.mxu1 %v1151_v15  ;;  %2127 = vmatprep.subr.mxu1 %v2330_v42 }
 0x21b   : > { %2128 = vmatpush3.msra.mxu1 %v1692_v47 }
 0x21c   : > { %v1152_v22 = vpack.c.bf16 %v1133_v18, %v1132_v19  ;;  %2129 = vmatprep.subr.mxu1 %v2330_v42 }
 0x21d   : > { %v1086_v23 = vpop.permute.xlu1 %1085  ;;  %v1081_v24 = vpop.permute.xlu0 %1080  ;;  %2130 = vmatpush3.msra.mxu1 %v1691_v48 }
 0x21e   : > { %v1135_v25 = vmul.f32 %v1086_v23, %v943_v20  ;;  %v1134_v26 = vmul.f32 %v1081_v24, %v942_v21  ;;  %2111 = vmatprep.mubr.bf16.mxu1 %v1152_v22  ;;  %2131 = vmatprep.subr.mxu1 %v2330_v42 }
 0x21f   : > { %2132 = vmatpush3.msra.mxu1 %v1690_v49 }
 0x220   : > { %v1153_v29 = vpack.c.bf16 %v1135_v25, %v1134_v26  ;;  %2133 = vmatprep.subr.mxu1 %v2330_v42 }
 0x221   : > { %v1096_v30 = vpop.permute.xlu1 %1095  ;;  %v1091_v31 = vpop.permute.xlu0 %1090  ;;  %2134 = vmatpush3.msra.mxu1 %v1689_v50 }
 0x222   : > { %v1137_v32 = vmul.f32 %v1096_v30, %v945_v27  ;;  %v1136_v33 = vmul.f32 %v1091_v31, %v944_v28  ;;  %2112 = vmatmul.mubr.bf16.gmra.mxu1 %v1153_v29  ;;  %2135 = vmatprep.subr.mxu1 %v2330_v42 }
 0x223   : > { %2136 = vmatpush3.msra.mxu1 %v1688_v51 }
 0x224   : > { %v1154_v36 = vpack.c.bf16 %v1137_v32, %v1136_v33  ;;  %2137 = vmatprep.subr.mxu1 %v2330_v42 }
 0x225   : > { %v1106_v37 = vpop.permute.xlu1 %1105  ;;  %v1101_v38 = vpop.permute.xlu0 %1100  ;;  %2138 = vmatpush3.msra.mxu1 %v1687_v52 }
 0x226   : > { %v1139_v39 = vmul.f32 %v1106_v37, %v947_v34  ;;  %v1138_v40 = vmul.f32 %v1101_v38, %v946_v35  ;;  %2115 = vmatprep.mubr.bf16.mxu1 %v1154_v36  ;;  %2139 = vmatprep.subr.mxu1 %v2330_v42 }
 0x227   : > { %2140 = vmatpush3.msra.mxu1 %v1686_v53 }
 0x228   : > { %v1155_v41 = vpack.c.bf16 %v1139_v39, %v1138_v40  ;;  %2141 = vmatprep.subr.mxu1 %v2330_v42 }
 0x229   : > { %2142 = vmatpush3.msra.mxu1 %v1685_v54  ;;  %v1455_v59 = vpop.permute.xlu0 %1454  ;;  %v1460_v60 = vpop.permute.xlu1 %1459 }
 0x22a   : > { %2116 = vmatmul.mubr.bf16.gmra.mxu1 %v1155_v41  ;;  %2143 = vmatprep.subr.mxu1 %v2330_v42 }
 0x22b   : > { %2144 = vmatpush3.msra.mxu1 %v1684_v55  ;;  %2151 = vmatprep.mubr.msk.f32.mxu1 %vm2331_vm0, %v2330_v42 }
 0x22c   : > { %2145 = vmatprep.subr.mxu1 %v2330_v42 }
 0x22d   : > { %2146 = vmatpush3.msra.mxu1 %v1683_v56  ;;  %v1465_v61 = vpop.permute.xlu0 %1464  ;;  %v1470_v62 = vpop.permute.xlu1 %1469 }
 0x22e   : > { %2147 = vmatprep.subr.mxu1 %v2330_v42 }
 0x22f   : > { %2148 = vmatpush3.msra.mxu1 %v1682_v57 }
 0x230   : > { %2149 = vmatprep.subr.mxu1 %v2330_v42 }
 0x231   : > { %2150 = vmatpush3.msra.mxu1 %v1681_v58  ;;  %v1475_v63 = vpop.permute.xlu0 %1474  ;;  %v1480_v0 = vpop.permute.xlu1 %1479 }
 0x235   : > { %v1485_v1 = vpop.permute.xlu0 %1484  ;;  %v1490_v2 = vpop.permute.xlu1 %1489 }
 0x239   : > { %v1495_v4 = vpop.permute.xlu0 %1494  ;;  %v1500_v8 = vpop.permute.xlu1 %1499 }
 0x23d   : > { %v1505_v15 = vpop.permute.xlu0 %1504  ;;  %v1510_v19 = vpop.permute.xlu1 %1509 }
 0x241   : > { %v1515_v30 = vpop.permute.xlu0 %1514  ;;  %v1520_v36 = vpop.permute.xlu1 %1519 }
 0x245   : > { %v1525_v47 = vpop.permute.xlu0 %1524  ;;  %v1530_v53 = vpop.permute.xlu1 %1529 }
 0x2b3   : > { %v2089_v3 = vpop.f32.mrf.mxu0 }
 0x2b4   : > { %v1270_v10 = vadd.f32 %v2089_v3, %v2653_v5 }
 0x2b5   : > { %v1261_v6 = vpop.f32.mrf.mxu0 }
 0x2b6   : > { %v1262_v7 = vadd.f32 %v2653_v5, %v1261_v6  ;;  %v1390_v17 = vmax.f32 %v1270_v10, 0.0  ;;  %v1540_v10 = vpop.permute.xlu1 %1539 }
 0x2b7   : > { %v2090_v9 = vpop.f32.mrf.mxu0 }
 0x2b8   : > { %v1388_v12 = vmax.f32 %v1262_v7, 0.0  ;;  %v1273_v13 = vadd.f32 %v2090_v9, %v2653_v5  ;;  %v1614_v26 = vmul.f32 %v1465_v61, %v1390_v17 }
 0x2b9   : > { %v1264_v11 = vpop.f32.mrf.mxu0 }
 0x2ba   : > { %v1265_v14 = vadd.f32 %v2653_v5, %v1264_v11  ;;  %v1612_v21 = vmul.f32 %v1455_v59, %v1388_v12  ;;  %v1391_v22 = vmax.f32 %v1273_v13, 0.0 }
 0x2bb   : > { %v2093_v16 = vpop.f32.mrf.mxu0 }
 0x2bc   : > { %v1389_v18 = vmax.f32 %v1265_v14, 0.0  ;;  %v1286_v28 = vadd.f32 %v2093_v16, %v2653_v5  ;;  %v1615_v32 = vmul.f32 %v1470_v62, %v1391_v22 }
 0x2bd   : > { %v1277_v20 = vpop.f32.mrf.mxu0 }
 0x2be   : > { %v1613_v23 = vmul.f32 %v1460_v60, %v1389_v18  ;;  %v1278_v24 = vadd.f32 %v2653_v5, %v1277_v20  ;;  %v1394_v38 = vmax.f32 %v1286_v28, 0.0 }
 0x2bf   : > { %v2094_v25 = vpop.f32.mrf.mxu0 }
 0x2c0   : > { %v1644_v27 = vadd.f32 %v1613_v23, %v1612_v21  ;;  %v1392_v29 = vmax.f32 %v1278_v24, 0.0  ;;  %v1289_v34 = vadd.f32 %v2094_v25, %v2653_v5  ;;  %v1618_v49 = vmul.f32 %v1485_v1, %v1394_v38 }
 0x2c1   : > { %v1280_v31 = vpop.f32.mrf.mxu0 }
 0x2c2   : > { %v1645_v33 = vadd.f32 %v1644_v27, %v1614_v26  ;;  %v1281_v35 = vadd.f32 %v2653_v5, %v1280_v31  ;;  %v1616_v39 = vmul.f32 %v1475_v63, %v1392_v29  ;;  %v1395_v44 = vmax.f32 %v1289_v34, 0.0  ;;  %v1550_v27 = vpop.permute.xlu1 %1549 }
 0x2c3   : > { %v2097_v37 = vpop.f32.mrf.mxu0 }
 0x2c4   : > { %v1646_v40 = vadd.f32 %v1645_v33, %v1615_v32  ;;  %v1393_v41 = vmax.f32 %v1281_v35, 0.0  ;;  %v1302_v51 = vadd.f32 %v2097_v37, %v2653_v5  ;;  %v1619_v55 = vmul.f32 %v1490_v2, %v1395_v44 }
 0x2c5   : > { %v1293_v42 = vpop.f32.mrf.mxu0 }
 0x2c6   : > { %v1647_v43 = vadd.f32 %v1646_v40, %v1616_v39  ;;  %v1617_v45 = vmul.f32 %v1480_v0, %v1393_v41  ;;  %v1294_v46 = vadd.f32 %v2653_v5, %v1293_v42  ;;  %v1398_v60 = vmax.f32 %v1302_v51, 0.0  ;;  %v1535_v0 = vpop.permute.xlu0 %1534 }
 0x2c7   : > { %v2098_v48 = vpop.f32.mrf.mxu0 }
 0x2c8   : > { %v1648_v50 = vadd.f32 %v1647_v43, %v1617_v45  ;;  %v1396_v52 = vmax.f32 %v1294_v46, 0.0  ;;  %v1305_v57 = vadd.f32 %v2098_v48, %v2653_v5  ;;  %v1622_v2 = vmul.f32 %v1505_v15, %v1398_v60  ;;  %v1560_v43 = vpop.permute.xlu1 %1559 }
 0x2c9   : > { %v1296_v54 = vpop.f32.mrf.mxu0 }
 0x2ca   : > { %v1649_v56 = vadd.f32 %v1648_v50, %v1618_v49  ;;  %v1297_v58 = vadd.f32 %v2653_v5, %v1296_v54  ;;  %v1620_v61 = vmul.f32 %v1495_v4, %v1396_v52  ;;  %v1399_v6 = vmax.f32 %v1305_v57, 0.0  ;;  %v1545_v22 = vpop.permute.xlu0 %1544 }
 0x2cb   : > { %v2101_v59 = vpop.f32.mrf.mxu0 }
 0x2cc   : > { %v1650_v62 = vadd.f32 %v1649_v56, %v1619_v55  ;;  %v1397_v63 = vmax.f32 %v1297_v58, 0.0  ;;  %v1318_v13 = vadd.f32 %v2101_v59, %v2653_v5  ;;  %v1623_v17 = vmul.f32 %v1510_v19, %v1399_v6  ;;  %v1570_v59 = vpop.permute.xlu1 %1569 }
 0x2cd   : > { %v1309_v3 = vpop.f32.mrf.mxu0 }
 0x2ce   : > { %v1651_v1 = vadd.f32 %v1650_v62, %v1620_v61  ;;  %v1621_v7 = vmul.f32 %v1500_v8, %v1397_v63  ;;  %v1310_v9 = vadd.f32 %v2653_v5, %v1309_v3  ;;  %v1402_v23 = vmax.f32 %v1318_v13, 0.0  ;;  %v1555_v38 = vpop.permute.xlu0 %1554 }
 0x2cf   : > { %v2102_v11 = vpop.f32.mrf.mxu0 }
 0x2d0   : > { %v1652_v12 = vadd.f32 %v1651_v1, %v1621_v7  ;;  %v1400_v14 = vmax.f32 %v1310_v9, 0.0  ;;  %v1321_v4 = vadd.f32 %v2102_v11, %v2653_v5  ;;  %v1626_v19 = vmul.f32 %v1525_v47, %v1402_v23 }
 0x2d1   : > { %v1312_v16 = vpop.f32.mrf.mxu0 }
 0x2d2   : > { %v1653_v18 = vadd.f32 %v1652_v12, %v1622_v2  ;;  %v1313_v20 = vadd.f32 %v2653_v5, %v1312_v16  ;;  %v2105_v21 = vpop.f32.mrf.mxu1  ;;  %v1624_v8 = vmul.f32 %v1515_v30, %v1400_v14  ;;  %v1403_v29 = vmax.f32 %v1321_v4, 0.0  ;;  %v1565_v54 = vpop.permute.xlu0 %1564 }
 0x2d3   : > { %v1334_v34 = vadd.f32 %v2105_v21, %v2653_v5  ;;  %v1580_v16 = vpop.permute.xlu1 %1579 }
 0x2d4   : > { %v1654_v24 = vadd.f32 %v1653_v18, %v1623_v17  ;;  %v1401_v25 = vmax.f32 %v1313_v20, 0.0  ;;  %v1325_v26 = vpop.f32.mrf.mxu1  ;;  %v1627_v30 = vmul.f32 %v1530_v53, %v1403_v29 }
 0x2d5   : > { %v1326_v15 = vadd.f32 %v2653_v5, %v1325_v26  ;;  %v1406_v45 = vmax.f32 %v1334_v34, 0.0 }
 0x2d6   : > { %v1655_v28 = vadd.f32 %v1654_v24, %v1624_v8  ;;  %v1625_v31 = vmul.f32 %v1520_v36, %v1401_v25  ;;  %v2106_v32 = vpop.f32.mrf.mxu1 }
 0x2d7   : > { %v1404_v35 = vmax.f32 %v1326_v15, 0.0  ;;  %v1337_v41 = vadd.f32 %v2106_v32, %v2653_v5  ;;  %v1630_v55 = vmul.f32 %v1545_v22, %v1406_v45  ;;  %v1590_v32 = vpop.permute.xlu1 %1589 }
 0x2d8   : > { %v1656_v33 = vadd.f32 %v1655_v28, %v1625_v31  ;;  %v1328_v37 = vpop.f32.mrf.mxu1 }
 0x2d9   : > { %v1329_v39 = vadd.f32 %v2653_v5, %v1328_v37  ;;  %v1628_v46 = vmul.f32 %v1535_v0, %v1404_v35  ;;  %v1407_v51 = vmax.f32 %v1337_v41, 0.0 }
 0x2da   : > { %v1657_v40 = vadd.f32 %v1656_v33, %v1626_v19  ;;  %v2109_v42 = vpop.f32.mrf.mxu1 }
 0x2db   : > { %v1405_v44 = vmax.f32 %v1329_v39, 0.0  ;;  %v1350_v53 = vadd.f32 %v2109_v42, %v2653_v5  ;;  %v1631_v61 = vmul.f32 %v1550_v27, %v1407_v51 }
 0x2dc   : > { %v1658_v36 = vadd.f32 %v1657_v40, %v1627_v30  ;;  %v1341_v48 = vpop.f32.mrf.mxu1 }
 0x2dd   : > { %v1629_v47 = vmul.f32 %v1540_v10, %v1405_v44  ;;  %v1342_v49 = vadd.f32 %v2653_v5, %v1341_v48  ;;  %v1410_v1 = vmax.f32 %v1350_v53, 0.0  ;;  %v1575_v10 = vpop.permute.xlu0 %1574 }
 0x2de   : > { %v1659_v50 = vadd.f32 %v1658_v36, %v1628_v46  ;;  %v2110_v52 = vpop.f32.mrf.mxu1  ;;  %v1600_v36 = vpop.permute.xlu1 %1599 }
 0x2df   : > { %v1408_v57 = vmax.f32 %v1342_v49, 0.0  ;;  %v1353_v63 = vadd.f32 %v2110_v52, %v2653_v5  ;;  %v1634_v17 = vmul.f32 %v1565_v54, %v1410_v1 }
 0x2e0   : > { %v1660_v56 = vadd.f32 %v1659_v50, %v1629_v47  ;;  %v1344_v58 = vpop.f32.mrf.mxu1 }
 0x2e1   : > { %v1345_v60 = vadd.f32 %v2653_v5, %v1344_v58  ;;  %v1632_v6 = vmul.f32 %v1555_v38, %v1408_v57  ;;  %v1411_v13 = vmax.f32 %v1353_v63, 0.0  ;;  %v1585_v26 = vpop.permute.xlu0 %1584 }
 0x2e2   : > { %v1661_v62 = vadd.f32 %v1660_v56, %v1630_v55  ;;  %v2113_v0 = vpop.f32.mrf.mxu1  ;;  %v1610_v57 = vpop.permute.xlu1 %1609 }
 0x2e3   : > { %v1409_v3 = vmax.f32 %v1345_v60, 0.0  ;;  %v1366_v4 = vadd.f32 %v2113_v0, %v2653_v5  ;;  %v1635_v23 = vmul.f32 %v1570_v59, %v1411_v13 }
 0x2e4   : > { %v1662_v7 = vadd.f32 %v1661_v62, %v1631_v61  ;;  %v1357_v9 = vpop.f32.mrf.mxu1 }
 0x2e5   : > { %v1633_v11 = vmul.f32 %v1560_v43, %v1409_v3  ;;  %v1358_v2 = vadd.f32 %v2653_v5, %v1357_v9  ;;  %v1414_v15 = vmax.f32 %v1366_v4, 0.0  ;;  %v1595_v42 = vpop.permute.xlu0 %1594 }
 0x2e6   : > { %v1663_v12 = vadd.f32 %v1662_v7, %v1632_v6  ;;  %v2114_v14 = vpop.f32.mrf.mxu1 }
 0x2e7   : > { %v1412_v20 = vmax.f32 %v1358_v2, 0.0  ;;  %v1369_v24 = vadd.f32 %v2114_v14, %v2653_v5  ;;  %v1638_v38 = vmul.f32 %v1585_v26, %v1414_v15 }
 0x2e8   : > { %v1664_v18 = vadd.f32 %v1663_v12, %v1633_v11  ;;  %v1360_v21 = vpop.f32.mrf.mxu1 }
 0x2e9   : > { %v1361_v22 = vadd.f32 %v2653_v5, %v1360_v21  ;;  %v1636_v28 = vmul.f32 %v1575_v10, %v1412_v20  ;;  %v1415_v35 = vmax.f32 %v1369_v24, 0.0  ;;  %v1605_v55 = vpop.permute.xlu0 %1604 }
 0x2ea   : > { %v1665_v8 = vadd.f32 %v1664_v18, %v1634_v17  ;;  %v2117_v25 = vpop.f32.mrf.mxu1 }
 0x2eb   : > { %v1413_v27 = vmax.f32 %v1361_v22, 0.0  ;;  %v1382_v30 = vadd.f32 %v2117_v25, %v2653_v5  ;;  %v1639_v44 = vmul.f32 %v1590_v32, %v1415_v35 }
 0x2ec   : > { %v1666_v29 = vadd.f32 %v1665_v8, %v1635_v23  ;;  %v1373_v31 = vpop.f32.mrf.mxu1 }
 0x2ed   : > { %v1637_v19 = vmul.f32 %v1580_v16, %v1413_v27  ;;  %v1374_v33 = vadd.f32 %v2653_v5, %v1373_v31  ;;  %v1418_v47 = vmax.f32 %v1382_v30, 0.0 }
 0x2ee   : > { %v1667_v34 = vadd.f32 %v1666_v29, %v1636_v28  ;;  %v2118_v37 = vpop.f32.mrf.mxu1 }
 0x2ef   : > { %v1416_v40 = vmax.f32 %v1374_v33, 0.0  ;;  %v1385_v46 = vadd.f32 %v2118_v37, %v2653_v5  ;;  %v1642_v56 = vmul.f32 %v1605_v55, %v1418_v47 }
 0x2f0   : > { %v1668_v39 = vadd.f32 %v1667_v34, %v1637_v19  ;;  %v1376_v41 = vpop.f32.mrf.mxu1 }
 0x2f1   : > { %v1377_v43 = vadd.f32 %v2653_v5, %v1376_v41  ;;  %v1640_v49 = vmul.f32 %v1595_v42, %v1416_v40  ;;  %v1419_v54 = vmax.f32 %v1385_v46, 0.0 }
 0x2f2   : > { %v1669_v45 = vadd.f32 %v1668_v39, %v1638_v38 }
 0x2f3   : > { %v1417_v48 = vmax.f32 %v1377_v43, 0.0  ;;  %v1643_v58 = vmul.f32 %v1610_v57, %v1419_v54 }
 0x2f4   : > { %v1670_v50 = vadd.f32 %v1669_v45, %v1639_v44 }
 0x2f5   : > { %v1641_v51 = vmul.f32 %v1600_v36, %v1417_v48 }
 0x2f6   : > { %v1671_v52 = vadd.f32 %v1670_v50, %v1640_v49 }
 0x2f8   : > { %v1672_v53 = vadd.f32 %v1671_v52, %v1641_v51 }
 0x2fa   : > { %v1673_v59 = vadd.f32 %v1672_v53, %v1642_v56 }
 0x2fc   : > { %v1674_v60 = vadd.f32 %v1673_v59, %v1643_v58 }
 0x2fe   : > { %v1675_v61 = vrot.slane %v1674_v60, 4 }
 0x300   : > { %v1676_v62 = vadd.f32 %v1675_v61, %v1674_v60 }
 0x302   : > { %v1677_v63 = vrot.slane %v1676_v62, 2 }
 0x304   : > { %v1678_v5 = vadd.f32 %v1677_v63, %v1676_v62 }
 0x306   : > { %v1679_v0 = vrot.slane %v1678_v5, 1 }
 0x308   : > { %v1680_v3 = vadd.f32 %v1679_v0, %v1678_v5 }
 0x30a   : > { %2152 = vmatmul.mubr.f32.vlgmr.msra.gmra.mxu1 %v1680_v3 }
 0x3ca   : > { %v1763_v1 = vpop.f32.mrf.mxu1 }
 0x3cb   : > { %1767 = vst [vmem:[%s409_s16] sm:$0x1] %v1763_v1 }
 0x3cc   : > { %v2153_v6 = vpop.f32.mrf.mxu1 }
 0x3cd PF: > { %s17_s30 = sadd.s32 1, %s2326_s30   ;;  %s2723_s24 = smov %s2306_s25 }
 0x3ce   : > { %p14_p1 = scmp.ge.s32.totalorder %s17_s30, 6   ;;  %s2724_s25 = smov %s2423_s14 }
 0x3cf   : > { %s2725_s26 = smov %s2318_s28  ;;  %s2726_s27 = smov %s2322_s29 }
 0x3d0   : > { %s2727_s28 = smov %s2730_s8  ;;  %s2728_s29 = smov %s2734_s9 }
 0x3d1   :  { %16 = sbr.rel (!%p14_p1) target bundleno = 6 (0x6), region = 123 }

// kernel: gnn_forward.2
= control target key start
LH: loop header
LB: loop body
LE: loop exit
PB: predicated region body
PF: predicated region fallthrough
CT: control target
= control target key end

     0   :  { %s3658_s0 = inlined_call_operand.vmem [shape: s8[512,512], index: 0, kind: input, shape index: {}]   ;;  %s3659_s1 = inlined_call_operand.vmem [shape: bf16[512,128], index: 1, kind: input, shape index: {}]   ;;  %s3660_s2 = inlined_call_operand.vmem [shape: f32[512,1], index: 2, kind: input, shape index: {}]   ;;  %s3661_s3 = inlined_call_operand.vmem [shape: bf16[512,128], index: 3, kind: input, shape index: {}]   ;;  %s3662_s4 = inlined_call_operand.hbm [shape: bf16[128,128], index: 4, kind: input, shape index: {}]   ;;  %s3663_s5 = inlined_call_operand.hbm [shape: bf16[128,128], index: 5, kind: input, shape index: {}]   ;;  %s3664_s6 = inlined_call_operand.vmem [shape: f32[1,128], index: 6, kind: input, shape index: {}]   ;;  %s3665_s7 = inlined_call_operand.vmem [shape: f32[512,1], index: 7, kind: input, shape index: {}]   ;;  %s3666_s8 = inlined_call_operand.vmem [shape: bf16[512,128], index: 8, kind: output, shape index: {}]  }
   0x1   :  { %3669 = sst [smem:[#allocation13_spill]] %s3662_s4 }
   0x2   :  { %13 = vsyncpa [#allocation5], 0 }
   0x3   :  { %14 = vsyncpa [#allocation7], 0  ;;  %s3228_s27 = smov 0   ;;  %s3230_s28 = smov 0  }
   0x4   :  { %s3232_s29 = smov 0   ;;  %s3234_s30 = smov 0  }
   0x5   :  { %s3236_s9 = smov 0   ;;  %s3238_s10 = smov 0  }
   0x6   :  { %s3240_s11 = smov 0  }
   0x7 LB: > { %s2420_s12 = sadd.s32 4294967295, %s3175_s11   ;;  %s29_s13 = sadd.s32 1, %s3167_s9  ;;  %s3175_s11 = sphi %s3240_s11, %s20_s11   ;;  %s3171_s10 = sphi %s3238_s10, %s3686_s10   ;;  %s3167_s9 = sphi %s3236_s9, %s3685_s9   ;;  %s3163_s30 = sphi %s3234_s30, %s3684_s30   ;;  %s3159_s29 = sphi %s3232_s29, %s3683_s29   ;;  %s3155_s28 = sphi %s3230_s28, %s3682_s28   ;;  %s3151_s27 = sphi %s3228_s27, %s3681_s27  }
   0x8   : > { %p30_p0 = scmp.ge.s32.totalorder %s29_s13, 2  ;;  %s32_s14 = sadd.s32 1, %s3171_s10 }
   0x9   : > { %s41_s15 = sadd.s32 1, %s3155_s28  ;;  %p48_p1 = scmp.ne.s32.totalorder %s3155_s28, %s3151_s27 }
   0xa   : > { %s3688_s13 = smov (%p30_p0, %s29_s13), 0  ;;  %s3690_s14 = smov (!%p30_p0, %s32_s14), %s3171_s10 }
   0xb   : > { %3670 = sst [smem:[#allocation10_spill]] %s3688_s13  ;;  %s37_s16 = ssub.s32 %s3167_s9, %s3688_s13 }
   0xc   : > { %p49_p2 = scmp.eq.s32.totalorder %s3175_s11, 0  ;;  %p34_p3 = scmp.ge.s32.totalorder %s3690_s14, 2 }
   0xd   : > { %p2422_p4 = scmp.ge.s32.totalorder %s3175_s11, 1  ;;  %p258_p6 = scmp.lt.s32.totalorder %s3175_s11, 5 }
   0xe   : > { %p3276_p5 = por %p49_p2, %p48_p1  ;;  %s3692_s14 = smov (%p34_p3, %s3690_s14), 0 }
   0xf   : > { %3672 = sst [smem:[#allocation11_spill]] %s3692_s14  ;;  %p3283_p7 = pnand %p2422_p4, %p258_p6 }
  0x10   : > { %s36_s19 = ssub.s32 %s3171_s10, %s3692_s14  ;;  %p3289_p8 = scmp.eq.s32.totalorder %s2420_s12, 0 }
  0x11   : > { %s38_s21 = sor.u32 %s37_s16, %s36_s19  ;;  %p2938_p9 = pneg %p3283_p7 }
  0x12   : > { %p39_p10 = scmp.eq.s32.totalorder %s38_s21, 0  ;;  %s3177_s22 = smov [#allocation4]  }
  0x13   : > { %s270_s23 = sshll.u32 %s3177_s22, 4  ;;  %p3297_p11 = pnand %p3289_p8, %p2938_p9  ;;  %s271_s23 = int_to_ptr.vmem [resolvable:$true] %s270_s23 }
  0x14   : > { %s3302_s25 = scalar_select %p39_p10, %s3155_s28, %s41_s15  }
  0x15   : > { %p3063_p12 = pneg %p3297_p11  ;;  %s3072_s26 = scalar_lea.vmem %s271_s23, 1024 }
  0x16   : > { %3676 = sst [smem:[#allocation12_spill]] %s3302_s25  ;;  %p3073_p13 = scmp.ne.s32.totalorder %s271_s23, %s3072_s26 }
  0x17   : > { %p3080_p2 = scmp.lt.s32.totalorder %s271_s23, %s271_s23  ;;  %p3081_p3 = scmp.lt.s32.totalorder %s3072_s26, %s3072_s26 }
  0x18   : > { %p3075_p0 = pnand %p3073_p13, %p3063_p12 }
  0x19   : > { %p3082_p4 = por %p3081_p3, %p3080_p2 }
  0x1a   : > { %p3076_p1 = pneg %p3075_p0 }
  0x1c   : > { %p3083_p6 = pnand %p3082_p4, %p3076_p1 }
  0x1e   : > { %3086 = shalt.err (!%p3083_p6)
}
  0x1f   : > { %s3178_s12 = smov 64   ;;  %s3179_s16 = smov 4  }
  0x20   : > { %s3677_s4 = sld [smem:[#allocation13_spill]]  ;;  %s3180_s21 = smov [#allocation6]  }
  0x21   : > { %s283_s22 = sshll.u32 %s3180_s21, 4  ;;  %s284_s22 = int_to_ptr.vmem [resolvable:$true] %s283_s22 }
  0x22   : > { %s3098_s14 = scalar_lea.vmem %s284_s22, 1024  ;;  %p3106_p0 = scmp.lt.s32.totalorder %s284_s22, %s284_s22 }
  0x23   : > { %p3099_p9 = scmp.ne.s32.totalorder %s284_s22, %s3098_s14  ;;  %p3107_p1 = scmp.lt.s32.totalorder %s3098_s14, %s3098_s14 }
  0x25   : > { %p3101_p10 = pnand %p3099_p9, %p3063_p12  ;;  %p3108_p2 = por %p3107_p1, %p3106_p0 }
  0x26   : > { %2941 = dma.hbm_to_vmem [thread:$0]  (!%p3297_p11), %s3677_s4, 1024, %s271_s23, [#allocation5], %s3178_s12, %s3178_s12, %s3179_s16  }
  0x27   : > { %p3102_p13 = pneg %p3101_p10 }
  0x29   : > { %p3109_p3 = pnand %p3108_p2, %p3102_p13 }
  0x2b   : > { %3112 = shalt.err (!%p3109_p3)
}
  0x2c   : > { %2944 = dma.hbm_to_vmem [thread:$0]  (!%p3297_p11), %s3663_s5, 1024, %s284_s22, [#allocation7], %s3178_s12, %s3178_s12, %s3179_s16  }
  0x2d   : > { %p2425_p4 = scmp.ge.s32.totalorder %s3175_s11, 4 }
  0x2f   : > { %296 = sbr.rel (%p2425_p4) target bundleno = 67 (0x43), region = 28 }
  0x34   : > { %299 = sbr.rel (!%p3276_p5) target bundleno = 67 (0x43), region = 32  ;;  %s301_s23 = sand.u32 (%p3276_p5), 1, %s3155_s28  }
  0x35   : > { %s2428_s14 = sshll.u32 (%p3276_p5), %s3167_s9, 1  ;;  %s2426_s15 = sshll.u32 (%p3276_p5), %s301_s23, 7 }
  0x36   : > { %s2530_s19 = sshll.u32 (%p3276_p5), %s3171_s10, 5  ;;  %s303_s17 = scalar_lea.vmem (%p3276_p5), [#allocation3], %s2426_s15 }
  0x37   : > { %s307_s21 = sadd.s32 (%p3276_p5), %s2530_s19, %s2428_s14 }
  0x38   : > { %s2430_s4 = sshll.u32 (%p3276_p5), %s307_s21, 3 }
  0x39   : > { %s3331_s13 = scalar_lea.vmem %s3658_s0, %s2430_s4 }
  0x3a   : > { %v322_v0 = vld [vmem:[%s3331_s13] sm:$0xff]  ;;  %v324_v1 = vld [vmem:[%s3331_s13 + $0x8] sm:$0xff] }
  0x3b   : > { %v326_v2 = vld [vmem:[%s3331_s13 + $0x20] sm:$0xff]  ;;  %323 = vst [vmem:[%s303_s17] sm:$0xff] %v322_v0  ;;  %325 = vst [vmem:[%s303_s17 + $0x8] sm:$0xff] %v324_v1  ;;  %v328_v3 = vld [vmem:[%s3331_s13 + $0x28] sm:$0xff] }
  0x3c   : > { %327 = vst [vmem:[%s303_s17 + $0x10] sm:$0xff] %v326_v2  ;;  %v330_v4 = vld [vmem:[%s3331_s13 + $0x40] sm:$0xff]  ;;  %v332_v5 = vld [vmem:[%s3331_s13 + $0x48] sm:$0xff]  ;;  %329 = vst [vmem:[%s303_s17 + $0x18] sm:$0xff] %v328_v3 }
  0x3d   : > { %331 = vst [vmem:[%s303_s17 + $0x20] sm:$0xff] %v330_v4  ;;  %333 = vst [vmem:[%s303_s17 + $0x28] sm:$0xff] %v332_v5  ;;  %v334_v6 = vld [vmem:[%s3331_s13 + $0x60] sm:$0xff]  ;;  %v336_v7 = vld [vmem:[%s3331_s13 + $0x68] sm:$0xff] }
  0x3e   : > { %v338_v8 = vld [vmem:[%s3331_s13 + $0x80] sm:$0xff]  ;;  %335 = vst [vmem:[%s303_s17 + $0x30] sm:$0xff] %v334_v6  ;;  %337 = vst [vmem:[%s303_s17 + $0x38] sm:$0xff] %v336_v7  ;;  %v340_v9 = vld [vmem:[%s3331_s13 + $0x88] sm:$0xff] }
  0x3f   : > { %339 = vst [vmem:[%s303_s17 + $0x40] sm:$0xff] %v338_v8  ;;  %v342_v10 = vld [vmem:[%s3331_s13 + $0xa0] sm:$0xff]  ;;  %v344_v11 = vld [vmem:[%s3331_s13 + $0xa8] sm:$0xff]  ;;  %341 = vst [vmem:[%s303_s17 + $0x48] sm:$0xff] %v340_v9 }
  0x40   : > { %343 = vst [vmem:[%s303_s17 + $0x50] sm:$0xff] %v342_v10  ;;  %345 = vst [vmem:[%s303_s17 + $0x58] sm:$0xff] %v344_v11  ;;  %v346_v12 = vld [vmem:[%s3331_s13 + $0xc0] sm:$0xff]  ;;  %v348_v13 = vld [vmem:[%s3331_s13 + $0xc8] sm:$0xff] }
  0x41   : > { %v350_v14 = vld [vmem:[%s3331_s13 + $0xe0] sm:$0xff]  ;;  %347 = vst [vmem:[%s303_s17 + $0x60] sm:$0xff] %v346_v12  ;;  %349 = vst [vmem:[%s303_s17 + $0x68] sm:$0xff] %v348_v13  ;;  %v352_v15 = vld [vmem:[%s3331_s13 + $0xe8] sm:$0xff] }
  0x42   : > { %351 = vst [vmem:[%s303_s17 + $0x70] sm:$0xff] %v350_v14  ;;  %353 = vst [vmem:[%s303_s17 + $0x78] sm:$0xff] %v352_v15 }
  0x43 PF: > { %398 = sbr.rel (%p3283_p7) target bundleno = 799 (0x31f), region = 71  ;;  %s401_s4 = sand.u32 (!%p3283_p7), 1, %s3151_s27  }
  0x44   : > { %s2432_s25 = sshll.u32 (!%p3283_p7), %s401_s4, 7 }
  0x45   : > { %s3352_s12 = scalar_lea.vmem (!%p3283_p7), [#allocation3], %s2432_s25 }
  0x48   : > { %3142 = dma.done.wait (%p3289_p8), [#allocation5], 1024  }
  0x49   : > { %3144 = vsyncadd (%p3289_p8), [#allocation5], 4294966272 }
  0x4a   : > { %3146 = dma.done.wait (%p3289_p8), [#allocation7], 1024  }
  0x4b   : > { %3148 = vsyncadd (%p3289_p8), [#allocation7], 4294966272  ;;  %s2435_s18 = sshll.u32 %s3159_s29, 5  ;;  %s2437_s16 = sshll.u32 %s3163_s30, 5 }
  0x4c   : > { %p465_p5 = scmp.lt.s32.totalorder %s2435_s18, 63  ;;  %p471_p7 = scmp.lt.s32.totalorder %s2437_s16, 63 }
  0x4d   : > { %p2445_p8 = scmp.ne.s32.totalorder %s3159_s29, 0 }
  0x4e   : > { %s3694_s18 = smov (!%p465_p5, %s2435_s18), 63  ;;  %s3696_s16 = smov (!%p471_p7, %s2437_s16), 63 }
  0x4f   : > { %s2436_s27 = sshll.u32 %s3694_s18, 2  ;;  %s2438_s14 = sshll.u32 %s3696_s16, 3 }
  0x50   : > { %s3367_s23 = scalar_lea.vmem %s3659_s1, %s2436_s27  ;;  %s3372_s20 = scalar_lea.vmem %s3660_s2, %s2438_s14 }
  0x51   : > { %s2440_s21 = sshll.u32 %s3696_s16, 2  ;;  %s3382_s25 = scalar_lea.vmem %s3665_s7, %s2438_s14 }
  0x52   : > { %s3377_s30 = scalar_lea.vmem %s3661_s3, %s2440_s21  ;;  %s3387_s22 = scalar_lea.vmem %s3666_s8, %s2440_s21 }
  0x53   : > { %498 = sbr.rel (%p2445_p8) target bundleno = 105 (0x69), region = 87 }
  0x58   : > { %v3181_v16 = vmov 0.0  }
  0x59   : > { %499 = vst [vmem:[#allocation2 + $0xb0] sm:$0xff] %v3181_v16  ;;  %500 = vst [vmem:[#allocation2] sm:$0xff] %v3181_v16 }
  0x5a   : > { %501 = vst [vmem:[#allocation2 + $0xd8] sm:$0xff] %v3181_v16  ;;  %502 = vst [vmem:[#allocation2 + $0x18] sm:$0xff] %v3181_v16 }
  0x5b   : > { %503 = vst [vmem:[#allocation2 + $0x50] sm:$0xff] %v3181_v16  ;;  %504 = vst [vmem:[#allocation2 + $0x68] sm:$0xff] %v3181_v16 }
  0x5c   : > { %505 = vst [vmem:[#allocation2 + $0x30] sm:$0xff] %v3181_v16  ;;  %506 = vst [vmem:[#allocation2 + $0x48] sm:$0xff] %v3181_v16 }
  0x5d   : > { %507 = vst [vmem:[#allocation2 + $0x80] sm:$0xff] %v3181_v16  ;;  %508 = vst [vmem:[#allocation2 + $0x88] sm:$0xff] %v3181_v16 }
  0x5e   : > { %509 = vst [vmem:[#allocation2 + $0xe8] sm:$0xff] %v3181_v16  ;;  %510 = vst [vmem:[#allocation2 + $0xb8] sm:$0xff] %v3181_v16 }
  0x5f   : > { %511 = vst [vmem:[#allocation2 + $0x60] sm:$0xff] %v3181_v16  ;;  %512 = vst [vmem:[#allocation2 + $0xf0] sm:$0xff] %v3181_v16 }
  0x60   : > { %513 = vst [vmem:[#allocation2 + $0x8] sm:$0xff] %v3181_v16  ;;  %514 = vst [vmem:[#allocation2 + $0x78] sm:$0xff] %v3181_v16 }
  0x61   : > { %515 = vst [vmem:[#allocation2 + $0x38] sm:$0xff] %v3181_v16  ;;  %516 = vst [vmem:[#allocation2 + $0x58] sm:$0xff] %v3181_v16 }
  0x62   : > { %517 = vst [vmem:[#allocation2 + $0x40] sm:$0xff] %v3181_v16  ;;  %518 = vst [vmem:[#allocation2 + $0xc8] sm:$0xff] %v3181_v16 }
  0x63   : > { %519 = vst [vmem:[#allocation2 + $0xe0] sm:$0xff] %v3181_v16  ;;  %520 = vst [vmem:[#allocation2 + $0x90] sm:$0xff] %v3181_v16 }
  0x64   : > { %521 = vst [vmem:[#allocation2 + $0x70] sm:$0xff] %v3181_v16  ;;  %522 = vst [vmem:[#allocation2 + $0xc0] sm:$0xff] %v3181_v16 }
  0x65   : > { %523 = vst [vmem:[#allocation2 + $0xa8] sm:$0xff] %v3181_v16  ;;  %524 = vst [vmem:[#allocation2 + $0xd0] sm:$0xff] %v3181_v16 }
  0x66   : > { %525 = vst [vmem:[#allocation2 + $0x10] sm:$0xff] %v3181_v16  ;;  %526 = vst [vmem:[#allocation2 + $0x28] sm:$0xff] %v3181_v16 }
  0x67   : > { %527 = vst [vmem:[#allocation2 + $0xa0] sm:$0xff] %v3181_v16  ;;  %528 = vst [vmem:[#allocation2 + $0xf8] sm:$0xff] %v3181_v16 }
  0x68   : > { %529 = vst [vmem:[#allocation2 + $0x20] sm:$0xff] %v3181_v16  ;;  %530 = vst [vmem:[#allocation2 + $0x98] sm:$0xff] %v3181_v16 }
  0x69 PF: > { %v3011_v17 = vld [vmem:[%s3367_s23 + $0x78] sm:$0xff]   ;;  %v3013_v19 = vld [vmem:[%s3367_s23 + $0x70] sm:$0xff]   ;;  %v3015_v21 = vld [vmem:[%s3367_s23 + $0x68] sm:$0xff]   ;;  %p2462_p11 = scmp.ne.s32.totalorder %s3159_s29, 1 }
  0x6a   : > { %v3012_v18 = vld [vmem:[%s3367_s23 + $0x38] sm:$0xff]   ;;  %2658 = vmatprep.subr.bf16.mxu0 %v3011_v17  ;;  %2914 = vmatprep.subr.bf16.mxu1 %v3011_v17  ;;  %v3014_v20 = vld [vmem:[%s3367_s23 + $0x30] sm:$0xff]   ;;  %v3016_v22 = vld [vmem:[%s3367_s23 + $0x28] sm:$0xff]  }
  0x6b   : > { %2659 = vmatpush3.bf16.msra.mxu0 %v3012_v18  ;;  %2922 = vmatpush3.bf16.msra.mxu1 %v3012_v18  ;;  %v3017_v23 = vld [vmem:[%s3367_s23 + $0x60] sm:$0xff]   ;;  %v3019_v25 = vld [vmem:[%s3367_s23 + $0x58] sm:$0xff]   ;;  %v3021_v27 = vld [vmem:[%s3367_s23 + $0x50] sm:$0xff]  }
  0x6c   : > { %2660 = vmatprep.subr.bf16.mxu0 %v3013_v19  ;;  %2915 = vmatprep.subr.bf16.mxu1 %v3013_v19  ;;  %v3018_v24 = vld [vmem:[%s3367_s23 + $0x20] sm:$0xff]   ;;  %v3020_v26 = vld [vmem:[%s3367_s23 + $0x18] sm:$0xff]   ;;  %v532_v28 = vld [vmem:[%s3352_s12 + $0x8] sm:$0xff] }
  0x6d   : > { %v540_v29 = vld [vmem:[%s3352_s12 + $0x48] sm:$0xff]  ;;  %v548_v30 = vunpack.c.l.s8.bf16 %v532_v28  ;;  %v3022_v32 = vld [vmem:[%s3367_s23 + $0x10] sm:$0xff]   ;;  %v3025_v35 = vld [vmem:[%s3367_s23 + $0x40] sm:$0xff]   ;;  %v550_v41 = vunpack.c.h.s8.bf16 %v532_v28 }
  0x6e   : > { %v564_v31 = vunpack.c.l.s8.bf16 %v540_v29  ;;  %v3023_v33 = vld [vmem:[%s3367_s23 + $0x48] sm:$0xff]   ;;  %v3026_v36 = vld [vmem:[%s3367_s23] sm:$0xff]   ;;  %v566_v42 = vunpack.c.h.s8.bf16 %v540_v29  ;;  %v534_v43 = vld [vmem:[%s3352_s12 + $0x18] sm:$0xff] }
  0x6f   : > { %2661 = vmatpush3.bf16.msra.mxu0 %v3014_v20  ;;  %2923 = vmatpush3.bf16.msra.mxu1 %v3014_v20  ;;  %v3024_v34 = vld [vmem:[%s3367_s23 + $0x8] sm:$0xff]   ;;  %v531_v37 = vld [vmem:[%s3352_s12] sm:$0xff]  ;;  %v542_v44 = vld [vmem:[%s3352_s12 + $0x58] sm:$0xff]  ;;  %v552_v47 = vunpack.c.l.s8.bf16 %v534_v43  ;;  %v554_v53 = vunpack.c.h.s8.bf16 %v534_v43 }
  0x70   : > { %2662 = vmatprep.subr.bf16.mxu0 %v3015_v21  ;;  %2916 = vmatprep.subr.bf16.mxu1 %v3015_v21  ;;  %v539_v38 = vld [vmem:[%s3352_s12 + $0x40] sm:$0xff]  ;;  %v547_v39 = vunpack.c.l.s8.bf16 %v531_v37  ;;  %v549_v45 = vunpack.c.h.s8.bf16 %v531_v37  ;;  %v568_v48 = vunpack.c.l.s8.bf16 %v542_v44  ;;  %v533_v49 = vld [vmem:[%s3352_s12 + $0x10] sm:$0xff]  ;;  %v570_v54 = vunpack.c.h.s8.bf16 %v542_v44  ;;  %v536_v55 = vld [vmem:[%s3352_s12 + $0x28] sm:$0xff] }
  0x71   : > { %771 = vmatprep.mubr.bf16.mxu0 %v548_v30  ;;  %835 = vmatprep.mubr.bf16.mxu1 %v564_v31  ;;  %v563_v40 = vunpack.c.l.s8.bf16 %v539_v38  ;;  %v565_v46 = vunpack.c.h.s8.bf16 %v539_v38  ;;  %v541_v50 = vld [vmem:[%s3352_s12 + $0x50] sm:$0xff]  ;;  %v551_v51 = vunpack.c.l.s8.bf16 %v533_v49  ;;  %v544_v56 = vld [vmem:[%s3352_s12 + $0x68] sm:$0xff]  ;;  %v553_v57 = vunpack.c.h.s8.bf16 %v533_v49  ;;  %v535_v61 = vld [vmem:[%s3352_s12 + $0x20] sm:$0xff] }
  0x72   : > { %v567_v52 = vunpack.c.l.s8.bf16 %v541_v50  ;;  %v569_v58 = vunpack.c.h.s8.bf16 %v541_v50  ;;  %v556_v59 = vunpack.c.l.s8.bf16 %v536_v55  ;;  %v572_v60 = vunpack.c.l.s8.bf16 %v544_v56  ;;  %v543_v62 = vld [vmem:[%s3352_s12 + $0x60] sm:$0xff]  ;;  %v538_v3 = vld [vmem:[%s3352_s12 + $0x38] sm:$0xff]  ;;  %v537_v9 = vld [vmem:[%s3352_s12 + $0x30] sm:$0xff] }
  0x73   : > { %2663 = vmatpush3.bf16.msra.mxu0 %v3016_v22  ;;  %2924 = vmatpush3.bf16.msra.mxu1 %v3016_v22  ;;  %v555_v63 = vunpack.c.l.s8.bf16 %v535_v61  ;;  %v571_v0 = vunpack.c.l.s8.bf16 %v543_v62  ;;  %v558_v1 = vunpack.c.h.s8.bf16 %v536_v55  ;;  %v574_v2 = vunpack.c.h.s8.bf16 %v544_v56  ;;  %v546_v4 = vld [vmem:[%s3352_s12 + $0x78] sm:$0xff]  ;;  %v545_v10 = vld [vmem:[%s3352_s12 + $0x70] sm:$0xff]  ;;  %v580_v29 = vld [vmem:[#allocation2] sm:$0xff] }
  0x74   : > { %2664 = vmatprep.subr.bf16.mxu0 %v3017_v23  ;;  %2917 = vmatprep.subr.bf16.mxu1 %v3017_v23  ;;  %v557_v5 = vunpack.c.h.s8.bf16 %v535_v61  ;;  %v573_v6 = vunpack.c.h.s8.bf16 %v543_v62  ;;  %v560_v7 = vunpack.c.l.s8.bf16 %v538_v3  ;;  %v576_v8 = vunpack.c.l.s8.bf16 %v546_v4  ;;  %v579_v19 = vld [vmem:[#allocation2 + $0xb0] sm:$0xff]  ;;  %v595_v21 = vld [vmem:[#allocation2 + $0x38] sm:$0xff]  ;;  %v599_v61 = vld [vmem:[#allocation2 + $0xe0] sm:$0xff] }
  0x75   : > { %v559_v11 = vunpack.c.l.s8.bf16 %v537_v9  ;;  %v575_v12 = vunpack.c.l.s8.bf16 %v545_v10  ;;  %v562_v13 = vunpack.c.h.s8.bf16 %v538_v3  ;;  %v578_v14 = vunpack.c.h.s8.bf16 %v546_v4  ;;  %v596_v31 = vld [vmem:[#allocation2 + $0x58] sm:$0xff] }
  0x76   : > { %v561_v15 = vunpack.c.h.s8.bf16 %v537_v9  ;;  %v577_v16 = vunpack.c.h.s8.bf16 %v545_v10  ;;  %v582_v49 = vld [vmem:[#allocation2 + $0x18] sm:$0xff] }
  0x77   : > { %2665 = vmatpush3.bf16.msra.mxu0 %v3018_v24  ;;  %2925 = vmatpush3.bf16.msra.mxu1 %v3018_v24 }
  0x78   : > { %2666 = vmatprep.subr.bf16.mxu0 %v3019_v25  ;;  %2918 = vmatprep.subr.bf16.mxu1 %v3019_v25 }
  0x7b   : > { %2667 = vmatpush3.bf16.msra.mxu0 %v3020_v26  ;;  %2926 = vmatpush3.bf16.msra.mxu1 %v3020_v26 }
  0x7c   : > { %2668 = vmatprep.subr.bf16.mxu0 %v3021_v27  ;;  %2919 = vmatprep.subr.bf16.mxu1 %v3021_v27 }
  0x7f   : > { %2669 = vmatpush3.bf16.msra.mxu0 %v3022_v32  ;;  %2927 = vmatpush3.bf16.msra.mxu1 %v3022_v32 }
  0x80   : > { %2670 = vmatprep.subr.bf16.mxu0 %v3023_v33  ;;  %2920 = vmatprep.subr.bf16.mxu1 %v3023_v33 }
  0x83   : > { %2671 = vmatpush3.bf16.msra.mxu0 %v3024_v34  ;;  %2928 = vmatpush3.bf16.msra.mxu1 %v3024_v34 }
  0x84   : > { %2672 = vmatprep.subr.bf16.mxu0 %v3025_v35  ;;  %2921 = vmatprep.subr.bf16.mxu1 %v3025_v35 }
  0x87   : > { %2673 = vmatpush3.bf16.msra.mxu0 %v3026_v36  ;;  %2929 = vmatpush3.bf16.msra.mxu1 %v3026_v36 }
  0x8a   : > { %772 = vmatmul.mubr.bf16.vlgmr.msra.gmra.mxu0 %v547_v39  ;;  %836 = vmatmul.mubr.bf16.vlgmr.msra.gmra.mxu1 %v563_v40  ;;  %v581_v39 = vld [vmem:[#allocation2 + $0xd8] sm:$0xff] }
  0x8b   : > { %779 = vmatprep.mubr.bf16.mxu0 %v550_v41  ;;  %843 = vmatprep.mubr.bf16.mxu1 %v566_v42  ;;  %v597_v41 = vld [vmem:[#allocation2 + $0x40] sm:$0xff] }
  0x92   : > { %780 = vmatmul.mubr.bf16.gmra.mxu0 %v549_v45  ;;  %844 = vmatmul.mubr.bf16.gmra.mxu1 %v565_v46 }
  0x93   : > { %787 = vmatprep.mubr.bf16.mxu0 %v552_v47  ;;  %851 = vmatprep.mubr.bf16.mxu1 %v568_v48 }
  0x9a   : > { %788 = vmatmul.mubr.bf16.gmra.mxu0 %v551_v51  ;;  %852 = vmatmul.mubr.bf16.gmra.mxu1 %v567_v52  ;;  %v598_v51 = vld [vmem:[#allocation2 + $0xc8] sm:$0xff] }
  0x9b   : > { %795 = vmatprep.mubr.bf16.mxu0 %v554_v53  ;;  %859 = vmatprep.mubr.bf16.mxu1 %v570_v54 }
  0xa2   : > { %796 = vmatmul.mubr.bf16.gmra.mxu0 %v553_v57  ;;  %860 = vmatmul.mubr.bf16.gmra.mxu1 %v569_v58 }
  0xa3   : > { %803 = vmatprep.mubr.bf16.mxu0 %v556_v59  ;;  %867 = vmatprep.mubr.bf16.mxu1 %v572_v60  ;;  %v583_v59 = vld [vmem:[#allocation2 + $0x50] sm:$0xff] }
  0xaa   : > { %804 = vmatmul.mubr.bf16.gmra.mxu0 %v555_v63  ;;  %868 = vmatmul.mubr.bf16.gmra.mxu1 %v571_v0 }
  0xab   : > { %811 = vmatprep.mubr.bf16.mxu0 %v558_v1  ;;  %875 = vmatprep.mubr.bf16.mxu1 %v574_v2 }
  0xb2   : > { %812 = vmatmul.mubr.bf16.gmra.mxu0 %v557_v5  ;;  %876 = vmatmul.mubr.bf16.gmra.mxu1 %v573_v6  ;;  %v584_v5 = vld [vmem:[#allocation2 + $0x68] sm:$0xff] }
  0xb3   : > { %819 = vmatprep.mubr.bf16.mxu0 %v560_v7  ;;  %883 = vmatprep.mubr.bf16.mxu1 %v576_v8  ;;  %v600_v7 = vld [vmem:[#allocation2 + $0x90] sm:$0xff] }
  0xba   : > { %820 = vmatmul.mubr.bf16.gmra.mxu0 %v559_v11  ;;  %884 = vmatmul.mubr.bf16.gmra.mxu1 %v575_v12 }
  0xbb   : > { %827 = vmatprep.mubr.bf16.mxu0 %v562_v13  ;;  %891 = vmatprep.mubr.bf16.mxu1 %v578_v14 }
  0xc2   : > { %828 = vmatmul.mubr.bf16.gmra.mxu0 %v561_v15  ;;  %892 = vmatmul.mubr.bf16.gmra.mxu1 %v577_v16  ;;  %v585_v15 = vld [vmem:[#allocation2 + $0x30] sm:$0xff] }
 0x14a   : > { %v2674_v17 = vpop.f32.mrf.mxu0  ;;  %v2722_v18 = vpop.f32.mrf.mxu1 }
 0x14c   : > { %v2675_v20 = vpop.f32.mrf.mxu0  ;;  %v2723_v22 = vpop.f32.mrf.mxu1 }
 0x14d   : > { %v2676_v23 = vadd.f32 %v2675_v20, %v2674_v17  ;;  %v2724_v24 = vadd.f32 %v2723_v22, %v2722_v18  ;;  %v601_v17 = vld [vmem:[#allocation2 + $0x70] sm:$0xff] }
 0x14e   : > { %v2677_v25 = vpop.f32.mrf.mxu0  ;;  %v2725_v26 = vpop.f32.mrf.mxu1 }
 0x14f   : > { %v900_v27 = vadd.f32 %v2676_v23, %v579_v19  ;;  %v916_v28 = vadd.f32 %v2724_v24, %v595_v21 }
 0x150   : > { %v2678_v30 = vpop.f32.mrf.mxu0  ;;  %v2726_v32 = vpop.f32.mrf.mxu1 }
 0x151   : > { %932 = vst [vmem:[#allocation2 + $0xb0] sm:$0xff] %v900_v27  ;;  %948 = vst [vmem:[#allocation2 + $0x38] sm:$0xff] %v916_v28  ;;  %v2679_v33 = vadd.f32 %v2678_v30, %v2677_v25  ;;  %v2727_v34 = vadd.f32 %v2726_v32, %v2725_v26  ;;  %v586_v25 = vld [vmem:[#allocation2 + $0x48] sm:$0xff]  ;;  %v602_v27 = vld [vmem:[#allocation2 + $0xc0] sm:$0xff] }
 0x152   : > { %v2680_v35 = vpop.f32.mrf.mxu0  ;;  %v2728_v36 = vpop.f32.mrf.mxu1 }
 0x153   : > { %v901_v37 = vadd.f32 %v2679_v33, %v580_v29  ;;  %v917_v38 = vadd.f32 %v2727_v34, %v596_v31 }
 0x154   : > { %v2681_v40 = vpop.f32.mrf.mxu0  ;;  %v2729_v42 = vpop.f32.mrf.mxu1 }
 0x155   : > { %933 = vst [vmem:[#allocation2] sm:$0xff] %v901_v37  ;;  %949 = vst [vmem:[#allocation2 + $0x58] sm:$0xff] %v917_v38  ;;  %v2682_v43 = vadd.f32 %v2681_v40, %v2680_v35  ;;  %v2730_v44 = vadd.f32 %v2729_v42, %v2728_v36  ;;  %v587_v35 = vld [vmem:[#allocation2 + $0x80] sm:$0xff]  ;;  %v603_v37 = vld [vmem:[#allocation2 + $0xa8] sm:$0xff] }
 0x156   : > { %v2683_v45 = vpop.f32.mrf.mxu0  ;;  %v2731_v46 = vpop.f32.mrf.mxu1 }
 0x157   : > { %v902_v47 = vadd.f32 %v2682_v43, %v581_v39  ;;  %v918_v48 = vadd.f32 %v2730_v44, %v597_v41 }
 0x158   : > { %v2684_v50 = vpop.f32.mrf.mxu0  ;;  %v2732_v52 = vpop.f32.mrf.mxu1 }
 0x159   : > { %934 = vst [vmem:[#allocation2 + $0xd8] sm:$0xff] %v902_v47  ;;  %950 = vst [vmem:[#allocation2 + $0x40] sm:$0xff] %v918_v48  ;;  %v2685_v53 = vadd.f32 %v2684_v50, %v2683_v45  ;;  %v2733_v54 = vadd.f32 %v2732_v52, %v2731_v46  ;;  %v588_v45 = vld [vmem:[#allocation2 + $0x88] sm:$0xff]  ;;  %v604_v47 = vld [vmem:[#allocation2 + $0xd0] sm:$0xff] }
 0x15a   : > { %v2686_v55 = vpop.f32.mrf.mxu0  ;;  %v2734_v56 = vpop.f32.mrf.mxu1 }
 0x15b   : > { %v903_v57 = vadd.f32 %v2685_v53, %v582_v49  ;;  %v919_v58 = vadd.f32 %v2733_v54, %v598_v51 }
 0x15c   : > { %v2687_v60 = vpop.f32.mrf.mxu0  ;;  %v2735_v62 = vpop.f32.mrf.mxu1 }
 0x15d   : > { %935 = vst [vmem:[#allocation2 + $0x18] sm:$0xff] %v903_v57  ;;  %951 = vst [vmem:[#allocation2 + $0xc8] sm:$0xff] %v919_v58  ;;  %v2688_v63 = vadd.f32 %v2687_v60, %v2686_v55  ;;  %v2736_v0 = vadd.f32 %v2735_v62, %v2734_v56  ;;  %v589_v55 = vld [vmem:[#allocation2 + $0xe8] sm:$0xff]  ;;  %v605_v57 = vld [vmem:[#allocation2 + $0x10] sm:$0xff] }
 0x15e   : > { %v2689_v1 = vpop.f32.mrf.mxu0  ;;  %v2737_v2 = vpop.f32.mrf.mxu1 }
 0x15f   : > { %v904_v3 = vadd.f32 %v2688_v63, %v583_v59  ;;  %v920_v4 = vadd.f32 %v2736_v0, %v599_v61 }
 0x160   : > { %v2690_v6 = vpop.f32.mrf.mxu0  ;;  %v2738_v8 = vpop.f32.mrf.mxu1 }
 0x161   : > { %936 = vst [vmem:[#allocation2 + $0x50] sm:$0xff] %v904_v3  ;;  %952 = vst [vmem:[#allocation2 + $0xe0] sm:$0xff] %v920_v4  ;;  %v2691_v9 = vadd.f32 %v2690_v6, %v2689_v1  ;;  %v2739_v10 = vadd.f32 %v2738_v8, %v2737_v2  ;;  %v590_v1 = vld [vmem:[#allocation2 + $0xb8] sm:$0xff]  ;;  %v606_v3 = vld [vmem:[#allocation2 + $0x28] sm:$0xff] }
 0x162   : > { %v2692_v11 = vpop.f32.mrf.mxu0  ;;  %v2740_v12 = vpop.f32.mrf.mxu1 }
 0x163   : > { %v905_v13 = vadd.f32 %v2691_v9, %v584_v5  ;;  %v921_v14 = vadd.f32 %v2739_v10, %v600_v7 }
 0x164   : > { %v2693_v16 = vpop.f32.mrf.mxu0  ;;  %v2741_v18 = vpop.f32.mrf.mxu1 }
 0x165   : > { %937 = vst [vmem:[#allocation2 + $0x68] sm:$0xff] %v905_v13  ;;  %953 = vst [vmem:[#allocation2 + $0x90] sm:$0xff] %v921_v14  ;;  %v2694_v19 = vadd.f32 %v2693_v16, %v2692_v11  ;;  %v2742_v20 = vadd.f32 %v2741_v18, %v2740_v12  ;;  %v591_v11 = vld [vmem:[#allocation2 + $0x60] sm:$0xff] }
 0x166   : > { %v2695_v21 = vpop.f32.mrf.mxu0  ;;  %v2743_v22 = vpop.f32.mrf.mxu1  ;;  %v607_v13 = vld [vmem:[#allocation2 + $0xa0] sm:$0xff] }
 0x167   : > { %v906_v23 = vadd.f32 %v2694_v19, %v585_v15  ;;  %v922_v24 = vadd.f32 %v2742_v20, %v601_v17 }
 0x168   : > { %v2696_v26 = vpop.f32.mrf.mxu0  ;;  %v2744_v28 = vpop.f32.mrf.mxu1 }
 0x169   : > { %938 = vst [vmem:[#allocation2 + $0x30] sm:$0xff] %v906_v23  ;;  %954 = vst [vmem:[#allocation2 + $0x70] sm:$0xff] %v922_v24  ;;  %v2697_v29 = vadd.f32 %v2696_v26, %v2695_v21  ;;  %v2745_v30 = vadd.f32 %v2744_v28, %v2743_v22  ;;  %v592_v21 = vld [vmem:[#allocation2 + $0xf0] sm:$0xff]  ;;  %v608_v23 = vld [vmem:[#allocation2 + $0xf8] sm:$0xff] }
 0x16a   : > { %v2698_v31 = vpop.f32.mrf.mxu0  ;;  %v2746_v32 = vpop.f32.mrf.mxu1 }
 0x16b   : > { %v907_v33 = vadd.f32 %v2697_v29, %v586_v25  ;;  %v923_v34 = vadd.f32 %v2745_v30, %v602_v27 }
 0x16c   : > { %v2699_v36 = vpop.f32.mrf.mxu0  ;;  %v2747_v38 = vpop.f32.mrf.mxu1 }
 0x16d   : > { %939 = vst [vmem:[#allocation2 + $0x48] sm:$0xff] %v907_v33  ;;  %955 = vst [vmem:[#allocation2 + $0xc0] sm:$0xff] %v923_v34  ;;  %v2700_v39 = vadd.f32 %v2699_v36, %v2698_v31  ;;  %v2748_v40 = vadd.f32 %v2747_v38, %v2746_v32  ;;  %v593_v31 = vld [vmem:[#allocation2 + $0x8] sm:$0xff]  ;;  %v609_v33 = vld [vmem:[#allocation2 + $0x20] sm:$0xff] }
 0x16e   : > { %v2701_v41 = vpop.f32.mrf.mxu0  ;;  %v2749_v42 = vpop.f32.mrf.mxu1 }
 0x16f   : > { %v908_v43 = vadd.f32 %v2700_v39, %v587_v35  ;;  %v924_v44 = vadd.f32 %v2748_v40, %v603_v37 }
 0x170   : > { %v2702_v46 = vpop.f32.mrf.mxu0  ;;  %v2750_v48 = vpop.f32.mrf.mxu1 }
 0x171   : > { %940 = vst [vmem:[#allocation2 + $0x80] sm:$0xff] %v908_v43  ;;  %956 = vst [vmem:[#allocation2 + $0xa8] sm:$0xff] %v924_v44  ;;  %v2703_v49 = vadd.f32 %v2702_v46, %v2701_v41  ;;  %v2751_v50 = vadd.f32 %v2750_v48, %v2749_v42  ;;  %v594_v41 = vld [vmem:[#allocation2 + $0x78] sm:$0xff] }
 0x172   : > { %v2704_v51 = vpop.f32.mrf.mxu0  ;;  %v2752_v52 = vpop.f32.mrf.mxu1  ;;  %v610_v43 = vld [vmem:[#allocation2 + $0x98] sm:$0xff] }
 0x173   : > { %v909_v53 = vadd.f32 %v2703_v49, %v588_v45  ;;  %v925_v54 = vadd.f32 %v2751_v50, %v604_v47 }
 0x174   : > { %v2705_v56 = vpop.f32.mrf.mxu0  ;;  %v2753_v58 = vpop.f32.mrf.mxu1 }
 0x175   : > { %941 = vst [vmem:[#allocation2 + $0x88] sm:$0xff] %v909_v53  ;;  %957 = vst [vmem:[#allocation2 + $0xd0] sm:$0xff] %v925_v54  ;;  %v2706_v59 = vadd.f32 %v2705_v56, %v2704_v51  ;;  %v2754_v60 = vadd.f32 %v2753_v58, %v2752_v52 }
 0x176   : > { %v2707_v61 = vpop.f32.mrf.mxu0  ;;  %v2755_v62 = vpop.f32.mrf.mxu1 }
 0x177   : > { %v910_v63 = vadd.f32 %v2706_v59, %v589_v55  ;;  %v926_v0 = vadd.f32 %v2754_v60, %v605_v57 }
 0x178   : > { %v2708_v2 = vpop.f32.mrf.mxu0  ;;  %v2756_v4 = vpop.f32.mrf.mxu1 }
 0x179   : > { %942 = vst [vmem:[#allocation2 + $0xe8] sm:$0xff] %v910_v63  ;;  %958 = vst [vmem:[#allocation2 + $0x10] sm:$0xff] %v926_v0  ;;  %v2709_v5 = vadd.f32 %v2708_v2, %v2707_v61  ;;  %v2757_v6 = vadd.f32 %v2756_v4, %v2755_v62 }
 0x17a   : > { %v2710_v7 = vpop.f32.mrf.mxu0  ;;  %v2758_v8 = vpop.f32.mrf.mxu1 }
 0x17b   : > { %v911_v9 = vadd.f32 %v2709_v5, %v590_v1  ;;  %v927_v10 = vadd.f32 %v2757_v6, %v606_v3 }
 0x17c   : > { %v2711_v12 = vpop.f32.mrf.mxu0  ;;  %v2759_v14 = vpop.f32.mrf.mxu1 }
 0x17d   : > { %943 = vst [vmem:[#allocation2 + $0xb8] sm:$0xff] %v911_v9  ;;  %959 = vst [vmem:[#allocation2 + $0x28] sm:$0xff] %v927_v10  ;;  %v2712_v15 = vadd.f32 %v2711_v12, %v2710_v7  ;;  %v2760_v16 = vadd.f32 %v2759_v14, %v2758_v8 }
 0x17e   : > { %v2713_v17 = vpop.f32.mrf.mxu0  ;;  %v2761_v18 = vpop.f32.mrf.mxu1 }
 0x17f   : > { %v912_v19 = vadd.f32 %v2712_v15, %v591_v11  ;;  %v928_v20 = vadd.f32 %v2760_v16, %v607_v13 }
 0x180   : > { %v2714_v22 = vpop.f32.mrf.mxu0  ;;  %v2762_v24 = vpop.f32.mrf.mxu1 }
 0x181   : > { %944 = vst [vmem:[#allocation2 + $0x60] sm:$0xff] %v912_v19  ;;  %960 = vst [vmem:[#allocation2 + $0xa0] sm:$0xff] %v928_v20  ;;  %v2715_v25 = vadd.f32 %v2714_v22, %v2713_v17  ;;  %v2763_v26 = vadd.f32 %v2762_v24, %v2761_v18 }
 0x182   : > { %v2716_v27 = vpop.f32.mrf.mxu0  ;;  %v2764_v28 = vpop.f32.mrf.mxu1 }
 0x183   : > { %v913_v29 = vadd.f32 %v2715_v25, %v592_v21  ;;  %v929_v30 = vadd.f32 %v2763_v26, %v608_v23 }
 0x184   : > { %v2717_v32 = vpop.f32.mrf.mxu0  ;;  %v2765_v34 = vpop.f32.mrf.mxu1 }
 0x185   : > { %945 = vst [vmem:[#allocation2 + $0xf0] sm:$0xff] %v913_v29  ;;  %961 = vst [vmem:[#allocation2 + $0xf8] sm:$0xff] %v929_v30  ;;  %v2718_v35 = vadd.f32 %v2717_v32, %v2716_v27  ;;  %v2766_v36 = vadd.f32 %v2765_v34, %v2764_v28 }
 0x186   : > { %v2719_v37 = vpop.f32.mrf.mxu0  ;;  %v2767_v38 = vpop.f32.mrf.mxu1 }
 0x187   : > { %v914_v39 = vadd.f32 %v2718_v35, %v593_v31  ;;  %v930_v40 = vadd.f32 %v2766_v36, %v609_v33 }
 0x188   : > { %v2720_v42 = vpop.f32.mrf.mxu0  ;;  %v2768_v44 = vpop.f32.mrf.mxu1 }
 0x189   : > { %946 = vst [vmem:[#allocation2 + $0x8] sm:$0xff] %v914_v39  ;;  %962 = vst [vmem:[#allocation2 + $0x20] sm:$0xff] %v930_v40  ;;  %v2721_v45 = vadd.f32 %v2720_v42, %v2719_v37  ;;  %v2769_v46 = vadd.f32 %v2768_v44, %v2767_v38  ;;  %967 = sbr.rel (%p2462_p11) target bundleno = 799 (0x31f), region = 91 }
 0x18b   : > { %v915_v47 = vadd.f32 %v2721_v45, %v594_v41  ;;  %v931_v48 = vadd.f32 %v2769_v46, %v610_v43 }
 0x18d   : > { %947 = vst [vmem:[#allocation2 + $0x78] sm:$0xff] %v915_v47  ;;  %963 = vst [vmem:[#allocation2 + $0x98] sm:$0xff] %v931_v48 }
 0x18e   : > { %v970_v49 = vld [vmem:[%s3372_s20 + $0x10] sm:$0xff]  ;;  %v968_v50 = vld [vmem:[%s3372_s20] sm:$0xff]  ;;  %v3182_v51 = vmov 0   ;;  %v971_v52 = vld [vmem:[%s3372_s20 + $0x18] sm:$0xff] }
 0x18f   : > { %3028 = vset.pattern.permute.xlu1 %v3182_v51  ;;  %3027 = vset.pattern.permute.xlu0 %v3182_v51  ;;  %v969_v53 = vld [vmem:[%s3372_s20 + $0x8] sm:$0xff]  ;;  %v972_v55 = vld [vmem:[%s3372_s20 + $0x20] sm:$0xff]  ;;  %v975_v56 = vld [vmem:[%s3372_s20 + $0x38] sm:$0xff] }
 0x190   : > { %1044 = vperm.xlu1 %3028, %v970_v49   ;;  %1034 = vperm.xlu0 %3027, %v968_v50   ;;  %v973_v54 = vld [vmem:[%s3372_s20 + $0x28] sm:$0xff]  ;;  %v974_v57 = vld [vmem:[%s3372_s20 + $0x30] sm:$0xff]  ;;  %v976_v59 = vld [vmem:[%s3372_s20 + $0x40] sm:$0xff] }
 0x191   : > { %v977_v58 = vld [vmem:[%s3372_s20 + $0x48] sm:$0xff]  ;;  %v3029_v60 = vld [vmem:[#allocation6 + $0x38] sm:$0xff]   ;;  %v3030_v62 = vld [vmem:[#allocation6 + $0x30] sm:$0xff]  }
 0x192   : > { %v979_v61 = vld [vmem:[%s3372_s20 + $0x58] sm:$0xff]  ;;  %v978_v63 = vld [vmem:[%s3372_s20 + $0x50] sm:$0xff]  ;;  %2818 = vmatprep.subr.bf16.mxu0 %v3029_v60  ;;  %v981_v1 = vld [vmem:[%s3372_s20 + $0x68] sm:$0xff] }
 0x193   : > { %2819 = vmatpush3.bf16.msra.mxu0 %v3029_v60  ;;  %v3031_v0 = vld [vmem:[#allocation4 + $0x38] sm:$0xff]   ;;  %v3032_v2 = vld [vmem:[#allocation6 + $0x28] sm:$0xff]   ;;  %v3033_v3 = vld [vmem:[#allocation4 + $0x30] sm:$0xff]  }
 0x194   : > { %1049 = vperm.xlu1 %3028, %v971_v52   ;;  %1039 = vperm.xlu0 %3027, %v969_v53   ;;  %v980_v4 = vld [vmem:[%s3372_s20 + $0x60] sm:$0xff]  ;;  %v3035_v6 = vld [vmem:[#allocation4 + $0x28] sm:$0xff]   ;;  %v983_v7 = vld [vmem:[%s3372_s20 + $0x78] sm:$0xff] }
 0x195   : > { %2820 = vmatprep.subr.bf16.mxu0 %v3030_v62  ;;  %2866 = vmatprep.subr.bf16.mxu1 %v3031_v0  ;;  %v3034_v5 = vld [vmem:[#allocation6 + $0x20] sm:$0xff]   ;;  %v982_v8 = vld [vmem:[%s3372_s20 + $0x70] sm:$0xff]  ;;  %v3036_v9 = vld [vmem:[#allocation6 + $0x18] sm:$0xff]  }
 0x196   : > { %2867 = vmatpush3.bf16.msra.mxu1 %v3031_v0  ;;  %v3037_v10 = vld [vmem:[#allocation4 + $0x20] sm:$0xff]   ;;  %v985_v11 = vld [vmem:[%s3372_s20 + $0x88] sm:$0xff]  ;;  %v3038_v13 = vld [vmem:[#allocation6 + $0x10] sm:$0xff]  }
 0x197   : > { %2821 = vmatpush3.bf16.msra.mxu0 %v3030_v62  ;;  %2868 = vmatprep.subr.bf16.mxu1 %v3033_v3  ;;  %v984_v12 = vld [vmem:[%s3372_s20 + $0x80] sm:$0xff]  ;;  %v3039_v14 = vld [vmem:[#allocation4 + $0x18] sm:$0xff]   ;;  %v986_v16 = vld [vmem:[%s3372_s20 + $0x90] sm:$0xff] }
 0x198   : > { %1059 = vperm.xlu1 %3028, %v973_v54   ;;  %1054 = vperm.xlu0 %3027, %v972_v55   ;;  %v987_v15 = vld [vmem:[%s3372_s20 + $0x98] sm:$0xff]  ;;  %v3040_v17 = vld [vmem:[#allocation6 + $0x8] sm:$0xff]   ;;  %v3041_v18 = vld [vmem:[#allocation4 + $0x10] sm:$0xff]  }
 0x199   : > { %2822 = vmatprep.subr.bf16.mxu0 %v3032_v2  ;;  %v3044_v19 = vld [vmem:[%s3377_s30] sm:$0xff]   ;;  %v989_v20 = vld [vmem:[%s3372_s20 + $0xa8] sm:$0xff]  ;;  %v991_v24 = vld [vmem:[%s3372_s20 + $0xb8] sm:$0xff] }
 0x19a   : > { %2869 = vmatpush3.bf16.msra.mxu1 %v3033_v3  ;;  %v988_v21 = vld [vmem:[%s3372_s20 + $0xa0] sm:$0xff]  ;;  %2834 = vmatprep.mubr.bf16.mxu0 %v3044_v19  ;;  %v3043_v23 = vld [vmem:[#allocation4 + $0x8] sm:$0xff]   ;;  %v990_v25 = vld [vmem:[%s3372_s20 + $0xb0] sm:$0xff] }
 0x19b   : > { %2823 = vmatpush3.bf16.msra.mxu0 %v3032_v2  ;;  %2870 = vmatprep.subr.bf16.mxu1 %v3035_v6  ;;  %v3042_v22 = vld [vmem:[#allocation6] sm:$0xff]   ;;  %v993_v27 = vld [vmem:[%s3372_s20 + $0xc8] sm:$0xff]  ;;  %v3047_v30 = vld [vmem:[%s3377_s30 + $0x10] sm:$0xff]  }
 0x19c   : > { %1069 = vperm.xlu1 %3028, %v975_v56   ;;  %1064 = vperm.xlu0 %3027, %v974_v57   ;;  %v3046_v26 = vld [vmem:[#allocation4] sm:$0xff]   ;;  %v3045_v29 = vld [vmem:[%s3377_s30 + $0x8] sm:$0xff]   ;;  %v995_v31 = vld [vmem:[%s3372_s20 + $0xd8] sm:$0xff] }
 0x19d   : > { %2824 = vmatprep.subr.bf16.mxu0 %v3034_v5  ;;  %v992_v28 = vld [vmem:[%s3372_s20 + $0xc0] sm:$0xff]  ;;  %v994_v32 = vld [vmem:[%s3372_s20 + $0xd0] sm:$0xff]  ;;  %v997_v33 = vld [vmem:[%s3372_s20 + $0xe8] sm:$0xff] }
 0x19e   : > { %2871 = vmatpush3.bf16.msra.mxu1 %v3035_v6  ;;  %v996_v34 = vld [vmem:[%s3372_s20 + $0xe0] sm:$0xff]  ;;  %v3048_v35 = vld [vmem:[%s3377_s30 + $0x18] sm:$0xff]   ;;  %v998_v38 = vld [vmem:[%s3372_s20 + $0xf0] sm:$0xff] }
 0x19f   : > { %2825 = vmatpush3.bf16.msra.mxu0 %v3034_v5  ;;  %2872 = vmatprep.subr.bf16.mxu1 %v3037_v10  ;;  %v3049_v36 = vld [vmem:[%s3377_s30 + $0x20] sm:$0xff]   ;;  %v999_v37 = vld [vmem:[%s3372_s20 + $0xf8] sm:$0xff]  ;;  %v1858_v39 = vld [vmem:[%s3382_s25 + $0x8] sm:$0xff] }
 0x1a0   : > { %1079 = vperm.xlu1 %3028, %v977_v58   ;;  %1074 = vperm.xlu0 %3027, %v976_v59   ;;  %v1857_v40 = vld [vmem:[%s3382_s25] sm:$0xff]  ;;  %v3050_v41 = vld [vmem:[%s3377_s30 + $0x28] sm:$0xff]   ;;  %v3051_v42 = vld [vmem:[%s3377_s30 + $0x30] sm:$0xff]  }
 0x1a1   : > { %2826 = vmatprep.subr.bf16.mxu0 %v3036_v9  ;;  %v1860_v43 = vld [vmem:[%s3382_s25 + $0x18] sm:$0xff]  ;;  %v1859_v44 = vld [vmem:[%s3382_s25 + $0x10] sm:$0xff]  ;;  %v1862_v45 = vld [vmem:[%s3382_s25 + $0x28] sm:$0xff] }
 0x1a2   : > { %2873 = vmatpush3.bf16.msra.mxu1 %v3037_v10  ;;  %v1861_v46 = vld [vmem:[%s3382_s25 + $0x20] sm:$0xff]  ;;  %v3052_v47 = vld [vmem:[%s3377_s30 + $0x38] sm:$0xff]   ;;  %v1863_v50 = vld [vmem:[%s3382_s25 + $0x30] sm:$0xff] }
 0x1a3   : > { %2827 = vmatpush3.bf16.msra.mxu0 %v3036_v9  ;;  %2874 = vmatprep.subr.bf16.mxu1 %v3039_v14  ;;  %v3053_v48 = vld [vmem:[%s3377_s30 + $0x40] sm:$0xff]   ;;  %v1864_v49 = vld [vmem:[%s3382_s25 + $0x38] sm:$0xff]  ;;  %v1866_v51 = vld [vmem:[%s3382_s25 + $0x48] sm:$0xff] }
 0x1a4   : > { %1089 = vperm.xlu1 %3028, %v979_v61   ;;  %1084 = vperm.xlu0 %3027, %v978_v63   ;;  %v1865_v52 = vld [vmem:[%s3382_s25 + $0x40] sm:$0xff]  ;;  %v3054_v53 = vld [vmem:[%s3377_s30 + $0x48] sm:$0xff]   ;;  %v3055_v54 = vld [vmem:[%s3377_s30 + $0x50] sm:$0xff]  }
 0x1a5   : > { %2828 = vmatprep.subr.bf16.mxu0 %v3038_v13  ;;  %v1868_v55 = vld [vmem:[%s3382_s25 + $0x58] sm:$0xff]  ;;  %v1867_v56 = vld [vmem:[%s3382_s25 + $0x50] sm:$0xff]  ;;  %v1870_v57 = vld [vmem:[%s3382_s25 + $0x68] sm:$0xff] }
 0x1a6   : > { %2875 = vmatpush3.bf16.msra.mxu1 %v3039_v14  ;;  %v1869_v58 = vld [vmem:[%s3382_s25 + $0x60] sm:$0xff]  ;;  %v3056_v59 = vld [vmem:[%s3377_s30 + $0x58] sm:$0xff]   ;;  %v1871_v62 = vld [vmem:[%s3382_s25 + $0x70] sm:$0xff] }
 0x1a7   : > { %2829 = vmatpush3.bf16.msra.mxu0 %v3038_v13  ;;  %2876 = vmatprep.subr.bf16.mxu1 %v3041_v18  ;;  %v3057_v60 = vld [vmem:[%s3377_s30 + $0x60] sm:$0xff]   ;;  %v1872_v61 = vld [vmem:[%s3382_s25 + $0x78] sm:$0xff]  ;;  %v1874_v63 = vld [vmem:[%s3382_s25 + $0x88] sm:$0xff] }
 0x1a8   : > { %1099 = vperm.xlu1 %3028, %v981_v1   ;;  %1094 = vperm.xlu0 %3027, %v980_v4   ;;  %v1873_v0 = vld [vmem:[%s3382_s25 + $0x80] sm:$0xff]  ;;  %v3058_v1 = vld [vmem:[%s3377_s30 + $0x68] sm:$0xff]   ;;  %v3059_v2 = vld [vmem:[%s3377_s30 + $0x70] sm:$0xff]  }
 0x1a9   : > { %2830 = vmatprep.subr.bf16.mxu0 %v3040_v17  ;;  %v1876_v3 = vld [vmem:[%s3382_s25 + $0x98] sm:$0xff]  ;;  %v1875_v4 = vld [vmem:[%s3382_s25 + $0x90] sm:$0xff]  ;;  %v1878_v5 = vld [vmem:[%s3382_s25 + $0xa8] sm:$0xff] }
 0x1aa   : > { %2877 = vmatpush3.bf16.msra.mxu1 %v3041_v18  ;;  %v1877_v6 = vld [vmem:[%s3382_s25 + $0xa0] sm:$0xff]  ;;  %v1879_v9 = vld [vmem:[%s3382_s25 + $0xb0] sm:$0xff]  ;;  %v1882_v10 = vld [vmem:[%s3382_s25 + $0xc8] sm:$0xff] }
 0x1ab   : > { %2831 = vmatpush3.bf16.msra.mxu0 %v3040_v17  ;;  %2878 = vmatprep.subr.bf16.mxu1 %v3043_v23  ;;  %v1883_v13 = vld [vmem:[%s3382_s25 + $0xd0] sm:$0xff]  ;;  %v1886_v14 = vld [vmem:[%s3382_s25 + $0xe8] sm:$0xff] }
 0x1ac   : > { %1109 = vperm.xlu1 %3028, %v983_v7   ;;  %1104 = vperm.xlu0 %3027, %v982_v8   ;;  %v3060_v7 = vld [vmem:[%s3377_s30 + $0x78] sm:$0xff]   ;;  %v1887_v17 = vld [vmem:[%s3382_s25 + $0xf0] sm:$0xff] }
 0x1ad   : > { %2832 = vmatprep.subr.bf16.mxu0 %v3042_v22  ;;  %v1880_v8 = vld [vmem:[%s3382_s25 + $0xb8] sm:$0xff] }
 0x1ae   : > { %2879 = vmatpush3.bf16.msra.mxu1 %v3043_v23  ;;  %v1001_v23 = vld [vmem:[#allocation2] sm:$0xff] }
 0x1af   : > { %2833 = vmatpush3.bf16.msra.mxu0 %v3042_v22  ;;  %2880 = vmatprep.subr.bf16.mxu1 %v3046_v26  ;;  %v1003_v22 = vld [vmem:[#allocation2 + $0x18] sm:$0xff] }
 0x1b0   : > { %1119 = vperm.xlu1 %3028, %v985_v11   ;;  %1114 = vperm.xlu0 %3027, %v984_v12   ;;  %v1881_v11 = vld [vmem:[%s3382_s25 + $0xc0] sm:$0xff]  ;;  %v1884_v12 = vld [vmem:[%s3382_s25 + $0xd8] sm:$0xff] }
 0x1b2   : > { %2835 = vmatmul.mubr.bf16.vlgmr.msra.gmra.mxu0 %v3045_v29  ;;  %2881 = vmatpush3.bf16.msra.mxu1 %v3046_v26 }
 0x1b3   : > { %2838 = vmatprep.mubr.bf16.mxu0 %v3047_v30  ;;  %v1005_v30 = vld [vmem:[#allocation2 + $0x68] sm:$0xff] }
 0x1b4   : > { %1129 = vperm.xlu1 %3028, %v987_v15   ;;  %1124 = vperm.xlu0 %3027, %v986_v16   ;;  %v1885_v15 = vld [vmem:[%s3382_s25 + $0xe0] sm:$0xff]  ;;  %v1888_v16 = vld [vmem:[%s3382_s25 + $0xf8] sm:$0xff] }
 0x1b8   : > { %1139 = vperm.xlu1 %3028, %v989_v20   ;;  %1134 = vperm.xlu0 %3027, %v988_v21   ;;  %v1002_v20 = vld [vmem:[#allocation2 + $0xd8] sm:$0xff]  ;;  %v1000_v21 = vld [vmem:[#allocation2 + $0xb0] sm:$0xff] }
 0x1ba   : > { %2839 = vmatmul.mubr.bf16.gmra.mxu0 %v3048_v35 }
 0x1bb   : > { %2842 = vmatprep.mubr.bf16.mxu0 %v3049_v36 }
 0x1bc   : > { %1149 = vperm.xlu1 %3028, %v991_v24   ;;  %1144 = vperm.xlu0 %3027, %v990_v25  }
 0x1c0   : > { %1159 = vperm.xlu1 %3028, %v993_v27   ;;  %1154 = vperm.xlu0 %3027, %v992_v28  }
 0x1c2   : > { %2843 = vmatmul.mubr.bf16.gmra.mxu0 %v3050_v41 }
 0x1c3   : > { %2846 = vmatprep.mubr.bf16.mxu0 %v3051_v42 }
 0x1c4   : > { %1169 = vperm.xlu1 %3028, %v995_v31   ;;  %1164 = vperm.xlu0 %3027, %v994_v32   ;;  %v1004_v31 = vld [vmem:[#allocation2 + $0x50] sm:$0xff] }
 0x1c8   : > { %1179 = vperm.xlu1 %3028, %v997_v33   ;;  %1174 = vperm.xlu0 %3027, %v996_v34  }
 0x1ca   : > { %2847 = vmatmul.mubr.bf16.gmra.mxu0 %v3052_v47 }
 0x1cb   : > { %2850 = vmatprep.mubr.bf16.mxu0 %v3053_v48 }
 0x1cc   : > { %1189 = vperm.xlu1 %3028, %v999_v37   ;;  %1184 = vperm.xlu0 %3027, %v998_v38   ;;  %v1007_v38 = vld [vmem:[#allocation2 + $0x48] sm:$0xff] }
 0x1d0   : > { %1928 = vperm.xlu1 %3028, %v1858_v39   ;;  %1923 = vperm.xlu0 %3027, %v1857_v40   ;;  %v1006_v39 = vld [vmem:[#allocation2 + $0x30] sm:$0xff] }
 0x1d2   : > { %2851 = vmatmul.mubr.bf16.gmra.mxu0 %v3054_v53  ;;  %v1010_v53 = vld [vmem:[#allocation2 + $0xe8] sm:$0xff] }
 0x1d3   : > { %2854 = vmatprep.mubr.bf16.mxu0 %v3055_v54 }
 0x1d4   : > { %1938 = vperm.xlu1 %3028, %v1860_v43   ;;  %1933 = vperm.xlu0 %3027, %v1859_v44  }
 0x1d8   : > { %1948 = vperm.xlu1 %3028, %v1862_v45   ;;  %1943 = vperm.xlu0 %3027, %v1861_v46   ;;  %v1009_v45 = vld [vmem:[#allocation2 + $0x88] sm:$0xff]  ;;  %v1008_v46 = vld [vmem:[#allocation2 + $0x80] sm:$0xff] }
 0x1da   : > { %2855 = vmatmul.mubr.bf16.gmra.mxu0 %v3056_v59  ;;  %v1013_v59 = vld [vmem:[#allocation2 + $0xf0] sm:$0xff] }
 0x1db   : > { %2858 = vmatprep.mubr.bf16.mxu0 %v3057_v60  ;;  %v1012_v60 = vld [vmem:[#allocation2 + $0x60] sm:$0xff] }
 0x1dc   : > { %1958 = vperm.xlu1 %3028, %v1864_v49   ;;  %1953 = vperm.xlu0 %3027, %v1863_v50  }
 0x1e0   : > { %1968 = vperm.xlu1 %3028, %v1866_v51   ;;  %1963 = vperm.xlu0 %3027, %v1865_v52   ;;  %v1011_v52 = vld [vmem:[#allocation2 + $0xb8] sm:$0xff] }
 0x1e2   : > { %2859 = vmatmul.mubr.bf16.gmra.mxu0 %v3058_v1 }
 0x1e3   : > { %2862 = vmatprep.mubr.bf16.mxu0 %v3059_v2  ;;  %v1015_v2 = vld [vmem:[#allocation2 + $0x78] sm:$0xff] }
 0x1e4   : > { %1978 = vperm.xlu1 %3028, %v1868_v55   ;;  %1973 = vperm.xlu0 %3027, %v1867_v56  }
 0x1e8   : > { %1988 = vperm.xlu1 %3028, %v1870_v57   ;;  %1983 = vperm.xlu0 %3027, %v1869_v58  }
 0x1ea   : > { %2863 = vmatmul.mubr.bf16.gmra.mxu0 %v3060_v7 }
 0x1ec   : > { %1998 = vperm.xlu1 %3028, %v1872_v61   ;;  %1993 = vperm.xlu0 %3027, %v1871_v62  }
 0x1f0   : > { %2008 = vperm.xlu1 %3028, %v1874_v63   ;;  %2003 = vperm.xlu0 %3027, %v1873_v0  }
 0x1f4   : > { %2018 = vperm.xlu1 %3028, %v1876_v3   ;;  %2013 = vperm.xlu0 %3027, %v1875_v4   ;;  %v1014_v3 = vld [vmem:[#allocation2 + $0x8] sm:$0xff] }
 0x1f8   : > { %2028 = vperm.xlu1 %3028, %v1878_v5   ;;  %2023 = vperm.xlu0 %3027, %v1877_v6  }
 0x1fc   : > { %2038 = vperm.xlu1 %3028, %v1880_v8   ;;  %2033 = vperm.xlu0 %3027, %v1879_v9   ;;  %v1017_v9 = vld [vmem:[#allocation2 + $0x58] sm:$0xff] }
 0x200   : > { %2048 = vperm.xlu1 %3028, %v1882_v10   ;;  %2043 = vperm.xlu0 %3027, %v1881_v11   ;;  %v1016_v10 = vld [vmem:[#allocation2 + $0x38] sm:$0xff] }
 0x204   : > { %2058 = vperm.xlu1 %3028, %v1884_v12   ;;  %2053 = vperm.xlu0 %3027, %v1883_v13  }
 0x208   : > { %2068 = vperm.xlu1 %3028, %v1886_v14   ;;  %2063 = vperm.xlu0 %3027, %v1885_v15  }
 0x20b   : > { %v1045_v18 = vpop.permute.xlu1 %1044  ;;  %v1035_v19 = vpop.permute.xlu0 %1034 }
 0x20c   : > { %2078 = vperm.xlu1 %3028, %v1888_v16   ;;  %2073 = vperm.xlu0 %3027, %v1887_v17   ;;  %v1194_v26 = vmul.f32 %v1045_v18, %v1002_v20  ;;  %v1192_v27 = vmul.f32 %v1035_v19, %v1000_v21  ;;  %v1019_v16 = vld [vmem:[#allocation2 + $0xc8] sm:$0xff]  ;;  %v1018_v17 = vld [vmem:[#allocation2 + $0x40] sm:$0xff] }
 0x20f   : > { %v1050_v24 = vpop.permute.xlu1 %1049  ;;  %v1040_v25 = vpop.permute.xlu0 %1039 }
 0x210   : > { %v1195_v28 = vmul.f32 %v1050_v24, %v1003_v22  ;;  %v1193_v29 = vmul.f32 %v1040_v25, %v1001_v23  ;;  %v1021_v23 = vld [vmem:[#allocation2 + $0x90] sm:$0xff]  ;;  %v1020_v24 = vld [vmem:[#allocation2 + $0xe0] sm:$0xff] }
 0x212   : > { %v1225_v32 = vpack.c.bf16 %v1195_v28, %v1194_v26  ;;  %v1224_v33 = vpack.c.bf16 %v1193_v29, %v1192_v27 }
 0x213   : > { %v1060_v34 = vpop.permute.xlu1 %1059  ;;  %v1055_v35 = vpop.permute.xlu0 %1054 }
 0x214   : > { %v1197_v36 = vmul.f32 %v1060_v34, %v1005_v30  ;;  %v1196_v37 = vmul.f32 %v1055_v35, %v1004_v31  ;;  %2882 = vmatprep.mubr.bf16.mxu1 %v1224_v33  ;;  %v1023_v30 = vld [vmem:[#allocation2 + $0xc0] sm:$0xff]  ;;  %v1022_v31 = vld [vmem:[#allocation2 + $0x70] sm:$0xff] }
 0x215   : > { %2883 = vmatmul.mubr.bf16.vlgmr.msra.gmra.mxu1 %v1225_v32 }
 0x216   : > { %v1226_v40 = vpack.c.bf16 %v1197_v36, %v1196_v37  ;;  %v1025_v37 = vld [vmem:[#allocation2 + $0xd0] sm:$0xff] }
 0x217   : > { %v1070_v41 = vpop.permute.xlu1 %1069  ;;  %v1065_v42 = vpop.permute.xlu0 %1064 }
 0x218   : > { %v1199_v43 = vmul.f32 %v1070_v41, %v1007_v38  ;;  %v1198_v44 = vmul.f32 %v1065_v42, %v1006_v39  ;;  %2886 = vmatprep.mubr.bf16.mxu1 %v1226_v40  ;;  %v1024_v38 = vld [vmem:[#allocation2 + $0xa8] sm:$0xff] }
 0x21a   : > { %v1227_v47 = vpack.c.bf16 %v1199_v43, %v1198_v44  ;;  %v1027_v44 = vld [vmem:[#allocation2 + $0x28] sm:$0xff] }
 0x21b   : > { %v1080_v48 = vpop.permute.xlu1 %1079  ;;  %v1075_v49 = vpop.permute.xlu0 %1074 }
 0x21c   : > { %v1201_v50 = vmul.f32 %v1080_v48, %v1009_v45  ;;  %v1200_v51 = vmul.f32 %v1075_v49, %v1008_v46  ;;  %v1026_v45 = vld [vmem:[#allocation2 + $0x10] sm:$0xff] }
 0x21d   : > { %2887 = vmatmul.mubr.bf16.gmra.mxu1 %v1227_v47 }
 0x21e   : > { %v1228_v54 = vpack.c.bf16 %v1201_v50, %v1200_v51  ;;  %v1029_v51 = vld [vmem:[#allocation2 + $0xf8] sm:$0xff] }
 0x21f   : > { %v1090_v55 = vpop.permute.xlu1 %1089  ;;  %v1085_v56 = vpop.permute.xlu0 %1084 }
 0x220   : > { %v1203_v57 = vmul.f32 %v1090_v55, %v1011_v52  ;;  %v1202_v58 = vmul.f32 %v1085_v56, %v1010_v53  ;;  %2890 = vmatprep.mubr.bf16.mxu1 %v1228_v54  ;;  %v1028_v52 = vld [vmem:[#allocation2 + $0xa0] sm:$0xff] }
 0x222   : > { %v1229_v61 = vpack.c.bf16 %v1203_v57, %v1202_v58  ;;  %v1031_v58 = vld [vmem:[#allocation2 + $0x98] sm:$0xff] }
 0x223   : > { %v1100_v62 = vpop.permute.xlu1 %1099  ;;  %v1095_v63 = vpop.permute.xlu0 %1094 }
 0x224   : > { %v1205_v0 = vmul.f32 %v1100_v62, %v1013_v59  ;;  %v1204_v1 = vmul.f32 %v1095_v63, %v1012_v60  ;;  %v1030_v59 = vld [vmem:[#allocation2 + $0x20] sm:$0xff] }
 0x225   : > { %2891 = vmatmul.mubr.bf16.gmra.mxu1 %v1229_v61 }
 0x226   : > { %v1230_v4 = vpack.c.bf16 %v1205_v0, %v1204_v1 }
 0x227   : > { %v1110_v5 = vpop.permute.xlu1 %1109  ;;  %v1105_v6 = vpop.permute.xlu0 %1104 }
 0x228   : > { %v1207_v7 = vmul.f32 %v1110_v5, %v1015_v2  ;;  %v1206_v8 = vmul.f32 %v1105_v6, %v1014_v3  ;;  %2894 = vmatprep.mubr.bf16.mxu1 %v1230_v4 }
 0x22a   : > { %v1231_v11 = vpack.c.bf16 %v1207_v7, %v1206_v8 }
 0x22b   : > { %v1120_v12 = vpop.permute.xlu1 %1119  ;;  %v1115_v13 = vpop.permute.xlu0 %1114 }
 0x22c   : > { %v1209_v14 = vmul.f32 %v1120_v12, %v1017_v9  ;;  %v1208_v15 = vmul.f32 %v1115_v13, %v1016_v10 }
 0x22d   : > { %2895 = vmatmul.mubr.bf16.gmra.mxu1 %v1231_v11 }
 0x22e   : > { %v1232_v18 = vpack.c.bf16 %v1209_v14, %v1208_v15 }
 0x22f   : > { %v1130_v19 = vpop.permute.xlu1 %1129  ;;  %v1125_v20 = vpop.permute.xlu0 %1124 }
 0x230   : > { %v1211_v21 = vmul.f32 %v1130_v19, %v1019_v16  ;;  %v1210_v22 = vmul.f32 %v1125_v20, %v1018_v17  ;;  %2898 = vmatprep.mubr.bf16.mxu1 %v1232_v18 }
 0x232   : > { %v1233_v25 = vpack.c.bf16 %v1211_v21, %v1210_v22 }
 0x233   : > { %v1140_v26 = vpop.permute.xlu1 %1139  ;;  %v1135_v27 = vpop.permute.xlu0 %1134 }
 0x234   : > { %v1213_v28 = vmul.f32 %v1140_v26, %v1021_v23  ;;  %v1212_v29 = vmul.f32 %v1135_v27, %v1020_v24  ;;  %v3528_v27 = vld [vmem:[%s3664_s6] ss:$0 sm:$0xff] }
 0x235   : > { %2899 = vmatmul.mubr.bf16.gmra.mxu1 %v1233_v25 }
 0x236   : > { %v1234_v32 = vpack.c.bf16 %v1213_v28, %v1212_v29 }
 0x237   : > { %v1150_v33 = vpop.permute.xlu1 %1149  ;;  %v1145_v34 = vpop.permute.xlu0 %1144 }
 0x238   : > { %v1215_v35 = vmul.f32 %v1150_v33, %v1023_v30  ;;  %v1214_v36 = vmul.f32 %v1145_v34, %v1022_v31  ;;  %2902 = vmatprep.mubr.bf16.mxu1 %v1234_v32 }
 0x23a   : > { %v1235_v39 = vpack.c.bf16 %v1215_v35, %v1214_v36 }
 0x23b   : > { %v1160_v40 = vpop.permute.xlu1 %1159  ;;  %v1155_v41 = vpop.permute.xlu0 %1154 }
 0x23c   : > { %v1217_v42 = vmul.f32 %v1160_v40, %v1025_v37  ;;  %v1216_v43 = vmul.f32 %v1155_v41, %v1024_v38 }
 0x23d   : > { %2903 = vmatmul.mubr.bf16.gmra.mxu1 %v1235_v39 }
 0x23e   : > { %v1236_v46 = vpack.c.bf16 %v1217_v42, %v1216_v43 }
 0x23f   : > { %v1170_v47 = vpop.permute.xlu1 %1169  ;;  %v1165_v48 = vpop.permute.xlu0 %1164 }
 0x240   : > { %v1219_v49 = vmul.f32 %v1170_v47, %v1027_v44  ;;  %v1218_v50 = vmul.f32 %v1165_v48, %v1026_v45  ;;  %2906 = vmatprep.mubr.bf16.mxu1 %v1236_v46 }
 0x242   : > { %v1237_v53 = vpack.c.bf16 %v1219_v49, %v1218_v50 }
 0x243   : > { %v1180_v54 = vpop.permute.xlu1 %1179  ;;  %v1175_v55 = vpop.permute.xlu0 %1174 }
 0x244   : > { %v1221_v56 = vmul.f32 %v1180_v54, %v1029_v51  ;;  %v1220_v57 = vmul.f32 %v1175_v55, %v1028_v52 }
 0x245   : > { %2907 = vmatmul.mubr.bf16.gmra.mxu1 %v1237_v53 }
 0x246   : > { %v1238_v60 = vpack.c.bf16 %v1221_v56, %v1220_v57 }
 0x247   : > { %v1190_v61 = vpop.permute.xlu1 %1189  ;;  %v1185_v62 = vpop.permute.xlu0 %1184 }
 0x248   : > { %v1223_v63 = vmul.f32 %v1190_v61, %v1031_v58  ;;  %v1222_v0 = vmul.f32 %v1185_v62, %v1030_v59  ;;  %2910 = vmatprep.mubr.bf16.mxu1 %v1238_v60 }
 0x24a   : > { %v1239_v1 = vpack.c.bf16 %v1223_v63, %v1222_v0 }
 0x24b   : > { %v1929_v12 = vpop.permute.xlu1 %1928  ;;  %v1924_v13 = vpop.permute.xlu0 %1923 }
 0x24d   : > { %2911 = vmatmul.mubr.bf16.gmra.mxu1 %v1239_v1 }
 0x24f   : > { %v1939_v16 = vpop.permute.xlu1 %1938  ;;  %v1934_v17 = vpop.permute.xlu0 %1933 }
 0x253   : > { %v3513_v19 = vpop.permute.xlu1 %1948  ;;  %v3515_v20 = vpop.permute.xlu0 %1943 }
 0x257   : > { %v3521_v23 = vpop.permute.xlu1 %1958  ;;  %v1954_v24 = vpop.permute.xlu0 %1953 }
 0x25b   : > { %v3530_v28 = vpop.permute.xlu1 %1968  ;;  %v3532_v29 = vpop.permute.xlu0 %1963 }
 0x25f   : > { %v3540_v40 = vpop.permute.xlu1 %1978  ;;  %v3542_v41 = vpop.permute.xlu0 %1973 }
 0x263   : > { %v3549_v58 = vpop.permute.xlu1 %1988  ;;  %v3551_v59 = vpop.permute.xlu0 %1983 }
 0x272   : > { %v2836_v2 = vpop.f32.mrf.mxu0 }
 0x274   : > { %v1482_v3 = vpop.f32.mrf.mxu0 }
 0x276   : > { %v2837_v4 = vpop.f32.mrf.mxu0 }
 0x278   : > { %v1485_v5 = vpop.f32.mrf.mxu0 }
 0x27a   : > { %v2840_v6 = vpop.f32.mrf.mxu0 }
 0x27c   : > { %v1498_v7 = vpop.f32.mrf.mxu0 }
 0x27e   : > { %v2841_v8 = vpop.f32.mrf.mxu0 }
 0x280   : > { %v1501_v9 = vpop.f32.mrf.mxu0 }
 0x282   : > { %v3503_v10 = vpop.f32.mrf.mxu0 }
 0x284   : > { %v3505_v11 = vpop.f32.mrf.mxu0 }
 0x286   : > { %v3507_v14 = vpop.f32.mrf.mxu0 }
 0x288   : > { %v3509_v15 = vpop.f32.mrf.mxu0 }
 0x28a   : > { %v3511_v18 = vpop.f32.mrf.mxu0 }
 0x28c   : > { %v3517_v21 = vpop.f32.mrf.mxu0 }
 0x28e   : > { %v3519_v22 = vpop.f32.mrf.mxu0 }
 0x290   : > { %v3523_v25 = vpop.f32.mrf.mxu0 }
 0x292   : > { %v3534_v32 = vpop.f32.mrf.mxu0 }
 0x294   : > { %v3538_v39 = vpop.f32.mrf.mxu0 }
 0x296   : > { %v3546_v51 = vpop.f32.mrf.mxu0 }
 0x2d5   : > { %v2884_v26 = vpop.f32.mrf.mxu1 }
 0x2d6   : > { %v1700_v30 = vadd.f32 %v2884_v26, %v2836_v2  ;;  %v3554_v2 = vpop.f32.mrf.mxu0 }
 0x2d7   : > { %v1691_v31 = vpop.f32.mrf.mxu1 }
 0x2d8   : > { %v1827_v33 = vadd.f32 %v3528_v27, %v1700_v30  ;;  %v1692_v34 = vadd.f32 %v1691_v31, %v1482_v3  ;;  %v3561_v30 = vpop.f32.mrf.mxu0  ;;  %v1994_v31 = vpop.permute.xlu0 %1993 }
 0x2d9   : > { %v2885_v35 = vpop.f32.mrf.mxu1 }
 0x2da   : > { %v1825_v36 = vadd.f32 %v3528_v27, %v1692_v34  ;;  %v1703_v37 = vadd.f32 %v2885_v35, %v2837_v4  ;;  %v1891_v42 = vmax.f32 %v1827_v33, 0.0 }
 0x2db   : > { %v1694_v38 = vpop.f32.mrf.mxu1 }
 0x2dc   : > { %v1828_v43 = vadd.f32 %v3528_v27, %v1703_v37  ;;  %v1695_v44 = vadd.f32 %v1694_v38, %v1485_v5  ;;  %v1889_v46 = vmax.f32 %v1825_v36, 0.0  ;;  %v2083_v52 = vmul.f32 %v1934_v17, %v1891_v42 }
 0x2dd   : > { %v2888_v45 = vpop.f32.mrf.mxu1 }
 0x2de   : > { %v1892_v47 = vmax.f32 %v1828_v43, 0.0  ;;  %v1826_v48 = vadd.f32 %v3528_v27, %v1695_v44  ;;  %v1716_v49 = vadd.f32 %v2888_v45, %v2840_v6  ;;  %v2081_v60 = vmul.f32 %v1924_v13, %v1889_v46  ;;  %v3570_v46 = vpop.f32.mrf.mxu0 }
 0x2df   : > { %v1707_v50 = vpop.f32.mrf.mxu1 }
 0x2e0   : > { %v2084_v53 = vmul.f32 %v1939_v16, %v1892_v47  ;;  %v1890_v54 = vmax.f32 %v1826_v48, 0.0  ;;  %v1708_v55 = vadd.f32 %v1707_v50, %v1498_v7  ;;  %v1831_v56 = vadd.f32 %v3528_v27, %v1716_v49 }
 0x2e1   : > { %v2889_v57 = vpop.f32.mrf.mxu1 }
 0x2e2   : > { %v2571_v61 = vpack.c.bf16 %v2084_v53, %v2083_v52  ;;  %v2082_v62 = vmul.f32 %v1929_v12, %v1890_v54  ;;  %v1829_v63 = vadd.f32 %v3528_v27, %v1708_v55  ;;  %v1719_v0 = vadd.f32 %v2889_v57, %v2841_v8  ;;  %v1999_v8 = vpop.permute.xlu1 %1998  ;;  %v3582_v54 = vpop.f32.mrf.mxu0 }
 0x2e3   : > { %v1710_v1 = vpop.f32.mrf.mxu1  ;;  %v1895_v5 = vmax.f32 %v1831_v56, 0.0 }
 0x2e4   : > { %2643 = vst [vmem:[%s3387_s22 + $0x8] sm:$0xff] %v2571_v61   ;;  %v2566_v3 = vpack.c.bf16 %v2082_v62, %v2081_v60  ;;  %v1711_v4 = vadd.f32 %v1710_v1, %v1501_v9  ;;  %v1832_v6 = vadd.f32 %v3528_v27, %v1719_v0  ;;  %v1893_v16 = vmax.f32 %v1829_v63, 0.0 }
 0x2e5   : > { %v2892_v7 = vpop.f32.mrf.mxu1  ;;  %v2087_v35 = vmul.f32 %v1954_v24, %v1895_v5 }
 0x2e6   : > { %2567 = vst [vmem:[%s3387_s22] sm:$0xff] %v2566_v3   ;;  %v1830_v17 = vadd.f32 %v3528_v27, %v1711_v4  ;;  %v1732_v13 = vadd.f32 %v2892_v7, %v3503_v10  ;;  %v1896_v12 = vmax.f32 %v1832_v6, 0.0  ;;  %v2085_v38 = vmul.f32 %v3515_v20, %v1893_v16  ;;  %v3575_v49 = vpop.permute.xlu1 %2008  ;;  %v3577_v20 = vpop.permute.xlu0 %2003 }
 0x2e7   : > { %v1723_v26 = vpop.f32.mrf.mxu1 }
 0x2e8   : > { %v1894_v33 = vmax.f32 %v1830_v17, 0.0  ;;  %v1835_v9 = vadd.f32 %v3528_v27, %v1732_v13  ;;  %v1724_v34 = vadd.f32 %v1723_v26, %v3505_v11  ;;  %v2088_v36 = vmul.f32 %v3521_v23, %v1896_v12 }
 0x2e9   : > { %v2893_v37 = vpop.f32.mrf.mxu1 }
 0x2ea   : > { %v2086_v10 = vmul.f32 %v3513_v19, %v1894_v33  ;;  %v1735_v42 = vadd.f32 %v2893_v37, %v3507_v14  ;;  %v2581_v43 = vpack.c.bf16 %v2088_v36, %v2087_v35  ;;  %v1833_v44 = vadd.f32 %v3528_v27, %v1724_v34  ;;  %v2014_v4 = vpop.permute.xlu0 %2013 }
 0x2eb   : > { %v1726_v45 = vpop.f32.mrf.mxu1  ;;  %v1899_v48 = vmax.f32 %v1835_v9, 0.0 }
 0x2ec   : > { %v2576_v47 = vpack.c.bf16 %v2086_v10, %v2085_v38  ;;  %v1836_v11 = vadd.f32 %v3528_v27, %v1735_v42  ;;  %2645 = vst [vmem:[%s3387_s22 + $0x18] sm:$0xff] %v2581_v43   ;;  %v1727_v23 = vadd.f32 %v1726_v45, %v3509_v15  ;;  %v1897_v50 = vmax.f32 %v1833_v44, 0.0 }
 0x2ed   : > { %v2896_v24 = vpop.f32.mrf.mxu1  ;;  %v2091_v55 = vmul.f32 %v3542_v41, %v1899_v48  ;;  %v3592_v41 = vpop.f32.mrf.mxu0 }
 0x2ee   : > { %2644 = vst [vmem:[%s3387_s22 + $0x10] sm:$0xff] %v2576_v47   ;;  %v1900_v14 = vmax.f32 %v1836_v11, 0.0  ;;  %v1748_v19 = vadd.f32 %v2896_v24, %v3511_v18  ;;  %v1834_v52 = vadd.f32 %v3528_v27, %v1727_v23  ;;  %v2089_v0 = vmul.f32 %v3532_v29, %v1897_v50  ;;  %v2024_v37 = vpop.permute.xlu0 %2023 }
 0x2ef   : > { %v1739_v53 = vpop.f32.mrf.mxu1  ;;  %v2860_v12 = vpop.f32.mrf.mxu0 }
 0x2f0   : > { %v2092_v15 = vmul.f32 %v3540_v40, %v1900_v14  ;;  %v1839_v56 = vadd.f32 %v3528_v27, %v1748_v19  ;;  %v1740_v57 = vadd.f32 %v1739_v53, %v3517_v21  ;;  %v1898_v60 = vmax.f32 %v1834_v52, 0.0  ;;  %v2019_v40 = vpop.permute.xlu1 %2018 }
 0x2f1   : > { %v2897_v61 = vpop.f32.mrf.mxu1 }
 0x2f2   : > { %v2591_v62 = vpack.c.bf16 %v2092_v15, %v2091_v55  ;;  %v1837_v18 = vadd.f32 %v3528_v27, %v1740_v57  ;;  %v1751_v63 = vadd.f32 %v2897_v61, %v3519_v22  ;;  %v2090_v1 = vmul.f32 %v3530_v28, %v1898_v60  ;;  %v2034_v19 = vpop.permute.xlu0 %2033 }
 0x2f3   : > { %v1742_v3 = vpop.f32.mrf.mxu1  ;;  %v1903_v5 = vmax.f32 %v1839_v56, 0.0 }
 0x2f4   : > { %2647 = vst [vmem:[%s3387_s22 + $0x28] sm:$0xff] %v2591_v62   ;;  %v1840_v21 = vadd.f32 %v3528_v27, %v1751_v63  ;;  %v1743_v6 = vadd.f32 %v1742_v3, %v3523_v25  ;;  %v2586_v7 = vpack.c.bf16 %v2090_v1, %v2089_v0  ;;  %v1901_v17 = vmax.f32 %v1837_v18, 0.0  ;;  %v2029_v36 = vpop.permute.xlu1 %2028 }
 0x2f5   : > { %v2900_v16 = vpop.f32.mrf.mxu1  ;;  %v2095_v26 = vmul.f32 %v1994_v31, %v1903_v5 }
 0x2f6   : > { %v1904_v22 = vmax.f32 %v1840_v21, 0.0  ;;  %v1838_v29 = vadd.f32 %v3528_v27, %v1743_v6  ;;  %v1764_v13 = vadd.f32 %v2900_v16, %v3534_v32  ;;  %2646 = vst [vmem:[%s3387_s22 + $0x20] sm:$0xff] %v2586_v7   ;;  %v2093_v38 = vmul.f32 %v3551_v59, %v1901_v17 }
 0x2f7   : > { %v1755_v28 = vpop.f32.mrf.mxu1 }
 0x2f8   : > { %v2096_v33 = vmul.f32 %v1999_v8, %v1904_v22  ;;  %v1902_v9 = vmax.f32 %v1838_v29, 0.0  ;;  %v1756_v34 = vadd.f32 %v1755_v28, %v3538_v39  ;;  %v1843_v35 = vadd.f32 %v3528_v27, %v1764_v13  ;;  %v1578_v8 = vpop.f32.mrf.mxu0 }
 0x2f9   : > { %v2901_v25 = vpop.f32.mrf.mxu1 }
 0x2fa   : > { %v2601_v10 = vpack.c.bf16 %v2096_v33, %v2095_v26  ;;  %v2094_v32 = vmul.f32 %v3549_v58, %v1902_v9  ;;  %v1841_v42 = vadd.f32 %v3528_v27, %v1756_v34  ;;  %v1767_v43 = vadd.f32 %v2901_v25, %v3546_v51  ;;  %v2861_v14 = vpop.f32.mrf.mxu0  ;;  %v2039_v51 = vpop.permute.xlu1 %2038 }
 0x2fb   : > { %v1758_v31 = vpop.f32.mrf.mxu1  ;;  %v1907_v45 = vmax.f32 %v1843_v35, 0.0 }
 0x2fc   : > { %2649 = vst [vmem:[%s3387_s22 + $0x38] sm:$0xff] %v2601_v10   ;;  %v2596_v44 = vpack.c.bf16 %v2094_v32, %v2093_v38  ;;  %v1759_v39 = vadd.f32 %v1758_v31, %v3554_v2  ;;  %v1844_v47 = vadd.f32 %v3528_v27, %v1767_v43  ;;  %v1905_v11 = vmax.f32 %v1841_v42, 0.0  ;;  %v1581_v18 = vpop.f32.mrf.mxu0 }
 0x2fd   : > { %v2904_v48 = vpop.f32.mrf.mxu1  ;;  %v2099_v53 = vmul.f32 %v2014_v4, %v1907_v45  ;;  %v2044_v4 = vpop.permute.xlu0 %2043 }
 0x2fe   : > { %2648 = vst [vmem:[%s3387_s22 + $0x30] sm:$0xff] %v2596_v44   ;;  %v1842_v59 = vadd.f32 %v3528_v27, %v1759_v39  ;;  %v1780_v58 = vadd.f32 %v2904_v48, %v3561_v30  ;;  %v1908_v23 = vmax.f32 %v1844_v47, 0.0  ;;  %v2097_v56 = vmul.f32 %v3577_v20, %v1905_v11  ;;  %v2864_v21 = vpop.f32.mrf.mxu0 }
 0x2ff   : > { %v1771_v24 = vpop.f32.mrf.mxu1 }
 0x300   : > { %v1906_v50 = vmax.f32 %v1842_v59, 0.0  ;;  %v1847_v52 = vadd.f32 %v3528_v27, %v1780_v58  ;;  %v1772_v2 = vadd.f32 %v1771_v24, %v3570_v46  ;;  %v2100_v55 = vmul.f32 %v2019_v40, %v1908_v23  ;;  %v2049_v40 = vpop.permute.xlu1 %2048  ;;  %v1594_v9 = vpop.f32.mrf.mxu0 }
 0x301   : > { %v2905_v15 = vpop.f32.mrf.mxu1  ;;  %v2054_v25 = vpop.permute.xlu0 %2053 }
 0x302   : > { %v2098_v57 = vmul.f32 %v3575_v49, %v1906_v50  ;;  %v1783_v30 = vadd.f32 %v2905_v15, %v3582_v54  ;;  %v2611_v60 = vpack.c.bf16 %v2100_v55, %v2099_v53  ;;  %v1845_v61 = vadd.f32 %v3528_v27, %v1772_v2 }
 0x303   : > { %v1774_v62 = vpop.f32.mrf.mxu1  ;;  %v1911_v0 = vmax.f32 %v1847_v52, 0.0 }
 0x304   : > { %v2606_v63 = vpack.c.bf16 %v2098_v57, %v2097_v56  ;;  %v1848_v1 = vadd.f32 %v3528_v27, %v1783_v30  ;;  %2651 = vst [vmem:[%s3387_s22 + $0x48] sm:$0xff] %v2611_v60   ;;  %v1775_v46 = vadd.f32 %v1774_v62, %v3592_v41  ;;  %v1909_v5 = vmax.f32 %v1845_v61, 0.0  ;;  %v2059_v35 = vpop.permute.xlu1 %2058 }
 0x305   : > { %v2908_v3 = vpop.f32.mrf.mxu1  ;;  %v2103_v7 = vmul.f32 %v2034_v19, %v1911_v0  ;;  %v2064_v24 = vpop.permute.xlu0 %2063 }
 0x306   : > { %2650 = vst [vmem:[%s3387_s22 + $0x40] sm:$0xff] %v2606_v63   ;;  %v1912_v20 = vmax.f32 %v1848_v1, 0.0  ;;  %v1796_v49 = vadd.f32 %v2908_v3, %v2860_v12  ;;  %v1846_v54 = vadd.f32 %v3528_v27, %v1775_v46  ;;  %v2101_v33 = vmul.f32 %v2024_v37, %v1909_v5  ;;  %v2865_v37 = vpop.f32.mrf.mxu0 }
 0x307   : > { %v1787_v6 = vpop.f32.mrf.mxu1 }
 0x308   : > { %v2104_v16 = vmul.f32 %v2039_v51, %v1912_v20  ;;  %v1851_v17 = vadd.f32 %v3528_v27, %v1796_v49  ;;  %v1788_v22 = vadd.f32 %v1787_v6, %v1578_v8  ;;  %v1910_v29 = vmax.f32 %v1846_v54, 0.0  ;;  %v2069_v23 = vpop.permute.xlu1 %2068  ;;  %v1597_v52 = vpop.f32.mrf.mxu0 }
 0x309   : > { %v2909_v13 = vpop.f32.mrf.mxu1 }
 0x30a   : > { %v2621_v41 = vpack.c.bf16 %v2104_v16, %v2103_v7  ;;  %v1849_v28 = vadd.f32 %v3528_v27, %v1788_v22  ;;  %v1799_v26 = vadd.f32 %v2909_v13, %v2861_v14  ;;  %v2102_v12 = vmul.f32 %v2029_v36, %v1910_v29 }
 0x30b   : > { %v1790_v34 = vpop.f32.mrf.mxu1  ;;  %v1915_v38 = vmax.f32 %v1851_v17, 0.0 }
 0x30c   : > { %2653 = vst [vmem:[%s3387_s22 + $0x58] sm:$0xff] %v2621_v41   ;;  %v1852_v10 = vadd.f32 %v3528_v27, %v1799_v26  ;;  %v1791_v32 = vadd.f32 %v1790_v34, %v1581_v18  ;;  %v2616_v42 = vpack.c.bf16 %v2102_v12, %v2101_v33  ;;  %v1913_v31 = vmax.f32 %v1849_v28, 0.0  ;;  %v2079_v62 = vpop.permute.xlu1 %2078  ;;  %v2074_v18 = vpop.permute.xlu0 %2073 }
 0x30d   : > { %v2912_v43 = vpop.f32.mrf.mxu1  ;;  %v2107_v36 = vmul.f32 %v2054_v25, %v1915_v38 }
 0x30e   : > { %v1916_v8 = vmax.f32 %v1852_v10, 0.0  ;;  %v1850_v44 = vadd.f32 %v3528_v27, %v1791_v32  ;;  %v1812_v39 = vadd.f32 %v2912_v43, %v2864_v21  ;;  %2652 = vst [vmem:[%s3387_s22 + $0x50] sm:$0xff] %v2616_v42   ;;  %v2105_v14 = vmul.f32 %v2044_v4, %v1913_v31 }
 0x30f   : > { %v1803_v45 = vpop.f32.mrf.mxu1 }
 0x310   : > { %v2108_v47 = vmul.f32 %v2059_v35, %v1916_v8  ;;  %v1914_v48 = vmax.f32 %v1850_v44, 0.0  ;;  %v1804_v11 = vadd.f32 %v1803_v45, %v1594_v9  ;;  %v1855_v59 = vadd.f32 %v3528_v27, %v1812_v39 }
 0x311   : > { %v2913_v58 = vpop.f32.mrf.mxu1 }
 0x312   : > { %v2631_v51 = vpack.c.bf16 %v2108_v47, %v2107_v36  ;;  %v2106_v19 = vmul.f32 %v2049_v40, %v1914_v48  ;;  %v1853_v50 = vadd.f32 %v3528_v27, %v1804_v11  ;;  %v1815_v2 = vadd.f32 %v2913_v58, %v2865_v37 }
 0x313   : > { %v1806_v53 = vpop.f32.mrf.mxu1  ;;  %v1919_v56 = vmax.f32 %v1855_v59, 0.0 }
 0x314   : > { %2655 = vst [vmem:[%s3387_s22 + $0x68] sm:$0xff] %v2631_v51   ;;  %v2626_v55 = vpack.c.bf16 %v2106_v19, %v2105_v14  ;;  %v1807_v15 = vadd.f32 %v1806_v53, %v1597_v52  ;;  %v1856_v57 = vadd.f32 %v3528_v27, %v1815_v2  ;;  %v1917_v30 = vmax.f32 %v1853_v50, 0.0 }
 0x315   : > { %v2111_v0 = vmul.f32 %v2074_v18, %v1919_v56 }
 0x316   : > { %2654 = vst [vmem:[%s3387_s22 + $0x60] sm:$0xff] %v2626_v55   ;;  %v1854_v60 = vadd.f32 %v3528_v27, %v1807_v15  ;;  %v1920_v61 = vmax.f32 %v1856_v57, 0.0  ;;  %v2109_v46 = vmul.f32 %v2064_v24, %v1917_v30 }
 0x318   : > { %v1918_v63 = vmax.f32 %v1854_v60, 0.0  ;;  %v2112_v1 = vmul.f32 %v2079_v62, %v1920_v61 }
 0x31a   : > { %v2110_v3 = vmul.f32 %v2069_v23, %v1918_v63  ;;  %v2641_v40 = vpack.c.bf16 %v2112_v1, %v2111_v0 }
 0x31c   : > { %v2636_v4 = vpack.c.bf16 %v2110_v3, %v2109_v46  ;;  %2657 = vst [vmem:[%s3387_s22 + $0x78] sm:$0xff] %v2641_v40  }
 0x31e   : > { %2656 = vst [vmem:[%s3387_s22 + $0x70] sm:$0xff] %v2636_v4  }
 0x31f PF: > { %s20_s11 = sadd.s32 1, %s3175_s11   ;;  %s3678_s16 = sld [smem:[#allocation12_spill]] }
 0x320   : > { %p17_p12 = scmp.ge.s32.totalorder %s20_s11, 6   ;;  %s3679_s26 = sld [smem:[#allocation10_spill]] }
 0x321   : > { %s3680_s23 = sld [smem:[#allocation11_spill]]  ;;  %s3681_s27 = smov %s3155_s28 }
 0x322   : > { %s3683_s29 = smov %s3167_s9  ;;  %s3684_s30 = smov %s3171_s10 }
 0x323   :  { %19 = sbr.rel (!%p17_p12) target bundleno = 7 (0x7), region = 139 }
 0x325   : > { %s3682_s28 = smov %s3678_s16 }
 0x326   : > { %s3685_s9 = smov %s3679_s26 }
 0x327   : > { %s3686_s10 = smov %s3680_s23 }
 0x328   :  { %2295 = vsyncpa [#allocation5], 1 }
 0x329   :  { %2297 = vsyncpa [#allocation5 + $0x1], 1 }
 0x32a   :  { %2298 = vsyncpa [#allocation7], 1 }

</bundles_post_ra>
